<compile_context>
chip_gen: v7x
topology: tpu7x:2x2x1
jax: 0.10.0
libtpu: 0.0.40
codegen_flags: <defaults>
</compile_context>

<pallas_src>
import jax
import jax.numpy as jnp
from jax.experimental import pallas as pl
from jax.experimental.pallas import tpu as pltpu

LATENT = 100
LATENT_PAD = 128          # lane-aligned K for layer 1 (zero-pad is exact)
H1 = 256
H2 = 512
N_OUT = 3 * 64 * 64       # 12288


def _generator_fused_kernel(x_ref, w1_ref, b1_ref, w2_ref, b2_ref,
                            w3_ref, b3_ref, o_ref):
    # Layers 1-2: tiny, recomputed each grid step from constant-index blocks
    # (hidden under the w3 tile DMA).  f32 math throughout.
    h1 = jnp.dot(x_ref[...], w1_ref[...], preferred_element_type=jnp.float32)
    h1 = jnp.maximum(h1 + b1_ref[...], 0.0)
    h2 = jnp.dot(h1, w2_ref[...], preferred_element_type=jnp.float32)
    h2 = jnp.maximum(h2 + b2_ref[...], 0.0)

    # Layer-3 column tile: native bf16 x bf16 MXU matmul, f32 accumulation and
    # bias.  No f32 upcast of the (512, tn) weight tile -> no 4 MiB VMEM temp
    # and no per-step VPU cast; only the small (M, 512) h2 is cast.
    y = jnp.dot(h2.astype(jnp.bfloat16), w3_ref[...],
                preferred_element_type=jnp.float32) + b3_ref[...]
    o_ref[...] = jnp.tanh(y).astype(o_ref.dtype)


def _default_tn():
    """Pick the layer-3 column-tile width per TPU generation."""
    try:
        kind = jax.devices()[0].device_kind.lower()
    except Exception:  # pragma: no cover - defensive
        return 3072
    if any(s in kind for s in ("v5e", "v5 lite", "v5lite", "v6e", "v6 lite", "v6")):
        # Single TensorCore per chip: fewer, larger tiles -> less per-step
        # pipeline overhead on a purely HBM-bandwidth-bound kernel.
        return 4096          # 3 grid steps
    # Megacore chips (v7x, ...): keep the step count even so the two
    # TensorCores split the bandwidth-bound grid cleanly (2/2, not 2/1).
    return 3072               # 4 grid steps


def generator_pallas(x, params, *, tn):
    """Fused generator forward: (M, 100) latents -> (M, 3, 64, 64) images."""
    (w1_p, b1_2), (w2, b2_2), (w3, b3_2) = params
    M = x.shape[0]
    assert x.shape[1] == LATENT
    N = w3.shape[1]
    assert N % tn == 0 and tn % 128 == 0

    # Zero-pad latent dim 100 -> 128 (exact no-op mathematically).  Weight
    # padding / bias reshapes were hoisted into make_generator_params.
    x_p = jnp.pad(x, ((0, 0), (0, LATENT_PAD - LATENT)))

    grid_steps = N // tn
    flops = (2 * M * H2 * N
             + grid_steps * 2 * M * (LATENT_PAD * H1 + H1 * H2))
    bytes_accessed = (
        x_p.size * 4 + w1_p.size * 4 + b1_2.size * 4
        + w2.size * 4 + b2_2.size * 4
        + w3.size * w3.dtype.itemsize + b3_2.size * 4
        + M * N * 4)

    out = pl.pallas_call(
        _generator_fused_kernel,
        out_shape=jax.ShapeDtypeStruct((M, N), jnp.float32),
        grid_spec=pltpu.PrefetchScalarGridSpec(
            num_scalar_prefetch=0,
            grid=(grid_steps,),
            in_specs=[
                pl.BlockSpec((M, LATENT_PAD), lambda j: (0, 0)),   # x (full)
                pl.BlockSpec((LATENT_PAD, H1), lambda j: (0, 0)),  # w1 (full)
                pl.BlockSpec((1, H1), lambda j: (0, 0)),           # b1 (full)
                pl.BlockSpec((H1, H2), lambda j: (0, 0)),          # w2 (full)
                pl.BlockSpec((1, H2), lambda j: (0, 0)),           # b2 (full)
                pl.BlockSpec((H2, tn), lambda j: (0, j)),          # w3 col tile
                pl.BlockSpec((1, tn), lambda j: (0, j)),           # b3 tile
            ],
            out_specs=pl.BlockSpec((M, tn), lambda j: (0, j)),
        ),
        compiler_params=pltpu.CompilerParams(
            dimension_semantics=("parallel",),
            vmem_limit_bytes=32 * 1024 * 1024,
        ),
        cost_estimate=pl.CostEstimate(
            flops=flops, transcendentals=M * N, bytes_accessed=bytes_accessed),
    )(x_p, w1_p, b1_2, w2, b2_2, w3, b3_2)

    # PyTorch: .view(-1, 3, 64, 64)  (row-major reshape, NCHW)
    return out.reshape(-1, 3, 64, 64)


def init_linear_params(key, fan_in, fan_out, w_dtype=jnp.float32):
    """Deterministic init mimicking nn.Linear default U[-1/sqrt(fan_in), +]."""
    kw, kb = jax.random.split(key)
    bound = 1.0 / jnp.sqrt(float(fan_in))
    # Stored as (fan_in, fan_out) so forward is x @ W (== PyTorch x @ W.T).
    w = jax.random.uniform(kw, (fan_in, fan_out), jnp.float32, -bound, bound)
    b = jax.random.uniform(kb, (fan_out,), jnp.float32, -bound, bound)
    return w.astype(w_dtype), b


def make_generator_params(seed=0, w3_dtype=jnp.bfloat16):
    """Build params with all constant preprocessing hoisted out of the forward."""
    k1, k2, k3 = jax.random.split(jax.random.PRNGKey(seed), 3)
    w1, b1 = init_linear_params(k1, LATENT, H1)
    w2, b2 = init_linear_params(k2, H1, H2)
    # w3 dominates HBM traffic -> store in bf16 (native bf16 MXU matmul).
    w3, b3 = init_linear_params(k3, H2, N_OUT, w_dtype=w3_dtype)
    # Hoisted constant prep: pad w1's K to 128, reshape biases to 2-D rows.
    w1_p = jnp.pad(w1, ((0, LATENT_PAD - LATENT), (0, 0)))
    return ((w1_p, b1.reshape(1, H1)),
            (w2, b2.reshape(1, H2)),
            (w3, b3.reshape(1, N_OUT)))


_TN = _default_tn()


@jax.jit
def generator_forward(x, params):
    return generator_pallas(x, params, tn=_TN)


def reference_forward(x, params):
    """Pure-JAX reference with the same numerics (bf16 layer-3 matmul)."""
    (w1_p, b1_2), (w2, b2_2), (w3, b3_2) = params
    x_p = jnp.pad(x, ((0, 0), (0, LATENT_PAD - LATENT)))
    h1 = jnp.maximum(x_p @ w1_p + b1_2, 0.0)
    h2 = jnp.maximum(h1 @ w2 + b2_2, 0.0)
    y = jnp.dot(h2.astype(jnp.bfloat16), w3,
                preferred_element_type=jnp.float32) + b3_2
    return jnp.tanh(y).reshape(-1, 3, 64, 64)


if __name__ == "__main__":
    key = jax.random.PRNGKey(0)
    batch = 8
    z = jax.random.normal(key, (batch, LATENT), jnp.float32)  # latent vectors

    params = make_generator_params(seed=0)

    out = jax.block_until_ready(generator_forward(z, params))
    assert out.shape == (batch, 3, 64, 64), out.shape

    ref = reference_forward(z, params)
    # bf16 layer-3 matmul in both paths; tolerance loosened accordingly.
    assert jnp.allclose(out, ref, atol=2e-3, rtol=2e-3), "mismatch vs reference"

    print("KERNEL_OK")
</pallas_src>

<mosaic_0001>
module attributes {stable_mosaic.version = 11 : i64} {
  func.func @_generator_fused_kernel(%arg0: i32, %arg1: memref<8x128xf32, #tpu.memory_space<vmem>>, %arg2: memref<128x256xf32, #tpu.memory_space<vmem>>, %arg3: memref<1x256xf32, #tpu.memory_space<vmem>>, %arg4: memref<256x512xf32, #tpu.memory_space<vmem>>, %arg5: memref<1x512xf32, #tpu.memory_space<vmem>>, %arg6: memref<512x3072xbf16, #tpu.memory_space<vmem>>, %arg7: memref<1x3072xf32, #tpu.memory_space<vmem>>, %arg8: memref<8x3072xf32, #tpu.memory_space<vmem>>) attributes {dimension_semantics = [#tpu.dimension_semantics<parallel>], iteration_bounds = array<i64: 4>, scalar_prefetch = 0 : i64, scratch_operands = 0 : i64, tpu.core_type = #tpu.core_type<tc>, window_params = [{pipeline_mode = #tpu.pipeline_mode<synchronous>, transform_indices = @transform_0, window_bounds = array<i64: 8, 128>}, {pipeline_mode = #tpu.pipeline_mode<synchronous>, transform_indices = @transform_1, window_bounds = array<i64: 128, 256>}, {pipeline_mode = #tpu.pipeline_mode<synchronous>, transform_indices = @transform_2, window_bounds = array<i64: 1, 256>}, {pipeline_mode = #tpu.pipeline_mode<synchronous>, transform_indices = @transform_3, window_bounds = array<i64: 256, 512>}, {pipeline_mode = #tpu.pipeline_mode<synchronous>, transform_indices = @transform_4, window_bounds = array<i64: 1, 512>}, {transform_indices = @transform_5, window_bounds = array<i64: 512, 3072>}, {transform_indices = @transform_6, window_bounds = array<i64: 1, 3072>}, {transform_indices = @transform_7, window_bounds = array<i64: 8, 3072>}]} {
    %c0 = arith.constant 0 : index
    %c0_0 = arith.constant 0 : index
    %0 = vector.load %arg1[%c0, %c0_0] : memref<8x128xf32, #tpu.memory_space<vmem>>, vector<8x128xf32>
    %c0_1 = arith.constant 0 : index
    %c0_2 = arith.constant 0 : index
    %1 = vector.load %arg2[%c0_1, %c0_2] : memref<128x256xf32, #tpu.memory_space<vmem>>, vector<128x256xf32>
    %cst = arith.constant dense<0.000000e+00> : vector<8x256xf32>
    %2 = tpu.matmul %0, %1, %cst {dimension_numbers = #tpu.dot_dimension_numbers<[1], [0], [0], [1], [0, 0, 1, 1], [], []>} : vector<8x128xf32>, vector<128x256xf32>, vector<8x256xf32> -> vector<8x256xf32>
    %c0_3 = arith.constant 0 : index
    %c0_4 = arith.constant 0 : index
    %3 = vector.load %arg3[%c0_3, %c0_4] : memref<1x256xf32, #tpu.memory_space<vmem>>, vector<1x256xf32>
    %4 = vector.broadcast %3 : vector<1x256xf32> to vector<8x256xf32>
    %5 = arith.addf %2, %4 : vector<8x256xf32>
    %cst_5 = arith.constant 0.000000e+00 : f32
    %6 = vector.broadcast %cst_5 : f32 to vector<8x256xf32>
    %7 = arith.maximumf %5, %6 : vector<8x256xf32>
    %c0_6 = arith.constant 0 : index
    %c0_7 = arith.constant 0 : index
    %8 = vector.load %arg4[%c0_6, %c0_7] : memref<256x512xf32, #tpu.memory_space<vmem>>, vector<256x512xf32>
    %cst_8 = arith.constant dense<0.000000e+00> : vector<8x512xf32>
    %9 = tpu.matmul %7, %8, %cst_8 {dimension_numbers = #tpu.dot_dimension_numbers<[1], [0], [0], [1], [0, 0, 1, 1], [], []>} : vector<8x256xf32>, vector<256x512xf32>, vector<8x512xf32> -> vector<8x512xf32>
    %c0_9 = arith.constant 0 : index
    %c0_10 = arith.constant 0 : index
    %10 = vector.load %arg5[%c0_9, %c0_10] : memref<1x512xf32, #tpu.memory_space<vmem>>, vector<1x512xf32>
    %11 = vector.broadcast %10 : vector<1x512xf32> to vector<8x512xf32>
    %12 = arith.addf %9, %11 : vector<8x512xf32>
    %cst_11 = arith.constant 0.000000e+00 : f32
    %13 = vector.broadcast %cst_11 : f32 to vector<8x512xf32>
    %14 = arith.maximumf %12, %13 : vector<8x512xf32>
    %15 = arith.truncf %14 : vector<8x512xf32> to vector<8x512xbf16>
    %c0_12 = arith.constant 0 : index
    %c0_13 = arith.constant 0 : index
    %16 = vector.load %arg6[%c0_12, %c0_13] : memref<512x3072xbf16, #tpu.memory_space<vmem>>, vector<512x3072xbf16>
    %cst_14 = arith.constant dense<0.000000e+00> : vector<8x3072xf32>
    %17 = tpu.matmul %15, %16, %cst_14 {dimension_numbers = #tpu.dot_dimension_numbers<[1], [0], [0], [1], [0, 0, 1, 1], [], []>} : vector<8x512xbf16>, vector<512x3072xbf16>, vector<8x3072xf32> -> vector<8x3072xf32>
    %c0_15 = arith.constant 0 : index
    %c0_16 = arith.constant 0 : index
    %18 = vector.load %arg7[%c0_15, %c0_16] : memref<1x3072xf32, #tpu.memory_space<vmem>>, vector<1x3072xf32>
    %19 = vector.broadcast %18 : vector<1x3072xf32> to vector<8x3072xf32>
    %20 = arith.addf %17, %19 : vector<8x3072xf32>
    %21 = math.tanh %20 : vector<8x3072xf32>
    %c0_17 = arith.constant 0 : index
    %c0_18 = arith.constant 0 : index
    %22 = vector.load %arg8[%c0_17, %c0_18] : memref<8x3072xf32, #tpu.memory_space<vmem>>, vector<8x3072xf32>
    tpu.vector_store %arg8[%c0_17, %c0_18], %21 {strides = array<i32>} : memref<8x3072xf32, #tpu.memory_space<vmem>>, vector<8x3072xf32>,
    return
  }
  func.func @transform_0(%arg0: i32) -> (i32, i32) {
    %c0_i32 = arith.constant 0 : i32
    %c0_i32_0 = arith.constant 0 : i32
    %c0_i32_1 = arith.constant 0 : i32
    return %c0_i32, %c0_i32_0 : i32, i32
  }
  func.func @transform_1(%arg0: i32) -> (i32, i32) {
    %c0_i32 = arith.constant 0 : i32
    %c0_i32_0 = arith.constant 0 : i32
    %c0_i32_1 = arith.constant 0 : i32
    return %c0_i32, %c0_i32_0 : i32, i32
  }
  func.func @transform_2(%arg0: i32) -> (i32, i32) {
    %c0_i32 = arith.constant 0 : i32
    %c0_i32_0 = arith.constant 0 : i32
    %c0_i32_1 = arith.constant 0 : i32
    return %c0_i32, %c0_i32_0 : i32, i32
  }
  func.func @transform_3(%arg0: i32) -> (i32, i32) {
    %c0_i32 = arith.constant 0 : i32
    %c0_i32_0 = arith.constant 0 : i32
    %c0_i32_1 = arith.constant 0 : i32
    return %c0_i32, %c0_i32_0 : i32, i32
  }
  func.func @transform_4(%arg0: i32) -> (i32, i32) {
    %c0_i32 = arith.constant 0 : i32
    %c0_i32_0 = arith.constant 0 : i32
    %c0_i32_1 = arith.constant 0 : i32
    return %c0_i32, %c0_i32_0 : i32, i32
  }
  func.func @transform_5(%arg0: i32) -> (i32, i32) {
    %c0_i32 = arith.constant 0 : i32
    %c0_i32_0 = arith.constant 0 : i32
    return %c0_i32, %arg0 : i32, i32
  }
  func.func @transform_6(%arg0: i32) -> (i32, i32) {
    %c0_i32 = arith.constant 0 : i32
    %c0_i32_0 = arith.constant 0 : i32
    return %c0_i32, %arg0 : i32, i32
  }
  func.func @transform_7(%arg0: i32) -> (i32, i32) {
    %c0_i32 = arith.constant 0 : i32
    %c0_i32_0 = arith.constant 0 : i32
    return %c0_i32, %arg0 : i32, i32
  }
}

</mosaic_0001>

<bundles_post_ra>
// kernel: generator_forward.1
= control target key start
LH: loop header
LB: loop body
LE: loop exit
PB: predicated region body
PF: predicated region fallthrough
CT: control target
= control target key end

     0   :  { %s9350_s0 = inlined_call_operand.vmem [shape: f32[8,128], index: 0, kind: input, shape index: {}]   ;;  %s9351_s1 = inlined_call_operand.hbm [shape: f32[128,256], index: 1, kind: input, shape index: {}]   ;;  %s9352_s2 = inlined_call_operand.hbm [shape: f32[1,256], index: 2, kind: input, shape index: {}]   ;;  %s9353_s3 = inlined_call_operand.hbm [shape: f32[256,512], index: 3, kind: input, shape index: {}]   ;;  %s9354_s4 = inlined_call_operand.hbm [shape: f32[1,512], index: 4, kind: input, shape index: {}]   ;;  %s9355_s5 = inlined_call_operand.hbm [shape: bf16[512,12288], index: 5, kind: input, shape index: {}]   ;;  %s9356_s6 = inlined_call_operand.hbm [shape: f32[1,12288], index: 6, kind: input, shape index: {}]   ;;  %s9357_s7 = inlined_call_operand.vmem [shape: f32[8,12288], index: 7, kind: output, shape index: {}]  }
   0x1   :  { %9369 = sst [smem:[#allocation17_spill]] %s9351_s1 }
   0x2   :  { %9370 = sst [smem:[#allocation18_spill]] %s9352_s2 }
   0x3   :  { %9371 = sst [smem:[#allocation19_spill]] %s9355_s5 }
   0x4   :  { %12 = vsyncpa [#allocation3], 0 }
   0x5   :  { %13 = vsyncpa [#allocation5], 0 }
   0x6   :  { %14 = vsyncpa [#allocation8], 0  ;;  %s8137_s24 = smov 0   ;;  %s8139_s25 = smov 0  }
   0x7   :  { %s8141_s26 = smov 0   ;;  %s8143_s27 = smov 0  }
   0x8 LB: > { %s8156_s28 = sadd.s32 4294967295, %s8081_s27   ;;  %s8159_s29 = sadd.s32 1, %s8081_s27   ;;  %s8081_s27 = sphi %s8143_s27, %s9399_s27   ;;  %s8077_s26 = sphi %s8141_s26, %s9403_s26   ;;  %s8073_s25 = sphi %s8139_s25, %s9402_s25   ;;  %s8069_s24 = sphi %s8137_s24, %s9401_s24  }
   0x9   : > { %9372 = sst [smem:[#allocation15_spill]] %s8159_s29  ;;  %s129_s30 = ssub.s32 %s8081_s27, %s8159_s29 }
   0xa   : > { %s132_s8 = sadd.s32 1, %s8077_s26  ;;  %p130_p0 = scmp.eq.s32.totalorder %s129_s30, 0 }
   0xb   : > { %p139_p1 = scmp.ne.s32.totalorder %s8077_s26, %s8073_s25  ;;  %p140_p2 = scmp.eq.s32.totalorder %s8081_s27, 0 }
   0xc   : > { %p145_p3 = scmp.ne.s32.totalorder %s8073_s25, %s8069_s24  ;;  %p9358_p5 = scmp.eq.s32.totalorder %s8156_s28, 0 }
   0xd   : > { %s8169_s9 = scalar_select %p130_p0, %s8077_s26, %s132_s8  }
   0xe   : > { %p8171_p4 = por %p140_p2, %p139_p1  ;;  %p6700_p6 = scmp.ge.s32.totalorder %s8081_s27, 1 }
   0xf   : > { %9373 = sst [smem:[#allocation16_spill]] %s8169_s9  ;;  %p208_p7 = scmp.lt.s32.totalorder %s8081_s27, 5 }
  0x10   : > { %p8180_p8 = por %p9358_p5, %p145_p3  ;;  %s8083_s13 = smov [#allocation2]  }
  0x11   : > { %p8184_p9 = pnand %p6700_p6, %p208_p7  ;;  %s223_s14 = sshll.u32 %s8083_s13, 4  ;;  %s224_s14 = int_to_ptr.vmem [resolvable:$true] %s223_s14 }
  0x12   : > { %s9375_s11 = scalar_select %p8180_p8, 1, 0 }
  0x13   : > { %s9376_s12 = scalar_select %p8184_p9, 1, 0 }
  0x14   : > { %p7742_p10 = pneg %p8184_p9  ;;  %p7766_p12 = scmp.lt.s32.totalorder %s8081_s27, 4 }
  0x15   : > { %s9379_s1 = sld [smem:[#allocation17_spill]] }
  0x16   : > { %p8192_p11 = pnand %p7742_p10, %p9358_p5  ;;  %p8200_p13 = pnand %p7766_p12, %p8171_p4 }
  0x18   : > { %s9377_s15 = scalar_select %p8192_p11, 1, 0 }
  0x19   : > { %s9378_s17 = scalar_select %p8200_p13, 1, 0 }
  0x1a   : > { %p8212_p1 = pneg %p8192_p11 }
  0x1b   : > { %s7863_s20 = scalar_lea.hbm %s9379_s1, 4096 }
  0x1c   : > { %p7864_p0 = scmp.ne.s32.totalorder %s9379_s1, %s7863_s20  ;;  %p7870_p4 = scmp.lt.u32.totalorder %s7863_s20, %s9379_s1 }
  0x1e   : > { %p7866_p2 = pnand %p8212_p1, %p7864_p0 }
  0x20   : > { %p7867_p3 = pneg %p7866_p2 }
  0x22   : > { %p7872_p6 = pnand %p7870_p4, %p7867_p3 }
  0x24   : > { %7875 = shalt.err (!%p7872_p6)
}
  0x25   : > { %s7876_s8 = scalar_lea.vmem %s224_s14, 4096  ;;  %p7884_p5 = scmp.lt.s32.totalorder %s224_s14, %s224_s14 }
  0x26   : > { %p7877_p7 = scmp.ne.s32.totalorder %s224_s14, %s7876_s8  ;;  %p7885_p8 = scmp.lt.s32.totalorder %s7876_s8, %s7876_s8 }
  0x28   : > { %p7879_p10 = pnand %p7877_p7, %p8212_p1  ;;  %p7886_p9 = por %p7885_p8, %p7884_p5 }
  0x2a   : > { %p7880_p12 = pneg %p7879_p10 }
  0x2c   : > { %p7887_p13 = pnand %p7886_p9, %p7880_p12 }
  0x2e   : > { %7890 = shalt.err (!%p7887_p13)
}
  0x2f   : > { %s8084_s10 = smov 256   ;;  %s8085_s13 = smov 16  }
  0x30   : > { %7745 = dma.hbm_to_vmem [thread:$0]  (!%p8192_p11), %s9379_s1, 4096, %s224_s14, [#allocation3], %s8084_s10, %s8084_s10, %s8085_s13  }
  0x31   : > { %s8086_s20 = smov [#allocation4]   ;;  %s9381_s2 = sld [smem:[#allocation18_spill]] }
  0x32   : > { %s237_s21 = sshll.u32 %s8086_s20, 4  ;;  %s238_s21 = int_to_ptr.vmem [resolvable:$true] %s237_s21 }
  0x37   : > { %s7891_s30 = scalar_lea.hbm %s9381_s2, 32 }
  0x38   : > { %p7892_p5 = scmp.ne.s32.totalorder %s9381_s2, %s7891_s30  ;;  %p7898_p13 = scmp.lt.u32.totalorder %s7891_s30, %s9381_s2 }
  0x3a   : > { %p7894_p8 = pnand %p7892_p5, %p8212_p1 }
  0x3c   : > { %p7895_p9 = pneg %p7894_p8 }
  0x3e   : > { %p7900_p0 = pnand %p7898_p13, %p7895_p9 }
  0x40   : > { %7903 = shalt.err (!%p7900_p0)
}
  0x41   : > { %s7904_s14 = scalar_lea.vmem %s238_s21, 32  ;;  %p7912_p6 = scmp.lt.s32.totalorder %s238_s21, %s238_s21 }
  0x42   : > { %p7905_p2 = scmp.ne.s32.totalorder %s238_s21, %s7904_s14  ;;  %p7913_p7 = scmp.lt.s32.totalorder %s7904_s14, %s7904_s14 }
  0x44   : > { %p7907_p3 = pnand %p7905_p2, %p8212_p1  ;;  %p7914_p10 = por %p7913_p7, %p7912_p6 }
  0x46   : > { %p7908_p4 = pneg %p7907_p3 }
  0x48   : > { %p7915_p12 = pnand %p7914_p10, %p7908_p4 }
  0x4a   : > { %7918 = shalt.err (!%p7915_p12)
}
  0x4b   : > { %7748 = dma.hbm_to_vmem [thread:$0]  (!%p8192_p11), %s9381_s2, 32, %s238_s21, [#allocation5]  }
  0x4c   : > { %s9366_s29 = sand.u32 1, %s8077_s26   ;;  %s7484_s9 = smul.u32 1536, %s8081_s27 }
  0x4d   : > { %s7718_s13 = smul.u32 6144, %s9366_s29  ;;  %s9382_s5 = sld [smem:[#allocation19_spill]] }
  0x4e   : > { %s8087_s30 = smov [#allocation6]   ;;  %s9383_s21 = sand.u32 1, %s8081_s27  }
  0x4f   : > { %s276_s22 = scalar_lea.vmem [#allocation9], %s7718_s13  ;;  %s8257_s8 = sshll.u32 %s8087_s30, 4  ;;  %s248_s8 = int_to_ptr.vmem [resolvable:$true] %s8257_s8 }
  0x50   : > { %s283_s24 = sshll.u32 %s276_s22, 4  ;;  %s8261_s14 = scalar_lea.sflag [#allocation3], %s9383_s21  ;;  %s8255_s24 = int_to_ptr.vmem [resolvable:$true] %s283_s24 }
  0x51   : > { %p9384_p8 = scmp.ne.s32.totalorder %s9378_s17, 0 }
  0x53   : > { %s8253_s20 = scalar_lea.hbm %s9382_s5, %s7484_s9  ;;  %p9367_p9 = pneg %p9384_p8 }
  0x54   : > { %s7919_s16 = scalar_lea.hbm %s8253_s20, 98304  ;;  %s7924_s13 = scalar_lea.hbm %s9382_s5, 393216 }
  0x55   : > { %p7920_p5 = scmp.ne.s32.totalorder %s8253_s20, %s7919_s16  ;;  %p7925_p2 = scmp.lt.u32.totalorder %s8253_s20, %s9382_s5 }
  0x56   : > { %p7926_p3 = scmp.lt.u32.totalorder %s7924_s13, %s7919_s16  ;;  %p7928_p6 = scmp.lt.u32.totalorder %s7919_s16, %s8253_s20 }
  0x57   : > { %p7922_p13 = pnand %p9367_p9, %p7920_p5 }
  0x58   : > { %p7927_p4 = por %p7926_p3, %p7925_p2 }
  0x59   : > { %p7923_p0 = pneg %p7922_p13 }
  0x5a   : > { %p7929_p7 = por %p7928_p6, %p7927_p4 }
  0x5c   : > { %p7930_p10 = pnand %p7929_p7, %p7923_p0 }
  0x5e   : > { %7933 = shalt.err (!%p7930_p10)
}
  0x5f   : > { %s7934_s22 = scalar_lea.vmem %s8255_s24, 98304  ;;  %s8088_s30 = smov [#allocation9]  }
  0x60   : > { %p7935_p12 = scmp.ne.s32.totalorder %s8255_s24, %s7934_s22  ;;  %s7939_s21 = sshll.u32 %s8088_s30, 4  ;;  %s7940_s21 = int_to_ptr.vmem [resolvable:$false] %s7939_s21 }
  0x61   : > { %s7941_s10 = scalar_lea.vmem %s7940_s21, 196608  ;;  %p7942_p11 = scmp.lt.s32.totalorder %s8255_s24, %s7940_s21 }
  0x62   : > { %p7937_p5 = pnand %p7935_p12, %p9367_p9  ;;  %p7943_p2 = scmp.lt.s32.totalorder %s7941_s10, %s7934_s22 }
  0x64   : > { %p7938_p13 = pneg %p7937_p5  ;;  %p7944_p3 = por %p7943_p2, %p7942_p11 }
  0x66   : > { %p7945_p4 = pnand %p7944_p3, %p7938_p13 }
  0x68   : > { %7948 = shalt.err (!%p7945_p4)
}
  0x69   : > { %s8089_s16 = smov 6144   ;;  %s8090_s9 = smov 1536  }
  0x6a   : > { %s8091_s13 = smov 96   ;;  %s7949_s30 = scalar_lea.hbm %s9353_s3, 16384 }
  0x6b   : > { %7758 = dma.hbm_to_vmem [thread:$0]  (!%p9384_p8), %s8253_s20, 98304, %s8255_s24, %s8261_s14, %s8089_s16, %s8090_s9, %s8091_s13  }
  0x6c   : > { %p7950_p11 = scmp.ne.s32.totalorder %s9353_s3, %s7949_s30  ;;  %p7956_p7 = scmp.lt.u32.totalorder %s7949_s30, %s9353_s3 }
  0x6e   : > { %p7952_p0 = pnand %p7950_p11, %p8212_p1 }
  0x70   : > { %p7953_p6 = pneg %p7952_p0 }
  0x72   : > { %p7958_p10 = pnand %p7956_p7, %p7953_p6 }
  0x74   : > { %7961 = shalt.err (!%p7958_p10)
}
  0x75   : > { %s7962_s1 = scalar_lea.vmem %s248_s8, 16384  ;;  %p7970_p2 = scmp.lt.s32.totalorder %s248_s8, %s248_s8 }
  0x76   : > { %p7963_p12 = scmp.ne.s32.totalorder %s248_s8, %s7962_s1  ;;  %p7971_p3 = scmp.lt.s32.totalorder %s7962_s1, %s7962_s1 }
  0x78   : > { %p7965_p5 = pnand %p7963_p12, %p8212_p1  ;;  %p7972_p4 = por %p7971_p3, %p7970_p2 }
  0x7a   : > { %p7966_p13 = pneg %p7965_p5 }
  0x7c   : > { %p7973_p9 = pnand %p7972_p4, %p7966_p13 }
  0x7e   : > { %7976 = shalt.err (!%p7973_p9)
}
  0x7f   : > { %s8092_s20 = smov 512   ;;  %s8093_s29 = smov 32  }
  0x80   : > { %p9385_p11 = scmp.ne.s32.totalorder %s9377_s15, 0  ;;  %s8094_s9 = smov [#allocation7]  }
  0x81   : > { %s261_s13 = sshll.u32 %s8094_s9, 4  ;;  %s9386_s18 = sand.u32 1, %s8077_s26   ;;  %s262_s13 = int_to_ptr.vmem [resolvable:$true] %s261_s13 }
  0x82   : > { %7751 = dma.hbm_to_vmem [thread:$0]  (!%p9385_p11), %s9353_s3, 16384, %s248_s8, [#allocation5], %s8092_s20, %s8092_s20, %s8093_s29  }
  0x83   : > { %s7719_s19 = smul.u32 24, %s9386_s18  ;;  %s7977_s21 = scalar_lea.hbm %s9354_s4, 64 }
  0x84   : > { %s7485_s1 = smul.u32 384, %s8081_s27  ;;  %p7978_p9 = scmp.ne.s32.totalorder %s9354_s4, %s7977_s21 }
  0x85   : > { %p7984_p7 = scmp.lt.u32.totalorder %s7977_s21, %s9354_s4 }
  0x86   : > { %p7980_p0 = pnand %p7978_p9, %p8212_p1 }
  0x88   : > { %p7981_p6 = pneg %p7980_p0 }
  0x8a   : > { %p7986_p10 = pnand %p7984_p7, %p7981_p6 }
  0x8c   : > { %7989 = shalt.err (!%p7986_p10)
}
  0x8d   : > { %s7990_s8 = scalar_lea.vmem %s262_s13, 64  ;;  %p7998_p2 = scmp.lt.s32.totalorder %s262_s13, %s262_s13 }
  0x8e   : > { %p7991_p12 = scmp.ne.s32.totalorder %s262_s13, %s7990_s8  ;;  %p7999_p3 = scmp.lt.s32.totalorder %s7990_s8, %s7990_s8 }
  0x90   : > { %p7993_p5 = pnand %p7991_p12, %p8212_p1  ;;  %p8000_p4 = por %p7999_p3, %p7998_p2 }
  0x92   : > { %p7994_p13 = pneg %p7993_p5 }
  0x94   : > { %p8001_p8 = pnand %p8000_p4, %p7994_p13 }
  0x96   : > { %8004 = shalt.err (!%p8001_p8)
}
  0x97   : > { %7754 = dma.hbm_to_vmem [thread:$0]  (!%p9385_p11), %s9354_s4, 64, %s262_s13, [#allocation8]  }
  0x98   : > { %s8332_s29 = scalar_lea.hbm %s9356_s6, %s7485_s1  ;;  %s297_s23 = scalar_lea.vmem [#allocation10], %s7719_s19 }
  0x99   : > { %s305_s16 = sshll.u32 %s297_s23, 4  ;;  %s8005_s9 = scalar_lea.hbm %s8332_s29, 384  ;;  %s306_s16 = int_to_ptr.vmem [resolvable:$true] %s305_s16 }
  0x9a   : > { %p8006_p1 = scmp.ne.s32.totalorder %s8332_s29, %s8005_s9  ;;  %p9387_p8 = scmp.ne.s32.totalorder %s9378_s17, 0 }
  0x9b   : > { %s8010_s18 = scalar_lea.hbm %s9356_s6, 1536  ;;  %p8011_p11 = scmp.lt.u32.totalorder %s8332_s29, %s9356_s6 }
  0x9c   : > { %p9388_p9 = pneg %p9387_p8  ;;  %p8012_p7 = scmp.lt.u32.totalorder %s8010_s18, %s8005_s9 }
  0x9d   : > { %p8014_p12 = scmp.lt.u32.totalorder %s8005_s9, %s8332_s29 }
  0x9e   : > { %p8008_p0 = pnand %p8006_p1, %p9388_p9  ;;  %p8013_p10 = por %p8012_p7, %p8011_p11 }
  0xa0   : > { %p8009_p6 = pneg %p8008_p0  ;;  %p8015_p5 = por %p8014_p12, %p8013_p10 }
  0xa2   : > { %p8016_p13 = pnand %p8015_p5, %p8009_p6 }
  0xa4   : > { %8019 = shalt.err (!%p8016_p13)
}
  0xa5   : > { %s8020_s19 = scalar_lea.vmem %s306_s16, 384  ;;  %p9389_p3 = pmov %p9388_p9 }
  0xa6   : > { %p8021_p2 = scmp.ne.s32.totalorder %s306_s16, %s8020_s19  ;;  %s8095_s22 = smov [#allocation10]  }
  0xa7   : > { %s8025_s21 = sshll.u32 %s8095_s22, 4  ;;  %s8026_s21 = int_to_ptr.vmem [resolvable:$false] %s8025_s21 }
  0xa8   : > { %p8023_p4 = pnand %p8021_p2, %p9389_p3  ;;  %s8027_s10 = scalar_lea.vmem %s8026_s21, 768 }
  0xa9   : > { %p8028_p9 = scmp.lt.s32.totalorder %s306_s16, %s8026_s21  ;;  %p8029_p0 = scmp.lt.s32.totalorder %s8027_s10, %s8020_s19 }
  0xaa   : > { %p8024_p1 = pneg %p8023_p4 }
  0xab   : > { %p8030_p7 = por %p8029_p0, %p8028_p9 }
  0xad   : > { %p8031_p11 = pnand %p8030_p7, %p8024_p1 }
  0xaf   : > { %8034 = shalt.err (!%p8031_p11)
}
  0xb0   : > { %7761 = dma.hbm_to_vmem [thread:$0]  (!%p9387_p8), %s8332_s29, 384, %s306_s16, %s8261_s14  }
  0xb1   : > { %p9390_p6 = scmp.ne.s32.totalorder %s9376_s12, 0 }
  0xb2   : > { %p9391_p10 = scmp.eq.s32.totalorder (!%p9390_p6), %s8156_s28, 0 }
  0xb3   : > { %314 = sbr.rel (%p9390_p6) target bundleno = 1604 (0x644), region = 48 }
  0xba   : > { %8052 = dma.done.wait (%p9391_p10), [#allocation3], 4096   ;;  %p9392_p12 = pmov %p9391_p10 }
  0xbb   : > { %p9393_p5 = pmov %p9391_p10 }
  0xbc   : > { %8054 = vsyncadd (%p9392_p12), [#allocation3], 4294963200 }
  0xbd   : > { %8056 = dma.done.wait (%p9393_p5), [#allocation5], 16416   ;;  %p9394_p13 = pmov %p9393_p5 }
  0xbe   : > { %p9395_p2 = pmov %p9393_p5 }
  0xbf   : > { %8058 = vsyncadd (%p9394_p13), [#allocation5], 4294950880 }
  0xc0   : > { %8060 = dma.done.wait (%p9395_p2), [#allocation8], 64   ;;  %p9396_p8 = pmov %p9395_p2 }
  0xc1   : > { %s332_s12 = sand.u32 1, %s8156_s28   ;;  %s334_s17 = sand.u32 1, %s8073_s25  }
  0xc2   : > { %8062 = vsyncadd (%p9396_p8), [#allocation8], 4294967232  ;;  %s7720_s14 = smul.u32 6144, %s334_s17  ;;  %s333_s24 = scalar_lea.sflag [#allocation3], %s332_s12 }
  0xc3   : > { %p9397_p3 = scmp.ne.s32.totalorder %s9375_s11, 0 }
  0xc4   : > { %s8372_s8 = scalar_lea.vmem [#allocation9], %s7720_s14 }
  0xc5   : > { %8064 = dma.done.wait (%p9397_p3), %s333_s24, 98688  }
  0xc6   : > { %8066 = vsyncadd (%p9397_p3), %s333_s24, 4294868608  ;;  %v8096_v0 = vmov 0.0   ;;  %v391_v1 = vld [vmem:[#allocation2 + $0x8] sm:$0xff]  ;;  %v393_v2 = vld [vmem:[#allocation2 + $0x18] sm:$0xff]  ;;  %s7721_s27 = smul.u32 24, %s334_s17 }
  0xc7   : > { %498 = vmatprep.mubr.f32.mxu0 %v8096_v0  ;;  %v390_v3 = vld [vmem:[#allocation2] sm:$0xff]  ;;  %v7486_v4 = vpack.c.bf16 %v393_v2, %v391_v1  ;;  %v392_v5 = vld [vmem:[#allocation2 + $0x10] sm:$0xff]  ;;  %v395_v6 = vld [vmem:[#allocation2 + $0x28] sm:$0xff]  ;;  %s383_s20 = smul.u32 24, %s8156_s28 }
  0xc8   : > { %v397_v7 = vld [vmem:[#allocation2 + $0x38] sm:$0xff]  ;;  %v7488_v8 = vpack.c.bf16 %v392_v5, %v390_v3  ;;  %v394_v10 = vld [vmem:[#allocation2 + $0x20] sm:$0xff]  ;;  %v396_v11 = vld [vmem:[#allocation2 + $0x30] sm:$0xff]  ;;  %s8786_s5 = scalar_lea.vmem [#allocation10], %s7721_s27 }
  0xc9   : > { %v7490_v9 = vpack.c.bf16 %v397_v7, %v395_v6  ;;  %v399_v12 = vld [vmem:[#allocation2 + $0x48] sm:$0xff]  ;;  %7487 = vmatprep.subr.bf16.mxu0 %v7486_v4  ;;  %v401_v13 = vld [vmem:[#allocation2 + $0x58] sm:$0xff]  ;;  %v7492_v14 = vpack.c.bf16 %v396_v11, %v394_v10  ;;  %v398_v16 = vld [vmem:[#allocation2 + $0x40] sm:$0xff]  ;;  %p8806_p4 = scmp.lt.s32.totalorder %s383_s20, 95 }
  0xca   : > { %7489 = vmatpush1.bf16.msra.mxu0 %v7488_v8  ;;  %v7494_v15 = vpack.c.bf16 %v401_v13, %v399_v12  ;;  %v400_v17 = vld [vmem:[#allocation2 + $0x50] sm:$0xff]  ;;  %v403_v18 = vld [vmem:[#allocation2 + $0x68] sm:$0xff]  ;;  %v405_v19 = vld [vmem:[#allocation2 + $0x78] sm:$0xff] }
  0xcb   : > { %7491 = vmatprep.subr.bf16.mxu0 %v7490_v9  ;;  %v7496_v20 = vpack.c.bf16 %v400_v17, %v398_v16  ;;  %v7498_v21 = vpack.c.bf16 %v405_v19, %v403_v18  ;;  %v402_v22 = vld [vmem:[#allocation2 + $0x60] sm:$0xff]  ;;  %v404_v23 = vld [vmem:[#allocation2 + $0x70] sm:$0xff]  ;;  %v407_v24 = vld [vmem:[#allocation2 + $0x88] sm:$0xff]  ;;  %s9405_s20 = smov (!%p8806_p4, %s383_s20), 95 }
  0xcc   : > { %v409_v25 = vld [vmem:[#allocation2 + $0x98] sm:$0xff]  ;;  %v508_v26 = vld [vmem:[#allocation6 + $0x8] sm:$0xff]  ;;  %v7500_v28 = vpack.c.bf16 %v404_v23, %v402_v22  ;;  %v507_v30 = vld [vmem:[#allocation6] sm:$0xff]  ;;  %s6713_s28 = sshll.u32 %s9405_s20, 3 }
  0xcd   : > { %v512_v27 = vld [vmem:[#allocation6 + $0x28] sm:$0xff]  ;;  %v511_v31 = vld [vmem:[#allocation6 + $0x20] sm:$0xff]  ;;  %v7502_v32 = vpack.c.bf16 %v409_v25, %v407_v24  ;;  %v413_v38 = vld [vmem:[#allocation2 + $0xb8] sm:$0xff]  ;;  %s8829_s9 = scalar_lea.vmem %s9357_s7, %s6713_s28 }
  0xce   : > { %7493 = vmatpush1.bf16.msra.mxu0 %v7492_v14  ;;  %v7518_v29 = vpack.c.bf16 %v512_v27, %v508_v26  ;;  %v406_v33 = vld [vmem:[#allocation2 + $0x80] sm:$0xff]  ;;  %v408_v34 = vld [vmem:[#allocation2 + $0x90] sm:$0xff]  ;;  %v7520_v35 = vpack.c.bf16 %v511_v31, %v507_v30  ;;  %v411_v37 = vld [vmem:[#allocation2 + $0xa8] sm:$0xff] }
  0xcf   : > { %7495 = vmatprep.subr.bf16.mxu0 %v7494_v15  ;;  %v516_v36 = vld [vmem:[#allocation6 + $0x48] sm:$0xff]  ;;  %v515_v41 = vld [vmem:[#allocation6 + $0x40] sm:$0xff]  ;;  %v7504_v43 = vpack.c.bf16 %v408_v34, %v406_v33  ;;  %v7506_v47 = vpack.c.bf16 %v413_v38, %v411_v37  ;;  %v417_v53 = vld [vmem:[#allocation2 + $0xd8] sm:$0xff] }
  0xd0   : > { %7519 = vmatprep.subr.bf16.mxu1 %v7518_v29  ;;  %v520_v39 = vld [vmem:[#allocation6 + $0x68] sm:$0xff]  ;;  %v519_v42 = vld [vmem:[#allocation6 + $0x60] sm:$0xff]  ;;  %v421_v3 = vld [vmem:[#allocation2 + $0xf8] sm:$0xff] }
  0xd1   : > { %7521 = vmatpush1.bf16.msra.mxu1 %v7520_v35  ;;  %v7522_v40 = vpack.c.bf16 %v520_v39, %v516_v36  ;;  %v7524_v44 = vpack.c.bf16 %v519_v42, %v515_v41  ;;  %v524_v45 = vld [vmem:[#allocation6 + $0x88] sm:$0xff]  ;;  %v410_v48 = vld [vmem:[#allocation2 + $0xa0] sm:$0xff]  ;;  %v509_v19 = vld [vmem:[#allocation6 + $0x10] sm:$0xff] }
  0xd2   : > { %7497 = vmatpush1.bf16.msra.mxu0 %v7496_v20  ;;  %v528_v46 = vld [vmem:[#allocation6 + $0xa8] sm:$0xff]  ;;  %v523_v51 = vld [vmem:[#allocation6 + $0x80] sm:$0xff]  ;;  %v510_v15 = vld [vmem:[#allocation6 + $0x18] sm:$0xff] }
  0xd3   : > { %7499 = vmatprep.subr.bf16.mxu0 %v7498_v21  ;;  %v412_v49 = vld [vmem:[#allocation2 + $0xb0] sm:$0xff]  ;;  %7523 = vmatprep.subr.bf16.mxu1 %v7522_v40  ;;  %v7526_v50 = vpack.c.bf16 %v528_v46, %v524_v45  ;;  %v415_v52 = vld [vmem:[#allocation2 + $0xc8] sm:$0xff]  ;;  %v414_v63 = vld [vmem:[#allocation2 + $0xc0] sm:$0xff] }
  0xd4   : > { %v527_v54 = vld [vmem:[#allocation6 + $0xa0] sm:$0xff]  ;;  %v532_v56 = vld [vmem:[#allocation6 + $0xc8] sm:$0xff]  ;;  %v7508_v58 = vpack.c.bf16 %v412_v49, %v410_v48  ;;  %v7510_v62 = vpack.c.bf16 %v417_v53, %v415_v52  ;;  %v514_v16 = vld [vmem:[#allocation6 + $0x38] sm:$0xff] }
  0xd5   : > { %7525 = vmatpush1.bf16.msra.mxu1 %v7524_v44  ;;  %v7528_v55 = vpack.c.bf16 %v527_v54, %v523_v51  ;;  %v536_v57 = vld [vmem:[#allocation6 + $0xe8] sm:$0xff]  ;;  %v531_v60 = vld [vmem:[#allocation6 + $0xc0] sm:$0xff]  ;;  %v7582_v23 = vpack.c.bf16 %v514_v16, %v510_v15  ;;  %v513_v24 = vld [vmem:[#allocation6 + $0x30] sm:$0xff] }
  0xd6   : > { %7501 = vmatpush1.bf16.msra.mxu0 %v7500_v28  ;;  %7527 = vmatprep.subr.bf16.mxu1 %v7526_v50  ;;  %v7530_v59 = vpack.c.bf16 %v536_v57, %v532_v56  ;;  %v535_v61 = vld [vmem:[#allocation6 + $0xe0] sm:$0xff]  ;;  %v416_v0 = vld [vmem:[#allocation2 + $0xd0] sm:$0xff]  ;;  %v518_v27 = vld [vmem:[#allocation6 + $0x58] sm:$0xff]  ;;  %v7584_v31 = vpack.c.bf16 %v513_v24, %v509_v19 }
  0xd7   : > { %7503 = vmatprep.subr.bf16.mxu0 %v7502_v32  ;;  %v540_v1 = vld [vmem:[#allocation6 + $0x108] sm:$0xff]  ;;  %v7532_v5 = vpack.c.bf16 %v535_v61, %v531_v60  ;;  %v7512_v6 = vpack.c.bf16 %v416_v0, %v414_v63  ;;  %v418_v7 = vld [vmem:[#allocation2 + $0xe0] sm:$0xff]  ;;  %v517_v32 = vld [vmem:[#allocation6 + $0x50] sm:$0xff] }
  0xd8   : > { %v419_v2 = vld [vmem:[#allocation2 + $0xe8] sm:$0xff]  ;;  %v420_v12 = vld [vmem:[#allocation2 + $0xf0] sm:$0xff]  ;;  %v522_v28 = vld [vmem:[#allocation6 + $0x78] sm:$0xff] }
  0xd9   : > { %v544_v4 = vld [vmem:[#allocation6 + $0x128] sm:$0xff]  ;;  %7529 = vmatpush1.bf16.msra.mxu1 %v7528_v55  ;;  %v539_v9 = vld [vmem:[#allocation6 + $0x100] sm:$0xff]  ;;  %v7514_v11 = vpack.c.bf16 %v421_v3, %v419_v2  ;;  %v7516_v18 = vpack.c.bf16 %v420_v12, %v418_v7  ;;  %v7586_v36 = vpack.c.bf16 %v522_v28, %v518_v27  ;;  %v521_v37 = vld [vmem:[#allocation6 + $0x70] sm:$0xff] }
  0xda   : > { %7505 = vmatpush1.bf16.msra.mxu0 %v7504_v43  ;;  %7531 = vmatprep.subr.bf16.mxu1 %v7530_v59  ;;  %v7534_v8 = vpack.c.bf16 %v544_v4, %v540_v1  ;;  %v543_v10 = vld [vmem:[#allocation6 + $0x120] sm:$0xff]  ;;  %v548_v13 = vld [vmem:[#allocation6 + $0x148] sm:$0xff]  ;;  %v526_v40 = vld [vmem:[#allocation6 + $0x98] sm:$0xff]  ;;  %v7588_v43 = vpack.c.bf16 %v521_v37, %v517_v32 }
  0xdb   : > { %7507 = vmatprep.subr.bf16.mxu0 %v7506_v47  ;;  %v552_v14 = vld [vmem:[#allocation6 + $0x168] sm:$0xff]  ;;  %v7536_v17 = vpack.c.bf16 %v543_v10, %v539_v9  ;;  %v547_v21 = vld [vmem:[#allocation6 + $0x140] sm:$0xff]  ;;  %v530_v41 = vld [vmem:[#allocation6 + $0xb8] sm:$0xff] }
  0xdc   : > { %v7538_v20 = vpack.c.bf16 %v552_v14, %v548_v13  ;;  %v551_v22 = vld [vmem:[#allocation6 + $0x160] sm:$0xff]  ;;  %v556_v25 = vld [vmem:[#allocation6 + $0x188] sm:$0xff]  ;;  %v525_v44 = vld [vmem:[#allocation6 + $0x90] sm:$0xff]  ;;  %v7590_v48 = vpack.c.bf16 %v530_v41, %v526_v40 }
  0xdd   : > { %7533 = vmatpush1.bf16.msra.mxu1 %v7532_v5  ;;  %v560_v26 = vld [vmem:[#allocation6 + $0x1a8] sm:$0xff]  ;;  %v389_v29 = vld [vmem:[%s9350_s0] sm:$0xff]  ;;  %v7540_v30 = vpack.c.bf16 %v551_v22, %v547_v21  ;;  %v529_v49 = vld [vmem:[#allocation6 + $0xb0] sm:$0xff] }
  0xde   : > { %7509 = vmatpush1.bf16.msra.mxu0 %v7508_v58  ;;  %7535 = vmatprep.subr.bf16.mxu1 %v7534_v8  ;;  %v7542_v33 = vpack.c.bf16 %v560_v26, %v556_v25  ;;  %v555_v34 = vld [vmem:[#allocation6 + $0x180] sm:$0xff]  ;;  %v564_v38 = vld [vmem:[#allocation6 + $0x1c8] sm:$0xff]  ;;  %v534_v52 = vld [vmem:[#allocation6 + $0xd8] sm:$0xff]  ;;  %v7592_v55 = vpack.c.bf16 %v529_v49, %v525_v44 }
  0xdf   : > { %7511 = vmatprep.subr.bf16.mxu0 %v7510_v62  ;;  %v559_v35 = vld [vmem:[#allocation6 + $0x1a0] sm:$0xff]  ;;  %v568_v39 = vld [vmem:[#allocation6 + $0x1e8] sm:$0xff]  ;;  %v538_v53 = vld [vmem:[#allocation6 + $0xf8] sm:$0xff] }
  0xe0   : > { %v7544_v42 = vpack.c.bf16 %v559_v35, %v555_v34  ;;  %v7546_v45 = vpack.c.bf16 %v568_v39, %v564_v38  ;;  %v563_v46 = vld [vmem:[#allocation6 + $0x1c0] sm:$0xff]  ;;  %v572_v50 = vld [vmem:[#allocation6 + $0x208] sm:$0xff]  ;;  %v533_v56 = vld [vmem:[#allocation6 + $0xd0] sm:$0xff]  ;;  %v7594_v60 = vpack.c.bf16 %v538_v53, %v534_v52 }
  0xe1   : > { %7537 = vmatpush1.bf16.msra.mxu1 %v7536_v17  ;;  %v567_v47 = vld [vmem:[#allocation6 + $0x1e0] sm:$0xff]  ;;  %v576_v51 = vld [vmem:[#allocation6 + $0x228] sm:$0xff]  ;;  %v537_v61 = vld [vmem:[#allocation6 + $0xf0] sm:$0xff] }
  0xe2   : > { %7513 = vmatpush1.bf16.msra.mxu0 %v7512_v6  ;;  %7539 = vmatprep.subr.bf16.mxu1 %v7538_v20  ;;  %v7548_v54 = vpack.c.bf16 %v567_v47, %v563_v46  ;;  %v7550_v57 = vpack.c.bf16 %v576_v51, %v572_v50  ;;  %v571_v58 = vld [vmem:[#allocation6 + $0x200] sm:$0xff]  ;;  %v580_v62 = vld [vmem:[#allocation6 + $0x248] sm:$0xff]  ;;  %v542_v0 = vld [vmem:[#allocation6 + $0x118] sm:$0xff]  ;;  %v7596_v3 = vpack.c.bf16 %v537_v61, %v533_v56 }
  0xe3   : > { %7515 = vmatprep.subr.bf16.mxu0 %v7514_v11  ;;  %v575_v59 = vld [vmem:[#allocation6 + $0x220] sm:$0xff]  ;;  %v584_v63 = vld [vmem:[#allocation6 + $0x268] sm:$0xff]  ;;  %v546_v1 = vld [vmem:[#allocation6 + $0x138] sm:$0xff] }
  0xe4   : > { %v7552_v2 = vpack.c.bf16 %v575_v59, %v571_v58  ;;  %v541_v4 = vld [vmem:[#allocation6 + $0x110] sm:$0xff]  ;;  %v7554_v5 = vpack.c.bf16 %v584_v63, %v580_v62  ;;  %v579_v6 = vld [vmem:[#allocation6 + $0x240] sm:$0xff]  ;;  %v7598_v8 = vpack.c.bf16 %v546_v1, %v542_v0  ;;  %v588_v10 = vld [vmem:[#allocation6 + $0x288] sm:$0xff] }
  0xe5   : > { %7541 = vmatpush1.bf16.msra.mxu1 %v7540_v30  ;;  %v583_v7 = vld [vmem:[#allocation6 + $0x260] sm:$0xff]  ;;  %v545_v9 = vld [vmem:[#allocation6 + $0x130] sm:$0xff]  ;;  %v592_v11 = vld [vmem:[#allocation6 + $0x2a8] sm:$0xff] }
  0xe6   : > { %7517 = vmatpush1.bf16.msra.mxu0 %v7516_v18  ;;  %7543 = vmatprep.subr.bf16.mxu1 %v7542_v33  ;;  %v550_v12 = vld [vmem:[#allocation6 + $0x158] sm:$0xff]  ;;  %v7556_v14 = vpack.c.bf16 %v583_v7, %v579_v6  ;;  %v7600_v15 = vpack.c.bf16 %v545_v9, %v541_v4  ;;  %v549_v16 = vld [vmem:[#allocation6 + $0x150] sm:$0xff]  ;;  %v7558_v17 = vpack.c.bf16 %v592_v11, %v588_v10  ;;  %v587_v18 = vld [vmem:[#allocation6 + $0x280] sm:$0xff] }
  0xe7   : > { %7583 = vmatprep.subr.bf16.mxu0 %v7582_v23  ;;  %v554_v13 = vld [vmem:[#allocation6 + $0x178] sm:$0xff]  ;;  %v591_v19 = vld [vmem:[#allocation6 + $0x2a0] sm:$0xff]  ;;  %v553_v21 = vld [vmem:[#allocation6 + $0x170] sm:$0xff] }
  0xe8   : > { %v7602_v20 = vpack.c.bf16 %v554_v13, %v550_v12  ;;  %v596_v22 = vld [vmem:[#allocation6 + $0x2c8] sm:$0xff]  ;;  %v558_v24 = vld [vmem:[#allocation6 + $0x198] sm:$0xff]  ;;  %v7560_v26 = vpack.c.bf16 %v591_v19, %v587_v18  ;;  %v7604_v27 = vpack.c.bf16 %v553_v21, %v549_v16  ;;  %v557_v28 = vld [vmem:[#allocation6 + $0x190] sm:$0xff] }
  0xe9   : > { %499 = vmatmul.mubr.f32.vlgmr.msra.gmra.mrb[0].mxu0 %v389_v29  ;;  %7545 = vmatpush1.bf16.msra.mxu1 %v7544_v42  ;;  %v600_v23 = vld [vmem:[#allocation6 + $0x2e8] sm:$0xff]  ;;  %v562_v25 = vld [vmem:[#allocation6 + $0x1b8] sm:$0xff]  ;;  %v595_v30 = vld [vmem:[#allocation6 + $0x2c0] sm:$0xff] }
  0xea   : > { %7585 = vmatpush1.bf16.msra.mxu0 %v7584_v31  ;;  %7547 = vmatprep.subr.bf16.mxu1 %v7546_v45  ;;  %v7562_v29 = vpack.c.bf16 %v600_v23, %v596_v22  ;;  %v599_v31 = vld [vmem:[#allocation6 + $0x2e0] sm:$0xff]  ;;  %v7606_v32 = vpack.c.bf16 %v562_v25, %v558_v24  ;;  %v561_v33 = vld [vmem:[#allocation6 + $0x1b0] sm:$0xff]  ;;  %v604_v34 = vld [vmem:[#allocation6 + $0x308] sm:$0xff] }
  0xeb   : > { %7587 = vmatprep.subr.bf16.mxu0 %v7586_v36  ;;  %v608_v35 = vld [vmem:[#allocation6 + $0x328] sm:$0xff]  ;;  %v566_v36 = vld [vmem:[#allocation6 + $0x1d8] sm:$0xff]  ;;  %v7564_v38 = vpack.c.bf16 %v599_v31, %v595_v30  ;;  %v7608_v39 = vpack.c.bf16 %v561_v33, %v557_v28  ;;  %v565_v40 = vld [vmem:[#allocation6 + $0x1d0] sm:$0xff] }
  0xec   : > { %v570_v37 = vld [vmem:[#allocation6 + $0x1f8] sm:$0xff]  ;;  %v7566_v41 = vpack.c.bf16 %v608_v35, %v604_v34  ;;  %v603_v42 = vld [vmem:[#allocation6 + $0x300] sm:$0xff]  ;;  %v569_v45 = vld [vmem:[#allocation6 + $0x1f0] sm:$0xff] }
  0xed   : > { %7549 = vmatpush1.bf16.msra.mxu1 %v7548_v54  ;;  %v7610_v44 = vpack.c.bf16 %v570_v37, %v566_v36  ;;  %v612_v46 = vld [vmem:[#allocation6 + $0x348] sm:$0xff]  ;;  %v578_v49 = vld [vmem:[#allocation6 + $0x238] sm:$0xff]  ;;  %v7612_v51 = vpack.c.bf16 %v569_v45, %v565_v40  ;;  %v573_v52 = vld [vmem:[#allocation6 + $0x210] sm:$0xff] }
  0xee   : > { %7589 = vmatpush1.bf16.msra.mxu0 %v7588_v43  ;;  %7551 = vmatprep.subr.bf16.mxu1 %v7550_v57  ;;  %v607_v43 = vld [vmem:[#allocation6 + $0x320] sm:$0xff]  ;;  %v616_v47 = vld [vmem:[#allocation6 + $0x368] sm:$0xff]  ;;  %v577_v57 = vld [vmem:[#allocation6 + $0x230] sm:$0xff] }
  0xef   : > { %7591 = vmatprep.subr.bf16.mxu0 %v7590_v48  ;;  %v574_v48 = vld [vmem:[#allocation6 + $0x218] sm:$0xff]  ;;  %v7568_v50 = vpack.c.bf16 %v607_v43, %v603_v42  ;;  %v7570_v53 = vpack.c.bf16 %v616_v47, %v612_v46  ;;  %v611_v54 = vld [vmem:[#allocation6 + $0x340] sm:$0xff]  ;;  %v620_v58 = vld [vmem:[#allocation6 + $0x388] sm:$0xff]  ;;  %v7616_v63 = vpack.c.bf16 %v577_v57, %v573_v52 }
  0xf0   : > { %v7614_v56 = vpack.c.bf16 %v578_v49, %v574_v48  ;;  %v624_v59 = vld [vmem:[#allocation6 + $0x3a8] sm:$0xff]  ;;  %v586_v61 = vld [vmem:[#allocation6 + $0x278] sm:$0xff]  ;;  %v593_v9 = vld [vmem:[#allocation6 + $0x2b0] sm:$0xff] }
  0xf1   : > { %7553 = vmatpush1.bf16.msra.mxu1 %v7552_v2  ;;  %v7574_v0 = vpack.c.bf16 %v624_v59, %v620_v58  ;;  %v581_v2 = vld [vmem:[#allocation6 + $0x250] sm:$0xff]  ;;  %v590_v4 = vld [vmem:[#allocation6 + $0x298] sm:$0xff]  ;;  %v623_v33 = vld [vmem:[#allocation6 + $0x3a0] sm:$0xff]  ;;  %v424_v58 = vlaneseq }
  0xf2   : > { %7593 = vmatpush1.bf16.msra.mxu0 %v7592_v55  ;;  %7555 = vmatprep.subr.bf16.mxu1 %v7554_v5  ;;  %v615_v55 = vld [vmem:[#allocation6 + $0x360] sm:$0xff]  ;;  %v594_v5 = vld [vmem:[#allocation6 + $0x2b8] sm:$0xff]  ;;  %v609_v21 = vld [vmem:[#allocation6 + $0x330] sm:$0xff] }
  0xf3   : > { %7595 = vmatprep.subr.bf16.mxu0 %v7594_v60  ;;  %v582_v60 = vld [vmem:[#allocation6 + $0x258] sm:$0xff]  ;;  %v7572_v62 = vpack.c.bf16 %v615_v55, %v611_v54  ;;  %v7622_v7 = vpack.c.bf16 %v594_v5, %v590_v4  ;;  %v621_v34 = vld [vmem:[#allocation6 + $0x390] sm:$0xff]  ;;  %v627_v43 = vld [vmem:[#allocation6 + $0x3c0] sm:$0xff]  ;;  %v8385_v59 = vshrl.u32 %v424_v58, 7 }
  0xf4   : > { %v7618_v1 = vpack.c.bf16 %v586_v61, %v582_v60  ;;  %v598_v10 = vld [vmem:[#allocation6 + $0x2d8] sm:$0xff]  ;;  %v625_v36 = vld [vmem:[#allocation6 + $0x3b0] sm:$0xff]  ;;  %v831_v4 = vld [vmem:[%s8372_s8 + $0xc0] sm:$0xff] }
  0xf5   : > { %7557 = vmatpush1.bf16.msra.mxu1 %v7556_v14  ;;  %v602_v11 = vld [vmem:[#allocation6 + $0x2f8] sm:$0xff]  ;;  %v597_v14 = vld [vmem:[#allocation6 + $0x2d0] sm:$0xff]  ;;  %v7640_v37 = vpack.c.bf16 %v625_v36, %v621_v34  ;;  %v8388_v60 = vsub.s32 0, %v8385_v59 }
  0xf6   : > { %7597 = vmatpush1.bf16.msra.mxu0 %v7596_v3  ;;  %7559 = vmatprep.subr.bf16.mxu1 %v7558_v17  ;;  %v585_v3 = vld [vmem:[#allocation6 + $0x270] sm:$0xff]  ;;  %v7626_v13 = vpack.c.bf16 %v602_v11, %v598_v10  ;;  %v606_v16 = vld [vmem:[#allocation6 + $0x318] sm:$0xff] }
  0xf7   : > { %7599 = vmatprep.subr.bf16.mxu0 %v7598_v8  ;;  %v7620_v6 = vpack.c.bf16 %v585_v3, %v581_v2  ;;  %v589_v8 = vld [vmem:[#allocation6 + $0x290] sm:$0xff]  ;;  %v610_v17 = vld [vmem:[#allocation6 + $0x338] sm:$0xff] }
  0xf8   : > { %v7624_v12 = vpack.c.bf16 %v593_v9, %v589_v8  ;;  %v7630_v19 = vpack.c.bf16 %v610_v17, %v606_v16  ;;  %v614_v22 = vld [vmem:[#allocation6 + $0x358] sm:$0xff]  ;;  %v629_v47 = vld [vmem:[#allocation6 + $0x3d0] sm:$0xff] }
  0xf9   : > { %7561 = vmatpush1.bf16.msra.mxu1 %v7560_v26  ;;  %v618_v23 = vld [vmem:[#allocation6 + $0x378] sm:$0xff]  ;;  %v613_v26 = vld [vmem:[#allocation6 + $0x350] sm:$0xff] }
  0xfa   : > { %7601 = vmatpush1.bf16.msra.mxu0 %v7600_v15  ;;  %7563 = vmatprep.subr.bf16.mxu1 %v7562_v29  ;;  %v601_v15 = vld [vmem:[#allocation6 + $0x2f0] sm:$0xff]  ;;  %v7634_v25 = vpack.c.bf16 %v618_v23, %v614_v22  ;;  %v622_v28 = vld [vmem:[#allocation6 + $0x398] sm:$0xff]  ;;  %v891_v22 = vld [vmem:[%s8372_s8 + $0x2a0] sm:$0xff] }
  0xfb   : > { %7603 = vmatprep.subr.bf16.mxu0 %v7602_v20  ;;  %v7628_v18 = vpack.c.bf16 %v601_v15, %v597_v14  ;;  %v605_v20 = vld [vmem:[#allocation6 + $0x310] sm:$0xff]  ;;  %v626_v29 = vld [vmem:[#allocation6 + $0x3b8] sm:$0xff]  ;;  %v867_v14 = vld [vmem:[%s8372_s8 + $0x1e0] sm:$0xff] }
  0xfc   : > { %v7632_v24 = vpack.c.bf16 %v609_v21, %v605_v20  ;;  %v7638_v31 = vpack.c.bf16 %v626_v29, %v622_v28  ;;  %v630_v40 = vld [vmem:[#allocation6 + $0x3d8] sm:$0xff]  ;;  %v633_v48 = vld [vmem:[#allocation6 + $0x3f0] sm:$0xff]  ;;  %v879_v21 = vld [vmem:[%s8372_s8 + $0x240] sm:$0xff] }
  0xfd   : > { %7565 = vmatpush1.bf16.msra.mxu1 %v7564_v38  ;;  %v628_v38 = vld [vmem:[#allocation6 + $0x3c8] sm:$0xff]  ;;  %v634_v42 = vld [vmem:[#allocation6 + $0x3f8] sm:$0xff]  ;;  %v7644_v49 = vpack.c.bf16 %v633_v48, %v629_v47 }
  0xfe   : > { %7605 = vmatpush1.bf16.msra.mxu0 %v7604_v27  ;;  %7567 = vmatprep.subr.bf16.mxu1 %v7566_v41  ;;  %v617_v27 = vld [vmem:[#allocation6 + $0x370] sm:$0xff]  ;;  %v7642_v45 = vpack.c.bf16 %v634_v42, %v630_v40  ;;  %v422_v61 = vld [vmem:[#allocation4] sm:$0x3]  ;;  %v903_v29 = vld [vmem:[%s8372_s8 + $0x300] sm:$0xff] }
  0xff   : > { %7607 = vmatprep.subr.bf16.mxu0 %v7606_v32  ;;  %v7636_v30 = vpack.c.bf16 %v617_v27, %v613_v26  ;;  %v619_v32 = vld [vmem:[#allocation6 + $0x380] sm:$0xff]  ;;  %v808_v52 = vld [vmem:[%s8372_s8 + $0x8] sm:$0xff]  ;;  %v6787_v27 = vcombine.high %v879_v21, %v891_v22 }
 0x100   : > { %v7576_v35 = vpack.c.bf16 %v623_v33, %v619_v32  ;;  %v820_v55 = vld [vmem:[%s8372_s8 + $0x68] sm:$0xff]  ;;  %v6786_v33 = vcombine.low %v879_v21, %v891_v22 }
 0x101   : > { %7569 = vmatpush1.bf16.msra.mxu1 %v7568_v50  ;;  %v807_v50 = vld [vmem:[%s8372_s8] sm:$0xff]  ;;  %v6717_v57 = vcombine.high %v808_v52, %v820_v55  ;;  %v844_v8 = vld [vmem:[%s8372_s8 + $0x128] sm:$0xff] }
 0x102   : > { %7609 = vmatpush1.bf16.msra.mxu0 %v7608_v39  ;;  %7571 = vmatprep.subr.bf16.mxu1 %v7570_v53  ;;  %v632_v39 = vld [vmem:[#allocation6 + $0x3e8] sm:$0xff] }
 0x103   : > { %7611 = vmatprep.subr.bf16.mxu0 %v7610_v44  ;;  %v7578_v41 = vpack.c.bf16 %v632_v39, %v628_v38  ;;  %v631_v44 = vld [vmem:[#allocation6 + $0x3e0] sm:$0xff]  ;;  %v856_v15 = vld [vmem:[%s8372_s8 + $0x188] sm:$0xff] }
 0x104   : > { %v7580_v46 = vpack.c.bf16 %v631_v44, %v627_v43  ;;  %v868_v16 = vld [vmem:[%s8372_s8 + $0x1e8] sm:$0xff]  ;;  %v939_v38 = vld [vmem:[%s8372_s8 + $0x420] sm:$0xff] }
 0x105   : > { %7573 = vmatpush1.bf16.msra.mxu1 %v7572_v62  ;;  %v8391_v62 = vsub.s32 1, %v8385_v59  ;;  %v6765_v20 = vcombine.high %v856_v15, %v868_v16  ;;  %v880_v23 = vld [vmem:[%s8372_s8 + $0x248] sm:$0xff]  ;;  %v6764_v26 = vcombine.low %v856_v15, %v868_v16  ;;  %v1047_v16 = vld [vmem:[%s8372_s8 + $0x780] sm:$0xff] }
 0x106   : > { %7613 = vmatpush1.bf16.msra.mxu0 %v7612_v51  ;;  %7575 = vmatprep.subr.bf16.mxu1 %v7574_v0  ;;  %v819_v51 = vld [vmem:[%s8372_s8 + $0x60] sm:$0xff]  ;;  %v916_v32 = vld [vmem:[%s8372_s8 + $0x368] sm:$0xff] }
 0x107   : > { %7615 = vmatprep.subr.bf16.mxu0 %v7614_v56  ;;  %v6714_v53 = vcombine.low %v807_v50, %v819_v51  ;;  %v6715_v54 = vcombine.high %v807_v50, %v819_v51  ;;  %v6716_v56 = vcombine.low %v808_v52, %v820_v55  ;;  %v431_v0 = vrot.slane %v422_v61, %v8391_v62  ;;  %v928_v39 = vld [vmem:[%s8372_s8 + $0x3c8] sm:$0xff] }
 0x108   : > { %v940_v40 = vld [vmem:[%s8372_s8 + $0x428] sm:$0xff] }
 0x109   : > { %7577 = vmatpush1.bf16.msra.mxu1 %v7576_v35  ;;  %v6837_v44 = vcombine.high %v928_v39, %v940_v40  ;;  %v952_v47 = vld [vmem:[%s8372_s8 + $0x488] sm:$0xff]  ;;  %v6836_v50 = vcombine.low %v928_v39, %v940_v40  ;;  %v1119_v40 = vld [vmem:[%s8372_s8 + $0x9c0] sm:$0xff] }
 0x10a   : > { %7617 = vmatpush1.bf16.msra.mxu0 %v7616_v63  ;;  %7579 = vmatprep.subr.bf16.mxu1 %v7578_v41  ;;  %v427_v63 = vrot.slane %v422_v61, %v8388_v60  ;;  %v964_v48 = vld [vmem:[%s8372_s8 + $0x4e8] sm:$0xff] }
 0x10b   : > { %7619 = vmatprep.subr.bf16.mxu0 %v7618_v1  ;;  %v6861_v52 = vcombine.high %v952_v47, %v964_v48  ;;  %v976_v55 = vld [vmem:[%s8372_s8 + $0x548] sm:$0xff]  ;;  %v6860_v58 = vcombine.low %v952_v47, %v964_v48 }
 0x10d   : > { %7581 = vmatpush1.bf16.msra.mxu1 %v7580_v46  ;;  %v963_v46 = vld [vmem:[%s8372_s8 + $0x4e0] sm:$0xff] }
 0x10e   : > { %7621 = vmatpush1.bf16.msra.mxu0 %v7620_v6  ;;  %5541 = vmatprep.subr.bf16.mxu1 %v6715_v54  ;;  %v843_v6 = vld [vmem:[%s8372_s8 + $0x120] sm:$0xff] }
 0x10f   : > { %7623 = vmatprep.subr.bf16.mxu0 %v7622_v7  ;;  %v832_v7 = vld [vmem:[%s8372_s8 + $0xc8] sm:$0xff]  ;;  %v6739_v11 = vcombine.high %v831_v4, %v843_v6  ;;  %v6738_v17 = vcombine.low %v831_v4, %v843_v6  ;;  %v987_v54 = vld [vmem:[%s8372_s8 + $0x5a0] sm:$0xff] }
 0x112   : > { %7625 = vmatpush1.bf16.msra.mxu0 %v7624_v12  ;;  %v6741_v12 = vcombine.high %v832_v7, %v844_v8 }
 0x113   : > { %7627 = vmatprep.subr.bf16.mxu0 %v7626_v13  ;;  %v855_v13 = vld [vmem:[%s8372_s8 + $0x180] sm:$0xff] }
 0x116   : > { %7629 = vmatpush1.bf16.msra.mxu0 %v7628_v18  ;;  %v6740_v18 = vcombine.low %v832_v7, %v844_v8  ;;  %v1023_v8 = vld [vmem:[%s8372_s8 + $0x6c0] sm:$0xff] }
 0x117   : > { %7631 = vmatprep.subr.bf16.mxu0 %v7630_v19  ;;  %v6763_v19 = vcombine.high %v855_v13, %v867_v14 }
 0x11a   : > { %7633 = vmatpush1.bf16.msra.mxu0 %v7632_v24  ;;  %v892_v24 = vld [vmem:[%s8372_s8 + $0x2a8] sm:$0xff] }
 0x11b   : > { %7635 = vmatprep.subr.bf16.mxu0 %v7634_v25  ;;  %v6762_v25 = vcombine.low %v855_v13, %v867_v14  ;;  %v6789_v28 = vcombine.high %v880_v23, %v892_v24  ;;  %v6788_v34 = vcombine.low %v880_v23, %v892_v24  ;;  %v1071_v24 = vld [vmem:[%s8372_s8 + $0x840] sm:$0xff] }
 0x11e   : > { %7637 = vmatpush1.bf16.msra.mxu0 %v7636_v30  ;;  %v915_v30 = vld [vmem:[%s8372_s8 + $0x360] sm:$0xff] }
 0x11f   : > { %7639 = vmatprep.subr.bf16.mxu0 %v7638_v31  ;;  %v904_v31 = vld [vmem:[%s8372_s8 + $0x308] sm:$0xff]  ;;  %v6811_v35 = vcombine.high %v903_v29, %v915_v30  ;;  %v6810_v41 = vcombine.low %v903_v29, %v915_v30 }
 0x120   : > { %v6813_v36 = vcombine.high %v904_v31, %v916_v32  ;;  %v6812_v42 = vcombine.low %v904_v31, %v916_v32  ;;  %v1095_v32 = vld [vmem:[%s8372_s8 + $0x900] sm:$0xff] }
 0x122   : > { %7641 = vmatpush1.bf16.msra.mxu0 %v7640_v37  ;;  %v927_v37 = vld [vmem:[%s8372_s8 + $0x3c0] sm:$0xff] }
 0x123   : > { %7643 = vmatprep.subr.bf16.mxu0 %v7642_v45  ;;  %v6835_v43 = vcombine.high %v927_v37, %v939_v38  ;;  %v951_v45 = vld [vmem:[%s8372_s8 + $0x480] sm:$0xff] }
 0x124   : > { %v6859_v51 = vcombine.high %v951_v45, %v963_v46 }
 0x126   : > { %7645 = vmatpush1.bf16.msra.mxu0 %v7644_v49  ;;  %v6834_v49 = vcombine.low %v927_v37, %v939_v38 }
 0x127   : > { %5623 = vmatprep.subr.bf16.mxu0 %v6717_v57  ;;  %v6858_v57 = vcombine.low %v951_v45, %v963_v46 }
 0x1bc   : > { %v500_v1 = vpop.f32.mrb[0].mxu0 }
 0x1bd   : > { %v501_v2 = vadd.f32 %v500_v1, %v427_v63  ;;  %v502_v3 = vpop.f32.mrb[1].mxu0  ;;  %v1011_v1 = vld [vmem:[%s8372_s8 + $0x660] sm:$0xff] }
 0x1be   : > { %v503_v5 = vadd.f32 %v502_v3, %v431_v0  ;;  %v999_v0 = vld [vmem:[%s8372_s8 + $0x600] sm:$0xff]  ;;  %v1012_v3 = vld [vmem:[%s8372_s8 + $0x668] sm:$0xff] }
 0x1bf   : > { %v505_v10 = vmax.f32 %v501_v2, 0.0  ;;  %v1000_v2 = vld [vmem:[%s8372_s8 + $0x608] sm:$0xff]  ;;  %v6907_v6 = vcombine.high %v999_v0, %v1011_v1 }
 0x1c0   : > { %v506_v9 = vmax.f32 %v503_v5, 0.0  ;;  %v6909_v7 = vcombine.high %v1000_v2, %v1012_v3  ;;  %v6908_v13 = vcombine.low %v1000_v2, %v1012_v3 }
 0x1c2   : > { %721 = vmatprep.mubr.f32.mxu1 %v506_v9  ;;  %792 = vmatprep.mubr.f32.mxu0 %v506_v9  ;;  %v1035_v9 = vld [vmem:[%s8372_s8 + $0x720] sm:$0xff] }
 0x1c3   : > { %722 = vmatmul.mubr.f32.vlgmr.msra.gmra.mrb[0].mxu1 %v505_v10  ;;  %793 = vmatmul.mubr.f32.vlgmr.msra.gmra.mrb[2].mxu0 %v505_v10  ;;  %v1024_v10 = vld [vmem:[%s8372_s8 + $0x6c8] sm:$0xff]  ;;  %v6931_v14 = vcombine.high %v1023_v8, %v1035_v9 }
 0x1c4   : > { %5542 = vmatpush1.bf16.msra.mxu1 %v6714_v53  ;;  %5624 = vmatpush1.bf16.msra.mxu0 %v6716_v56  ;;  %v975_v53 = vld [vmem:[%s8372_s8 + $0x540] sm:$0xff]  ;;  %v988_v56 = vld [vmem:[%s8372_s8 + $0x5a8] sm:$0xff] }
 0x1c5   : > { %5543 = vmatprep.subr.bf16.mxu1 %v6739_v11  ;;  %5625 = vmatprep.subr.bf16.mxu0 %v6741_v12  ;;  %v6883_v61 = vcombine.high %v975_v53, %v987_v54  ;;  %v6885_v63 = vcombine.high %v976_v55, %v988_v56  ;;  %v6882_v4 = vcombine.low %v975_v53, %v987_v54  ;;  %v1036_v11 = vld [vmem:[%s8372_s8 + $0x728] sm:$0xff] }
 0x1c6   : > { %v6884_v5 = vcombine.low %v976_v55, %v988_v56  ;;  %v6906_v12 = vcombine.low %v999_v0, %v1011_v1  ;;  %v6933_v15 = vcombine.high %v1024_v10, %v1036_v11  ;;  %v6932_v21 = vcombine.low %v1024_v10, %v1036_v11  ;;  %v1156_v54 = vld [vmem:[%s8372_s8 + $0xae8] sm:$0xff] }
 0x1c7   : > { %v1180_v1 = vld [vmem:[%s8372_s8 + $0xba8] sm:$0xff] }
 0x1c8   : > { %5544 = vmatpush1.bf16.msra.mxu1 %v6738_v17  ;;  %5626 = vmatpush1.bf16.msra.mxu0 %v6740_v18  ;;  %v1059_v17 = vld [vmem:[%s8372_s8 + $0x7e0] sm:$0xff]  ;;  %v1048_v18 = vld [vmem:[%s8372_s8 + $0x788] sm:$0xff] }
 0x1c9   : > { %5545 = vmatprep.subr.bf16.mxu1 %v6763_v19  ;;  %5627 = vmatprep.subr.bf16.mxu0 %v6765_v20  ;;  %v1060_v19 = vld [vmem:[%s8372_s8 + $0x7e8] sm:$0xff]  ;;  %v6930_v20 = vcombine.low %v1023_v8, %v1035_v9  ;;  %v6955_v22 = vcombine.high %v1047_v16, %v1059_v17 }
 0x1ca   : > { %v6957_v23 = vcombine.high %v1048_v18, %v1060_v19  ;;  %v6956_v29 = vcombine.low %v1048_v18, %v1060_v19  ;;  %v1204_v9 = vld [vmem:[%s8372_s8 + $0xc68] sm:$0xff] }
 0x1cc   : > { %5546 = vmatpush1.bf16.msra.mxu1 %v6762_v25  ;;  %5628 = vmatpush1.bf16.msra.mxu0 %v6764_v26  ;;  %v1083_v25 = vld [vmem:[%s8372_s8 + $0x8a0] sm:$0xff]  ;;  %v1072_v26 = vld [vmem:[%s8372_s8 + $0x848] sm:$0xff] }
 0x1cd   : > { %5547 = vmatprep.subr.bf16.mxu1 %v6787_v27  ;;  %5629 = vmatprep.subr.bf16.mxu0 %v6789_v28  ;;  %v1084_v27 = vld [vmem:[%s8372_s8 + $0x8a8] sm:$0xff]  ;;  %v6954_v28 = vcombine.low %v1047_v16, %v1059_v17  ;;  %v6979_v30 = vcombine.high %v1071_v24, %v1083_v25 }
 0x1ce   : > { %v6981_v31 = vcombine.high %v1072_v26, %v1084_v27  ;;  %v6980_v37 = vcombine.low %v1072_v26, %v1084_v27  ;;  %v1215_v27 = vld [vmem:[%s8372_s8 + $0xcc0] sm:$0xff] }
 0x1d0   : > { %5548 = vmatpush1.bf16.msra.mxu1 %v6786_v33  ;;  %5630 = vmatpush1.bf16.msra.mxu0 %v6788_v34  ;;  %v1107_v33 = vld [vmem:[%s8372_s8 + $0x960] sm:$0xff]  ;;  %v1096_v34 = vld [vmem:[%s8372_s8 + $0x908] sm:$0xff] }
 0x1d1   : > { %5549 = vmatprep.subr.bf16.mxu1 %v6811_v35  ;;  %5631 = vmatprep.subr.bf16.mxu0 %v6813_v36  ;;  %v1108_v35 = vld [vmem:[%s8372_s8 + $0x968] sm:$0xff]  ;;  %v6978_v36 = vcombine.low %v1071_v24, %v1083_v25  ;;  %v7003_v38 = vcombine.high %v1095_v32, %v1107_v33 }
 0x1d2   : > { %v7005_v39 = vcombine.high %v1096_v34, %v1108_v35  ;;  %v7004_v45 = vcombine.low %v1096_v34, %v1108_v35  ;;  %v1239_v34 = vld [vmem:[%s8372_s8 + $0xd80] sm:$0xff] }
 0x1d4   : > { %5550 = vmatpush1.bf16.msra.mxu1 %v6810_v41  ;;  %5632 = vmatpush1.bf16.msra.mxu0 %v6812_v42  ;;  %v1131_v41 = vld [vmem:[%s8372_s8 + $0xa20] sm:$0xff]  ;;  %v1120_v42 = vld [vmem:[%s8372_s8 + $0x9c8] sm:$0xff] }
 0x1d5   : > { %5551 = vmatprep.subr.bf16.mxu1 %v6835_v43  ;;  %5633 = vmatprep.subr.bf16.mxu0 %v6837_v44  ;;  %v1132_v43 = vld [vmem:[%s8372_s8 + $0xa28] sm:$0xff]  ;;  %v7002_v44 = vcombine.low %v1095_v32, %v1107_v33  ;;  %v7027_v46 = vcombine.high %v1119_v40, %v1131_v41  ;;  %v7026_v48 = vcombine.low %v1119_v40, %v1131_v41 }
 0x1d6   : > { %v7029_v47 = vcombine.high %v1120_v42, %v1132_v43 }
 0x1d8   : > { %5552 = vmatpush1.bf16.msra.mxu1 %v6834_v49  ;;  %5634 = vmatpush1.bf16.msra.mxu0 %v6836_v50  ;;  %v7028_v49 = vcombine.low %v1120_v42, %v1132_v43  ;;  %v1143_v50 = vld [vmem:[%s8372_s8 + $0xa80] sm:$0xff] }
 0x1d9   : > { %5553 = vmatprep.subr.bf16.mxu1 %v6859_v51  ;;  %5635 = vmatprep.subr.bf16.mxu0 %v6861_v52  ;;  %v1155_v51 = vld [vmem:[%s8372_s8 + $0xae0] sm:$0xff]  ;;  %v1144_v52 = vld [vmem:[%s8372_s8 + $0xa88] sm:$0xff] }
 0x1da   : > { %v7051_v53 = vcombine.high %v1143_v50, %v1155_v51  ;;  %v7050_v55 = vcombine.low %v1143_v50, %v1155_v51  ;;  %v7052_v56 = vcombine.low %v1144_v52, %v1156_v54 }
 0x1dc   : > { %5554 = vmatpush1.bf16.msra.mxu1 %v6858_v57  ;;  %5636 = vmatpush1.bf16.msra.mxu0 %v6860_v58  ;;  %v7053_v57 = vcombine.high %v1144_v52, %v1156_v54  ;;  %v1167_v58 = vld [vmem:[%s8372_s8 + $0xb40] sm:$0xff] }
 0x1dd   : > { %5555 = vmatprep.subr.bf16.mxu1 %v6883_v61  ;;  %5637 = vmatprep.subr.bf16.mxu0 %v6885_v63  ;;  %v1179_v61 = vld [vmem:[%s8372_s8 + $0xba0] sm:$0xff]  ;;  %v1168_v63 = vld [vmem:[%s8372_s8 + $0xb48] sm:$0xff] }
 0x1de   : > { %v7075_v0 = vcombine.high %v1167_v58, %v1179_v61  ;;  %v7074_v2 = vcombine.low %v1167_v58, %v1179_v61  ;;  %v7076_v3 = vcombine.low %v1168_v63, %v1180_v1  ;;  %v1299_v54 = vld [vmem:[%s8372_s8 + $0xf60] sm:$0xff] }
 0x1e0   : > { %5556 = vmatpush1.bf16.msra.mxu1 %v6882_v4  ;;  %5638 = vmatpush1.bf16.msra.mxu0 %v6884_v5  ;;  %v7077_v4 = vcombine.high %v1168_v63, %v1180_v1  ;;  %v1191_v5 = vld [vmem:[%s8372_s8 + $0xc00] sm:$0xff] }
 0x1e1   : > { %5557 = vmatprep.subr.bf16.mxu1 %v6907_v6  ;;  %5639 = vmatprep.subr.bf16.mxu0 %v6909_v7  ;;  %v1203_v6 = vld [vmem:[%s8372_s8 + $0xc60] sm:$0xff]  ;;  %v1192_v7 = vld [vmem:[%s8372_s8 + $0xc08] sm:$0xff] }
 0x1e2   : > { %v7099_v8 = vcombine.high %v1191_v5, %v1203_v6  ;;  %v7098_v10 = vcombine.low %v1191_v5, %v1203_v6  ;;  %v7100_v11 = vcombine.low %v1192_v7, %v1204_v9  ;;  %v1323_v1 = vld [vmem:[%s8372_s8 + $0x1020] sm:$0xff] }
 0x1e4   : > { %5558 = vmatpush1.bf16.msra.mxu1 %v6906_v12  ;;  %5640 = vmatpush1.bf16.msra.mxu0 %v6908_v13  ;;  %v7101_v12 = vcombine.high %v1192_v7, %v1204_v9  ;;  %v8459_v13 = vld [vmem:[#allocation7] sm:$0xf]  ;;  %v1347_v9 = vld [vmem:[%s8372_s8 + $0x10e0] sm:$0xff] }
 0x1e5   : > { %5559 = vmatprep.subr.bf16.mxu1 %v6931_v14  ;;  %5641 = vmatprep.subr.bf16.mxu0 %v6933_v15  ;;  %v8462_v14 = vsub.s32 3, %v8385_v59  ;;  %v640_v15 = vrot.slane %v8459_v13, %v8388_v60  ;;  %v644_v16 = vrot.slane %v8459_v13, %v8391_v62 }
 0x1e7   : > { %v652_v17 = vrot.slane %v8459_v13, %v8462_v14 }
 0x1e8   : > { %5560 = vmatpush1.bf16.msra.mxu1 %v6930_v20  ;;  %5642 = vmatpush1.bf16.msra.mxu0 %v6932_v21 }
 0x1e9   : > { %5561 = vmatprep.subr.bf16.mxu1 %v6955_v22  ;;  %5643 = vmatprep.subr.bf16.mxu0 %v6957_v23 }
 0x1ec   : > { %5562 = vmatpush1.bf16.msra.mxu1 %v6954_v28  ;;  %5644 = vmatpush1.bf16.msra.mxu0 %v6956_v29  ;;  %v1227_v29 = vld [vmem:[%s8372_s8 + $0xd20] sm:$0xff] }
 0x1ed   : > { %5563 = vmatprep.subr.bf16.mxu1 %v6979_v30  ;;  %5645 = vmatprep.subr.bf16.mxu0 %v6981_v31  ;;  %v1216_v30 = vld [vmem:[%s8372_s8 + $0xcc8] sm:$0xff]  ;;  %v7123_v35 = vcombine.high %v1215_v27, %v1227_v29  ;;  %v7122_v41 = vcombine.low %v1215_v27, %v1227_v29  ;;  %v1383_v27 = vld [vmem:[%s8372_s8 + $0x1200] sm:$0xff] }
 0x1ee   : > { %v1228_v31 = vld [vmem:[%s8372_s8 + $0xd28] sm:$0xff] }
 0x1ef   : > { %v7124_v42 = vcombine.low %v1216_v30, %v1228_v31  ;;  %v1384_v29 = vld [vmem:[%s8372_s8 + $0x1208] sm:$0xff] }
 0x1f0   : > { %5564 = vmatpush1.bf16.msra.mxu1 %v6978_v36  ;;  %5646 = vmatpush1.bf16.msra.mxu0 %v6980_v37  ;;  %v7125_v36 = vcombine.high %v1216_v30, %v1228_v31  ;;  %v1251_v37 = vld [vmem:[%s8372_s8 + $0xde0] sm:$0xff]  ;;  %v1396_v30 = vld [vmem:[%s8372_s8 + $0x1268] sm:$0xff] }
 0x1f1   : > { %5565 = vmatprep.subr.bf16.mxu1 %v7003_v38  ;;  %5647 = vmatprep.subr.bf16.mxu0 %v7005_v39  ;;  %v1240_v38 = vld [vmem:[%s8372_s8 + $0xd88] sm:$0xff]  ;;  %v7147_v43 = vcombine.high %v1239_v34, %v1251_v37 }
 0x1f2   : > { %v1252_v39 = vld [vmem:[%s8372_s8 + $0xde8] sm:$0xff] }
 0x1f3   : > { %v7148_v50 = vcombine.low %v1240_v38, %v1252_v39 }
 0x1f4   : > { %5566 = vmatpush1.bf16.msra.mxu1 %v7002_v44  ;;  %5648 = vmatpush1.bf16.msra.mxu0 %v7004_v45  ;;  %v7149_v44 = vcombine.high %v1240_v38, %v1252_v39  ;;  %v1263_v45 = vld [vmem:[%s8372_s8 + $0xe40] sm:$0xff]  ;;  %v1408_v39 = vld [vmem:[%s8372_s8 + $0x12c8] sm:$0xff] }
 0x1f5   : > { %5567 = vmatprep.subr.bf16.mxu1 %v7027_v46  ;;  %5649 = vmatprep.subr.bf16.mxu0 %v7029_v47  ;;  %v1275_v46 = vld [vmem:[%s8372_s8 + $0xea0] sm:$0xff]  ;;  %v1264_v47 = vld [vmem:[%s8372_s8 + $0xe48] sm:$0xff] }
 0x1f6   : > { %v7171_v51 = vcombine.high %v1263_v45, %v1275_v46  ;;  %v1419_v38 = vld [vmem:[%s8372_s8 + $0x1320] sm:$0xff] }
 0x1f8   : > { %5568 = vmatpush1.bf16.msra.mxu1 %v7026_v48  ;;  %5650 = vmatpush1.bf16.msra.mxu0 %v7028_v49  ;;  %v1276_v48 = vld [vmem:[%s8372_s8 + $0xea8] sm:$0xff]  ;;  %v7146_v49 = vcombine.low %v1239_v34, %v1251_v37  ;;  %v1407_v37 = vld [vmem:[%s8372_s8 + $0x12c0] sm:$0xff] }
 0x1f9   : > { %5569 = vmatprep.subr.bf16.mxu1 %v7051_v53  ;;  %5651 = vmatprep.subr.bf16.mxu0 %v7053_v57  ;;  %v7173_v52 = vcombine.high %v1264_v47, %v1276_v48  ;;  %v1287_v53 = vld [vmem:[%s8372_s8 + $0xf00] sm:$0xff]  ;;  %v7170_v57 = vcombine.low %v1263_v45, %v1275_v46  ;;  %v7172_v58 = vcombine.low %v1264_v47, %v1276_v48  ;;  %v1432_v48 = vld [vmem:[%s8372_s8 + $0x1388] sm:$0xff] }
 0x1fa   : > { %v7195_v61 = vcombine.high %v1287_v53, %v1299_v54  ;;  %v1431_v46 = vld [vmem:[%s8372_s8 + $0x1380] sm:$0xff] }
 0x1fb   : > { %v1443_v47 = vld [vmem:[%s8372_s8 + $0x13e0] sm:$0xff] }
 0x1fc   : > { %5570 = vmatpush1.bf16.msra.mxu1 %v7050_v55  ;;  %5652 = vmatpush1.bf16.msra.mxu0 %v7052_v56  ;;  %v1288_v55 = vld [vmem:[%s8372_s8 + $0xf08] sm:$0xff] }
 0x1fd   : > { %5571 = vmatprep.subr.bf16.mxu1 %v7075_v0  ;;  %5653 = vmatprep.subr.bf16.mxu0 %v7077_v4  ;;  %v1300_v56 = vld [vmem:[%s8372_s8 + $0xf68] sm:$0xff]  ;;  %v1311_v0 = vld [vmem:[%s8372_s8 + $0xfc0] sm:$0xff]  ;;  %v7194_v4 = vcombine.low %v1287_v53, %v1299_v54 }
 0x1fe   : > { %v7197_v63 = vcombine.high %v1288_v55, %v1300_v56  ;;  %v7196_v5 = vcombine.low %v1288_v55, %v1300_v56  ;;  %v7219_v6 = vcombine.high %v1311_v0, %v1323_v1  ;;  %v1455_v54 = vld [vmem:[%s8372_s8 + $0x1440] sm:$0xff]  ;;  %v1456_v56 = vld [vmem:[%s8372_s8 + $0x1448] sm:$0xff] }
 0x1ff   : > { %v1467_v55 = vld [vmem:[%s8372_s8 + $0x14a0] sm:$0xff] }
 0x200   : > { %5572 = vmatpush1.bf16.msra.mxu1 %v7074_v2  ;;  %5654 = vmatpush1.bf16.msra.mxu0 %v7076_v3  ;;  %v1312_v2 = vld [vmem:[%s8372_s8 + $0xfc8] sm:$0xff] }
 0x201   : > { %5582 = vmatprep.subr.bf16.mxu1 %v7099_v8  ;;  %5664 = vmatprep.subr.bf16.mxu0 %v7101_v12  ;;  %v1324_v3 = vld [vmem:[%s8372_s8 + $0x1028] sm:$0xff]  ;;  %v1335_v8 = vld [vmem:[%s8372_s8 + $0x1080] sm:$0xff]  ;;  %v7218_v12 = vcombine.low %v1311_v0, %v1323_v1 }
 0x202   : > { %v7221_v7 = vcombine.high %v1312_v2, %v1324_v3  ;;  %v1479_v1 = vld [vmem:[%s8372_s8 + $0x1500] sm:$0xff] }
 0x296   : > { %v723_v18 = vpop.f32.mrb[0].mxu1  ;;  %v8470_v19 = vpop.f32.mrb[2].mxu0 }
 0x297   : > { %v724_v20 = vadd.f32 %v723_v18, %v640_v15  ;;  %v725_v21 = vpop.f32.mrb[1].mxu1  ;;  %v796_v22 = vpop.f32.mrb[3].mxu0  ;;  %v7220_v15 = vcombine.low %v1312_v2, %v1324_v3  ;;  %v1359_v18 = vld [vmem:[%s8372_s8 + $0x1140] sm:$0xff]  ;;  %v1480_v3 = vld [vmem:[%s8372_s8 + $0x1508] sm:$0xff] }
 0x298   : > { %v726_v23 = vadd.f32 %v725_v21, %v644_v16  ;;  %v797_v24 = vadd.f32 %v796_v22, %v652_v17  ;;  %v7243_v16 = vcombine.high %v1335_v8, %v1347_v9  ;;  %v1360_v21 = vld [vmem:[%s8372_s8 + $0x1148] sm:$0xff]  ;;  %v1491_v2 = vld [vmem:[%s8372_s8 + $0x1560] sm:$0xff] }
 0x299   : > { %v799_v25 = vmax.f32 %v724_v20, 0.0  ;;  %v1371_v20 = vld [vmem:[%s8372_s8 + $0x11a0] sm:$0xff]  ;;  %v1372_v22 = vld [vmem:[%s8372_s8 + $0x11a8] sm:$0xff] }
 0x29a   : > { %v800_v26 = vmax.f32 %v726_v23, 0.0  ;;  %v802_v28 = vmax.f32 %v797_v24, 0.0  ;;  %v7242_v23 = vcombine.low %v1335_v8, %v1347_v9  ;;  %v7266_v31 = vcombine.low %v1359_v18, %v1371_v20  ;;  %v1503_v9 = vld [vmem:[%s8372_s8 + $0x15c0] sm:$0xff] }
 0x29b   : > { %v8478_v33 = vpack.c.bf16 %v799_v25, %v799_v25  ;;  %v7267_v25 = vcombine.high %v1359_v18, %v1371_v20  ;;  %v7268_v34 = vcombine.low %v1360_v21, %v1372_v22 }
 0x29c   : > { %v8476_v32 = vpack.c.bf16 %v800_v26, %v800_v26  ;;  %v8486_v40 = vpack.c.bf16 %v802_v28, %v802_v28  ;;  %v7269_v26 = vcombine.high %v1360_v21, %v1372_v22  ;;  %v1395_v28 = vld [vmem:[%s8372_s8 + $0x1260] sm:$0xff] }
 0x29d   : > { %v1527_v21 = vld [vmem:[%s8372_s8 + $0x1680] sm:$0xff] }
 0x29e   : > { %5573 = vmatprep.mubr.bf16.mxu1 %v8476_v32  ;;  %5655 = vmatprep.mubr.bf16.mxu0 %v8476_v32  ;;  %v1539_v22 = vld [vmem:[%s8372_s8 + $0x16e0] sm:$0xff] }
 0x29f   : > { %5574 = vmatmul.mubr.bf16.vlgmr.msra.gmra.mrb[4].mxu1 %v8478_v33  ;;  %5656 = vmatmul.mubr.bf16.vlgmr.msra.gmra.mrb[4].mxu0 %v8478_v33 }
 0x2a0   : > { %5583 = vmatpush1.bf16.msra.mxu1 %v7098_v10  ;;  %5665 = vmatpush1.bf16.msra.mxu0 %v7100_v11  ;;  %v1336_v10 = vld [vmem:[%s8372_s8 + $0x1088] sm:$0xff] }
 0x2a1   : > { %5614 = vmatprep.mubr.bf16.mxu1 %v8486_v40  ;;  %5696 = vmatprep.mubr.bf16.mxu0 %v8486_v40  ;;  %v1348_v11 = vld [vmem:[%s8372_s8 + $0x10e8] sm:$0xff] }
 0x2a2   : > { %5584 = vmatprep.subr.bf16.mxu1 %v7123_v35  ;;  %5666 = vmatprep.subr.bf16.mxu0 %v7125_v36  ;;  %v7245_v17 = vcombine.high %v1336_v10, %v1348_v11  ;;  %v7244_v24 = vcombine.low %v1336_v10, %v1348_v11  ;;  %v7291_v35 = vcombine.high %v1383_v27, %v1395_v28  ;;  %v1515_v10 = vld [vmem:[%s8372_s8 + $0x1620] sm:$0xff]  ;;  %v1504_v11 = vld [vmem:[%s8372_s8 + $0x15c8] sm:$0xff] }
 0x2a3   : > { %v7293_v36 = vcombine.high %v1384_v29, %v1396_v30  ;;  %v7411_v18 = vcombine.high %v1503_v9, %v1515_v10 }
 0x2a4   : > { %5585 = vmatpush1.bf16.msra.mxu1 %v7122_v41  ;;  %5667 = vmatpush1.bf16.msra.mxu0 %v7124_v42  ;;  %v1420_v41 = vld [vmem:[%s8372_s8 + $0x1328] sm:$0xff]  ;;  %v7290_v42 = vcombine.low %v1383_v27, %v1395_v28  ;;  %v7435_v28 = vcombine.high %v1527_v21, %v1539_v22 }
 0x2a5   : > { %5586 = vmatprep.subr.bf16.mxu1 %v7147_v43  ;;  %5668 = vmatprep.subr.bf16.mxu0 %v7149_v44  ;;  %v7292_v43 = vcombine.low %v1384_v29, %v1396_v30  ;;  %v7315_v44 = vcombine.high %v1407_v37, %v1419_v38  ;;  %v7317_v45 = vcombine.high %v1408_v39, %v1420_v41  ;;  %v1551_v30 = vld [vmem:[%s8372_s8 + $0x1740] sm:$0xff] }
 0x2a8   : > { %5587 = vmatpush1.bf16.msra.mxu1 %v7146_v49  ;;  %5669 = vmatpush1.bf16.msra.mxu0 %v7148_v50  ;;  %v1444_v49 = vld [vmem:[%s8372_s8 + $0x13e8] sm:$0xff]  ;;  %v7314_v50 = vcombine.low %v1407_v37, %v1419_v38 }
 0x2a9   : > { %5588 = vmatprep.subr.bf16.mxu1 %v7171_v51  ;;  %5670 = vmatprep.subr.bf16.mxu0 %v7173_v52  ;;  %v7316_v51 = vcombine.low %v1408_v39, %v1420_v41  ;;  %v7339_v52 = vcombine.high %v1431_v46, %v1443_v47  ;;  %v7341_v53 = vcombine.high %v1432_v48, %v1444_v49  ;;  %v809_v41 = vld [vmem:[%s8372_s8 + $0x10] sm:$0xff] }
 0x2ac   : > { %5589 = vmatpush1.bf16.msra.mxu1 %v7170_v57  ;;  %5671 = vmatpush1.bf16.msra.mxu0 %v7172_v58  ;;  %v1468_v57 = vld [vmem:[%s8372_s8 + $0x14a8] sm:$0xff]  ;;  %v7338_v58 = vcombine.low %v1431_v46, %v1443_v47 }
 0x2ad   : > { %5590 = vmatprep.subr.bf16.mxu1 %v7195_v61  ;;  %5672 = vmatprep.subr.bf16.mxu0 %v7197_v63  ;;  %v7340_v61 = vcombine.low %v1432_v48, %v1444_v49  ;;  %v7363_v63 = vcombine.high %v1455_v54, %v1467_v55  ;;  %v7365_v0 = vcombine.high %v1456_v56, %v1468_v57  ;;  %v833_v49 = vld [vmem:[%s8372_s8 + $0xd0] sm:$0xff] }
 0x2b0   : > { %5591 = vmatpush1.bf16.msra.mxu1 %v7194_v4  ;;  %5673 = vmatpush1.bf16.msra.mxu0 %v7196_v5  ;;  %v1492_v4 = vld [vmem:[%s8372_s8 + $0x1568] sm:$0xff]  ;;  %v7362_v5 = vcombine.low %v1455_v54, %v1467_v55 }
 0x2b1   : > { %5592 = vmatprep.subr.bf16.mxu1 %v7219_v6  ;;  %5674 = vmatprep.subr.bf16.mxu0 %v7221_v7  ;;  %v7364_v6 = vcombine.low %v1456_v56, %v1468_v57  ;;  %v7387_v7 = vcombine.high %v1479_v1, %v1491_v2  ;;  %v7389_v8 = vcombine.high %v1480_v3, %v1492_v4 }
 0x2b4   : > { %5593 = vmatpush1.bf16.msra.mxu1 %v7218_v12  ;;  %5675 = vmatpush1.bf16.msra.mxu0 %v7220_v15  ;;  %v1516_v12 = vld [vmem:[%s8372_s8 + $0x1628] sm:$0xff]  ;;  %v7386_v15 = vcombine.low %v1479_v1, %v1491_v2 }
 0x2b5   : > { %5594 = vmatprep.subr.bf16.mxu1 %v7243_v16  ;;  %5676 = vmatprep.subr.bf16.mxu0 %v7245_v17  ;;  %v7388_v16 = vcombine.low %v1480_v3, %v1492_v4  ;;  %v8537_v17 = vsub.s32 2, %v8385_v59  ;;  %v7413_v20 = vcombine.high %v1504_v11, %v1516_v12 }
 0x2b7   : > { %v648_v27 = vrot.slane %v8459_v13, %v8537_v17 }
 0x2b8   : > { %5595 = vmatpush1.bf16.msra.mxu1 %v7242_v23  ;;  %5677 = vmatpush1.bf16.msra.mxu0 %v7244_v24  ;;  %v1528_v23 = vld [vmem:[%s8372_s8 + $0x1688] sm:$0xff] }
 0x2b9   : > { %5596 = vmatprep.subr.bf16.mxu1 %v7267_v25  ;;  %5678 = vmatprep.subr.bf16.mxu0 %v7269_v26  ;;  %v1540_v24 = vld [vmem:[%s8372_s8 + $0x16e8] sm:$0xff]  ;;  %v7410_v25 = vcombine.low %v1503_v9, %v1515_v10  ;;  %v7412_v26 = vcombine.low %v1504_v11, %v1516_v12  ;;  %v795_v38 = vadd.f32 %v8470_v19, %v648_v27  ;;  %v930_v27 = vld [vmem:[%s8372_s8 + $0x3d8] sm:$0xff] }
 0x2ba   : > { %v7437_v29 = vcombine.high %v1528_v23, %v1540_v24  ;;  %v7436_v37 = vcombine.low %v1528_v23, %v1540_v24 }
 0x2bb   : > { %v801_v47 = vmax.f32 %v795_v38, 0.0  ;;  %v966_v38 = vld [vmem:[%s8372_s8 + $0x4f8] sm:$0xff] }
 0x2bc   : > { %5597 = vmatpush1.bf16.msra.mxu1 %v7266_v31  ;;  %5679 = vmatpush1.bf16.msra.mxu0 %v7268_v34  ;;  %v1563_v31 = vld [vmem:[%s8372_s8 + $0x17a0] sm:$0xff]  ;;  %v1552_v34 = vld [vmem:[%s8372_s8 + $0x1748] sm:$0xff] }
 0x2bd   : > { %5598 = vmatprep.subr.bf16.mxu1 %v7291_v35  ;;  %5680 = vmatprep.subr.bf16.mxu0 %v7293_v36  ;;  %v1564_v35 = vld [vmem:[%s8372_s8 + $0x17a8] sm:$0xff]  ;;  %v7434_v36 = vcombine.low %v1527_v21, %v1539_v22  ;;  %v7459_v13 = vcombine.high %v1551_v30, %v1563_v31  ;;  %v8558_v54 = vpack.c.bf16 %v801_v47, %v801_v47 }
 0x2be   : > { %v7461_v39 = vcombine.high %v1552_v34, %v1564_v35  ;;  %v7460_v46 = vcombine.low %v1552_v34, %v1564_v35  ;;  %v953_v35 = vld [vmem:[%s8372_s8 + $0x490] sm:$0xff] }
 0x2c0   : > { %5599 = vmatpush1.bf16.msra.mxu1 %v7290_v42  ;;  %5681 = vmatpush1.bf16.msra.mxu0 %v7292_v43  ;;  %v821_v42 = vld [vmem:[%s8372_s8 + $0x70] sm:$0xff]  ;;  %v810_v43 = vld [vmem:[%s8372_s8 + $0x18] sm:$0xff] }
 0x2c1   : > { %5600 = vmatprep.subr.bf16.mxu1 %v7315_v44  ;;  %5682 = vmatprep.subr.bf16.mxu0 %v7317_v45  ;;  %v822_v44 = vld [vmem:[%s8372_s8 + $0x78] sm:$0xff]  ;;  %v7458_v45 = vcombine.low %v1551_v30, %v1563_v31  ;;  %v6719_v19 = vcombine.high %v809_v41, %v821_v42 }
 0x2c2   : > { %v6721_v48 = vcombine.high %v810_v43, %v822_v44  ;;  %v6720_v55 = vcombine.low %v810_v43, %v822_v44  ;;  %v977_v43 = vld [vmem:[%s8372_s8 + $0x550] sm:$0xff] }
 0x2c3   : > { %v989_v44 = vld [vmem:[%s8372_s8 + $0x5b0] sm:$0xff] }
 0x2c4   : > { %5601 = vmatpush1.bf16.msra.mxu1 %v7314_v50  ;;  %5683 = vmatpush1.bf16.msra.mxu0 %v7316_v51  ;;  %v845_v50 = vld [vmem:[%s8372_s8 + $0x130] sm:$0xff]  ;;  %v834_v51 = vld [vmem:[%s8372_s8 + $0xd8] sm:$0xff] }
 0x2c5   : > { %5602 = vmatprep.subr.bf16.mxu1 %v7339_v52  ;;  %5684 = vmatprep.subr.bf16.mxu0 %v7341_v53  ;;  %v846_v52 = vld [vmem:[%s8372_s8 + $0x138] sm:$0xff]  ;;  %v6718_v53 = vcombine.low %v809_v41, %v821_v42  ;;  %v6743_v56 = vcombine.high %v833_v49, %v845_v50  ;;  %v6742_v1 = vcombine.low %v833_v49, %v845_v50  ;;  %v1001_v50 = vld [vmem:[%s8372_s8 + $0x610] sm:$0xff] }
 0x2c6   : > { %v6745_v57 = vcombine.high %v834_v51, %v846_v52  ;;  %v6744_v2 = vcombine.low %v834_v51, %v846_v52  ;;  %v1013_v51 = vld [vmem:[%s8372_s8 + $0x670] sm:$0xff]  ;;  %v1002_v52 = vld [vmem:[%s8372_s8 + $0x618] sm:$0xff] }
 0x2c8   : > { %5603 = vmatpush1.bf16.msra.mxu1 %v7338_v58  ;;  %5685 = vmatpush1.bf16.msra.mxu0 %v7340_v61  ;;  %v857_v58 = vld [vmem:[%s8372_s8 + $0x190] sm:$0xff] }
 0x2c9   : > { %5604 = vmatprep.subr.bf16.mxu1 %v7363_v63  ;;  %5686 = vmatprep.subr.bf16.mxu0 %v7365_v0  ;;  %v869_v61 = vld [vmem:[%s8372_s8 + $0x1f0] sm:$0xff]  ;;  %v858_v63 = vld [vmem:[%s8372_s8 + $0x198] sm:$0xff] }
 0x2ca   : > { %v870_v0 = vld [vmem:[%s8372_s8 + $0x1f8] sm:$0xff]  ;;  %v6767_v3 = vcombine.high %v857_v58, %v869_v61  ;;  %v6766_v9 = vcombine.low %v857_v58, %v869_v61  ;;  %v1025_v61 = vld [vmem:[%s8372_s8 + $0x6d0] sm:$0xff] }
 0x2cb   : > { %v6769_v4 = vcombine.high %v858_v63, %v870_v0  ;;  %v6768_v10 = vcombine.low %v858_v63, %v870_v0  ;;  %v1037_v63 = vld [vmem:[%s8372_s8 + $0x730] sm:$0xff]  ;;  %v1026_v0 = vld [vmem:[%s8372_s8 + $0x6d8] sm:$0xff] }
 0x2cc   : > { %5605 = vmatpush1.bf16.msra.mxu1 %v7362_v5  ;;  %5687 = vmatpush1.bf16.msra.mxu0 %v7364_v6  ;;  %v881_v5 = vld [vmem:[%s8372_s8 + $0x250] sm:$0xff] }
 0x2cd   : > { %5606 = vmatprep.subr.bf16.mxu1 %v7387_v7  ;;  %5688 = vmatprep.subr.bf16.mxu0 %v7389_v8  ;;  %v893_v6 = vld [vmem:[%s8372_s8 + $0x2b0] sm:$0xff]  ;;  %v882_v7 = vld [vmem:[%s8372_s8 + $0x258] sm:$0xff] }
 0x2ce   : > { %v894_v8 = vld [vmem:[%s8372_s8 + $0x2b8] sm:$0xff]  ;;  %v6791_v11 = vcombine.high %v881_v5, %v893_v6  ;;  %v6790_v21 = vcombine.low %v881_v5, %v893_v6  ;;  %v1049_v6 = vld [vmem:[%s8372_s8 + $0x790] sm:$0xff] }
 0x2cf   : > { %v6793_v12 = vcombine.high %v882_v7, %v894_v8  ;;  %v6792_v22 = vcombine.low %v882_v7, %v894_v8  ;;  %v1061_v7 = vld [vmem:[%s8372_s8 + $0x7f0] sm:$0xff]  ;;  %v1050_v8 = vld [vmem:[%s8372_s8 + $0x798] sm:$0xff] }
 0x2d0   : > { %5607 = vmatpush1.bf16.msra.mxu1 %v7386_v15  ;;  %5689 = vmatpush1.bf16.msra.mxu0 %v7388_v16  ;;  %v905_v15 = vld [vmem:[%s8372_s8 + $0x310] sm:$0xff] }
 0x2d1   : > { %5608 = vmatprep.subr.bf16.mxu1 %v7411_v18  ;;  %5690 = vmatprep.subr.bf16.mxu0 %v7413_v20  ;;  %v917_v16 = vld [vmem:[%s8372_s8 + $0x370] sm:$0xff]  ;;  %v906_v18 = vld [vmem:[%s8372_s8 + $0x318] sm:$0xff] }
 0x2d2   : > { %v918_v20 = vld [vmem:[%s8372_s8 + $0x378] sm:$0xff]  ;;  %v6815_v23 = vcombine.high %v905_v15, %v917_v16 }
 0x2d3   : > { %v6817_v24 = vcombine.high %v906_v18, %v918_v20  ;;  %v6816_v30 = vcombine.low %v906_v18, %v918_v20  ;;  %v1085_v18 = vld [vmem:[%s8372_s8 + $0x8b0] sm:$0xff]  ;;  %v1074_v20 = vld [vmem:[%s8372_s8 + $0x858] sm:$0xff] }
 0x2d4   : > { %5609 = vmatpush1.bf16.msra.mxu1 %v7410_v25  ;;  %5691 = vmatpush1.bf16.msra.mxu0 %v7412_v26  ;;  %v929_v25 = vld [vmem:[%s8372_s8 + $0x3d0] sm:$0xff] }
 0x2d5   : > { %5610 = vmatprep.subr.bf16.mxu1 %v7435_v28  ;;  %5692 = vmatprep.subr.bf16.mxu0 %v7437_v29  ;;  %v941_v26 = vld [vmem:[%s8372_s8 + $0x430] sm:$0xff]  ;;  %v942_v28 = vld [vmem:[%s8372_s8 + $0x438] sm:$0xff]  ;;  %v6814_v29 = vcombine.low %v905_v15, %v917_v16 }
 0x2d6   : > { %v6839_v31 = vcombine.high %v929_v25, %v941_v26  ;;  %v6841_v34 = vcombine.high %v930_v27, %v942_v28  ;;  %v1073_v16 = vld [vmem:[%s8372_s8 + $0x850] sm:$0xff] }
 0x2d8   : > { %5611 = vmatpush1.bf16.msra.mxu1 %v7434_v36  ;;  %5693 = vmatpush1.bf16.msra.mxu0 %v7436_v37  ;;  %v965_v36 = vld [vmem:[%s8372_s8 + $0x4f0] sm:$0xff]  ;;  %v954_v37 = vld [vmem:[%s8372_s8 + $0x498] sm:$0xff] }
 0x2d9   : > { %5612 = vmatprep.subr.bf16.mxu1 %v7459_v13  ;;  %5694 = vmatprep.subr.bf16.mxu0 %v7461_v39  ;;  %v6838_v13 = vcombine.low %v929_v25, %v941_v26  ;;  %v6840_v39 = vcombine.low %v930_v27, %v942_v28  ;;  %v6863_v41 = vcombine.high %v953_v35, %v965_v36  ;;  %v1097_v26 = vld [vmem:[%s8372_s8 + $0x910] sm:$0xff]  ;;  %v1098_v28 = vld [vmem:[%s8372_s8 + $0x918] sm:$0xff] }
 0x2da   : > { %v6865_v42 = vcombine.high %v954_v37, %v966_v38  ;;  %v6862_v47 = vcombine.low %v953_v35, %v965_v36  ;;  %v1109_v27 = vld [vmem:[%s8372_s8 + $0x970] sm:$0xff] }
 0x2db   : > { %v1121_v36 = vld [vmem:[%s8372_s8 + $0x9d0] sm:$0xff] }
 0x2dc   : > { %5613 = vmatpush1.bf16.msra.mxu1 %v7458_v45  ;;  %5695 = vmatpush1.bf16.msra.mxu0 %v7460_v46  ;;  %v978_v45 = vld [vmem:[%s8372_s8 + $0x558] sm:$0xff] }
 0x2dd   : > { %5705 = vmatprep.subr.bf16.mxu1 %v6719_v19  ;;  %5787 = vmatprep.subr.bf16.mxu0 %v6721_v48  ;;  %v990_v46 = vld [vmem:[%s8372_s8 + $0x5b8] sm:$0xff]  ;;  %v6864_v19 = vcombine.low %v954_v37, %v966_v38  ;;  %v6887_v48 = vcombine.high %v977_v43, %v989_v44  ;;  %v1133_v37 = vld [vmem:[%s8372_s8 + $0xa30] sm:$0xff] }
 0x2de   : > { %v6889_v49 = vcombine.high %v978_v45, %v990_v46  ;;  %v1122_v38 = vld [vmem:[%s8372_s8 + $0x9d8] sm:$0xff] }
 0x2df   : > { %5615 = vmatmul.mubr.bf16.vlgmr.msra.gmra.mrb[4].mxu1 %v8558_v54  ;;  %5697 = vmatmul.mubr.bf16.vlgmr.msra.gmra.mrb[4].mxu0 %v8558_v54 }
 0x2e0   : > { %5706 = vmatpush1.bf16.msra.mxu1 %v6718_v53  ;;  %5737 = vmatprep.mubr.bf16.mxu1 %v8476_v32  ;;  %v1014_v53 = vld [vmem:[%s8372_s8 + $0x678] sm:$0xff] }
 0x2e1   : > { %5788 = vmatpush1.bf16.msra.mxu0 %v6720_v55  ;;  %5819 = vmatprep.mubr.bf16.mxu0 %v8476_v32  ;;  %v6886_v55 = vcombine.low %v977_v43, %v989_v44  ;;  %v6913_v58 = vcombine.high %v1002_v52, %v1014_v53  ;;  %v1145_v44 = vld [vmem:[%s8372_s8 + $0xa90] sm:$0xff] }
 0x2e2   : > { %5707 = vmatprep.subr.bf16.mxu1 %v6743_v56  ;;  %5789 = vmatprep.subr.bf16.mxu0 %v6745_v57  ;;  %v6888_v56 = vcombine.low %v978_v45, %v990_v46  ;;  %v6911_v57 = vcombine.high %v1001_v50, %v1013_v51  ;;  %v1157_v45 = vld [vmem:[%s8372_s8 + $0xaf0] sm:$0xff]  ;;  %v1146_v46 = vld [vmem:[%s8372_s8 + $0xa98] sm:$0xff] }
 0x2e4   : > { %5708 = vmatpush1.bf16.msra.mxu1 %v6742_v1  ;;  %v1038_v1 = vld [vmem:[%s8372_s8 + $0x738] sm:$0xff] }
 0x2e5   : > { %5790 = vmatpush1.bf16.msra.mxu0 %v6744_v2  ;;  %5709 = vmatprep.subr.bf16.mxu1 %v6767_v3  ;;  %v6910_v2 = vcombine.low %v1001_v50, %v1013_v51  ;;  %v6912_v3 = vcombine.low %v1002_v52, %v1014_v53  ;;  %v6937_v5 = vcombine.high %v1026_v0, %v1038_v1  ;;  %v1169_v51 = vld [vmem:[%s8372_s8 + $0xb50] sm:$0xff]  ;;  %v1170_v53 = vld [vmem:[%s8372_s8 + $0xb58] sm:$0xff] }
 0x2e6   : > { %5791 = vmatprep.subr.bf16.mxu0 %v6769_v4  ;;  %v6935_v4 = vcombine.high %v1025_v61, %v1037_v63  ;;  %v1181_v52 = vld [vmem:[%s8372_s8 + $0xbb0] sm:$0xff] }
 0x2e8   : > { %5710 = vmatpush1.bf16.msra.mxu1 %v6766_v9  ;;  %v1062_v9 = vld [vmem:[%s8372_s8 + $0x7f8] sm:$0xff] }
 0x2e9   : > { %5792 = vmatpush1.bf16.msra.mxu0 %v6768_v10  ;;  %5711 = vmatprep.subr.bf16.mxu1 %v6791_v11  ;;  %v6934_v10 = vcombine.low %v1025_v61, %v1037_v63  ;;  %v6936_v11 = vcombine.low %v1026_v0, %v1038_v1  ;;  %v6961_v15 = vcombine.high %v1050_v8, %v1062_v9  ;;  %v1193_v63 = vld [vmem:[%s8372_s8 + $0xc10] sm:$0xff]  ;;  %v1194_v1 = vld [vmem:[%s8372_s8 + $0xc18] sm:$0xff] }
 0x2ea   : > { %5793 = vmatprep.subr.bf16.mxu0 %v6793_v12  ;;  %v6959_v12 = vcombine.high %v1049_v6, %v1061_v7  ;;  %v1205_v0 = vld [vmem:[%s8372_s8 + $0xc70] sm:$0xff] }
 0x2ec   : > { %5712 = vmatpush1.bf16.msra.mxu1 %v6790_v21  ;;  %v1086_v21 = vld [vmem:[%s8372_s8 + $0x8b8] sm:$0xff] }
 0x2ed   : > { %5794 = vmatpush1.bf16.msra.mxu0 %v6792_v22  ;;  %5713 = vmatprep.subr.bf16.mxu1 %v6815_v23  ;;  %v6958_v22 = vcombine.low %v1049_v6, %v1061_v7  ;;  %v6960_v23 = vcombine.low %v1050_v8, %v1062_v9  ;;  %v6985_v25 = vcombine.high %v1074_v20, %v1086_v21  ;;  %v1217_v7 = vld [vmem:[%s8372_s8 + $0xcd0] sm:$0xff] }
 0x2ee   : > { %5795 = vmatprep.subr.bf16.mxu0 %v6817_v24  ;;  %v6983_v24 = vcombine.high %v1073_v16, %v1085_v18  ;;  %v1229_v8 = vld [vmem:[%s8372_s8 + $0xd30] sm:$0xff]  ;;  %v7102_v9 = vcombine.low %v1193_v63, %v1205_v0 }
 0x2f0   : > { %5714 = vmatpush1.bf16.msra.mxu1 %v6814_v29  ;;  %v1110_v29 = vld [vmem:[%s8372_s8 + $0x978] sm:$0xff] }
 0x2f1   : > { %5796 = vmatpush1.bf16.msra.mxu0 %v6816_v30  ;;  %5715 = vmatprep.subr.bf16.mxu1 %v6839_v31  ;;  %v6982_v30 = vcombine.low %v1073_v16, %v1085_v18  ;;  %v6984_v31 = vcombine.low %v1074_v20, %v1086_v21  ;;  %v7009_v35 = vcombine.high %v1098_v28, %v1110_v29  ;;  %v1241_v16 = vld [vmem:[%s8372_s8 + $0xd90] sm:$0xff]  ;;  %v1242_v21 = vld [vmem:[%s8372_s8 + $0xd98] sm:$0xff] }
 0x2f2   : > { %5797 = vmatprep.subr.bf16.mxu0 %v6841_v34  ;;  %v7007_v34 = vcombine.high %v1097_v26, %v1109_v27  ;;  %v1253_v18 = vld [vmem:[%s8372_s8 + $0xdf0] sm:$0xff] }
 0x2f4   : > { %5716 = vmatpush1.bf16.msra.mxu1 %v6838_v13  ;;  %v1134_v13 = vld [vmem:[%s8372_s8 + $0xa38] sm:$0xff] }
 0x2f5   : > { %5798 = vmatpush1.bf16.msra.mxu0 %v6840_v39  ;;  %5717 = vmatprep.subr.bf16.mxu1 %v6863_v41  ;;  %v7006_v39 = vcombine.low %v1097_v26, %v1109_v27  ;;  %v7008_v41 = vcombine.low %v1098_v28, %v1110_v29  ;;  %v7033_v43 = vcombine.high %v1122_v38, %v1134_v13  ;;  %v1265_v27 = vld [vmem:[%s8372_s8 + $0xe50] sm:$0xff]  ;;  %v1266_v29 = vld [vmem:[%s8372_s8 + $0xe58] sm:$0xff] }
 0x2f6   : > { %5799 = vmatprep.subr.bf16.mxu0 %v6865_v42  ;;  %v7031_v42 = vcombine.high %v1121_v36, %v1133_v37  ;;  %v1277_v28 = vld [vmem:[%s8372_s8 + $0xeb0] sm:$0xff] }
 0x2f8   : > { %5718 = vmatpush1.bf16.msra.mxu1 %v6862_v47  ;;  %v1158_v47 = vld [vmem:[%s8372_s8 + $0xaf8] sm:$0xff] }
 0x2f9   : > { %5800 = vmatpush1.bf16.msra.mxu0 %v6864_v19  ;;  %5719 = vmatprep.subr.bf16.mxu1 %v6887_v48  ;;  %v7030_v19 = vcombine.low %v1121_v36, %v1133_v37  ;;  %v7032_v48 = vcombine.low %v1122_v38, %v1134_v13  ;;  %v7057_v50 = vcombine.high %v1146_v46, %v1158_v47  ;;  %v1289_v37 = vld [vmem:[%s8372_s8 + $0xf10] sm:$0xff]  ;;  %v1290_v13 = vld [vmem:[%s8372_s8 + $0xf18] sm:$0xff] }
 0x2fa   : > { %5801 = vmatprep.subr.bf16.mxu0 %v6889_v49  ;;  %v7055_v49 = vcombine.high %v1145_v44, %v1157_v45  ;;  %v1301_v38 = vld [vmem:[%s8372_s8 + $0xf70] sm:$0xff] }
 0x2fc   : > { %5720 = vmatpush1.bf16.msra.mxu1 %v6886_v55  ;;  %v1182_v55 = vld [vmem:[%s8372_s8 + $0xbb8] sm:$0xff] }
 0x2fd   : > { %5802 = vmatpush1.bf16.msra.mxu0 %v6888_v56  ;;  %5721 = vmatprep.subr.bf16.mxu1 %v6911_v57  ;;  %v7054_v56 = vcombine.low %v1145_v44, %v1157_v45  ;;  %v7056_v57 = vcombine.low %v1146_v46, %v1158_v47  ;;  %v7081_v61 = vcombine.high %v1170_v53, %v1182_v55  ;;  %v1313_v45 = vld [vmem:[%s8372_s8 + $0xfd0] sm:$0xff]  ;;  %v1314_v47 = vld [vmem:[%s8372_s8 + $0xfd8] sm:$0xff] }
 0x2fe   : > { %5803 = vmatprep.subr.bf16.mxu0 %v6913_v58  ;;  %v7079_v58 = vcombine.high %v1169_v51, %v1181_v52  ;;  %v1325_v46 = vld [vmem:[%s8372_s8 + $0x1030] sm:$0xff] }
 0x300   : > { %5722 = vmatpush1.bf16.msra.mxu1 %v6910_v2  ;;  %v1206_v2 = vld [vmem:[%s8372_s8 + $0xc78] sm:$0xff] }
 0x301   : > { %5804 = vmatpush1.bf16.msra.mxu0 %v6912_v3  ;;  %5723 = vmatprep.subr.bf16.mxu1 %v6935_v4  ;;  %v7078_v3 = vcombine.low %v1169_v51, %v1181_v52  ;;  %v7080_v4 = vcombine.low %v1170_v53, %v1182_v55  ;;  %v7105_v6 = vcombine.high %v1194_v1, %v1206_v2  ;;  %v1337_v52 = vld [vmem:[%s8372_s8 + $0x1090] sm:$0xff]  ;;  %v1338_v55 = vld [vmem:[%s8372_s8 + $0x1098] sm:$0xff] }
 0x302   : > { %5805 = vmatprep.subr.bf16.mxu0 %v6937_v5  ;;  %v7103_v5 = vcombine.high %v1193_v63, %v1205_v0  ;;  %v1349_v53 = vld [vmem:[%s8372_s8 + $0x10f0] sm:$0xff] }
 0x303   : > { %v1361_v0 = vld [vmem:[%s8372_s8 + $0x1150] sm:$0xff] }
 0x304   : > { %5724 = vmatpush1.bf16.msra.mxu1 %v6934_v10  ;;  %v1218_v10 = vld [vmem:[%s8372_s8 + $0xcd8] sm:$0xff] }
 0x305   : > { %5806 = vmatpush1.bf16.msra.mxu0 %v6936_v11  ;;  %5725 = vmatprep.subr.bf16.mxu1 %v6959_v12  ;;  %v1230_v11 = vld [vmem:[%s8372_s8 + $0xd38] sm:$0xff]  ;;  %v7104_v12 = vcombine.low %v1194_v1, %v1206_v2  ;;  %v1373_v1 = vld [vmem:[%s8372_s8 + $0x11b0] sm:$0xff] }
 0x306   : > { %5807 = vmatprep.subr.bf16.mxu0 %v6961_v15  ;;  %v7127_v15 = vcombine.high %v1217_v7, %v1229_v8  ;;  %v7129_v20 = vcombine.high %v1218_v10, %v1230_v11  ;;  %v1362_v2 = vld [vmem:[%s8372_s8 + $0x1158] sm:$0xff] }
 0x308   : > { %5726 = vmatpush1.bf16.msra.mxu1 %v6958_v22  ;;  %v1254_v22 = vld [vmem:[%s8372_s8 + $0xdf8] sm:$0xff] }
 0x309   : > { %5808 = vmatpush1.bf16.msra.mxu0 %v6960_v23  ;;  %5727 = vmatprep.subr.bf16.mxu1 %v6983_v24  ;;  %v7126_v23 = vcombine.low %v1217_v7, %v1229_v8  ;;  %v7128_v24 = vcombine.low %v1218_v10, %v1230_v11  ;;  %v7153_v26 = vcombine.high %v1242_v21, %v1254_v22  ;;  %v1385_v8 = vld [vmem:[%s8372_s8 + $0x1210] sm:$0xff]  ;;  %v1386_v10 = vld [vmem:[%s8372_s8 + $0x1218] sm:$0xff] }
 0x30a   : > { %5809 = vmatprep.subr.bf16.mxu0 %v6985_v25  ;;  %v7151_v25 = vcombine.high %v1241_v16, %v1253_v18  ;;  %v1398_v11 = vld [vmem:[%s8372_s8 + $0x1278] sm:$0xff] }
 0x30c   : > { %5728 = vmatpush1.bf16.msra.mxu1 %v6982_v30  ;;  %v1278_v30 = vld [vmem:[%s8372_s8 + $0xeb8] sm:$0xff] }
 0x30d   : > { %5810 = vmatpush1.bf16.msra.mxu0 %v6984_v31  ;;  %5729 = vmatprep.subr.bf16.mxu1 %v7007_v34  ;;  %v7150_v31 = vcombine.low %v1241_v16, %v1253_v18  ;;  %v7152_v34 = vcombine.low %v1242_v21, %v1254_v22  ;;  %v7177_v36 = vcombine.high %v1266_v29, %v1278_v30  ;;  %v1421_v21 = vld [vmem:[%s8372_s8 + $0x1330] sm:$0xff]  ;;  %v1410_v22 = vld [vmem:[%s8372_s8 + $0x12d8] sm:$0xff] }
 0x30e   : > { %5811 = vmatprep.subr.bf16.mxu0 %v7009_v35  ;;  %v7175_v35 = vcombine.high %v1265_v27, %v1277_v28  ;;  %v7297_v18 = vcombine.high %v1386_v10, %v1398_v11 }
 0x310   : > { %5730 = vmatpush1.bf16.msra.mxu1 %v7006_v39  ;;  %v1302_v39 = vld [vmem:[%s8372_s8 + $0xf78] sm:$0xff] }
 0x311   : > { %5812 = vmatpush1.bf16.msra.mxu0 %v7008_v41  ;;  %5731 = vmatprep.subr.bf16.mxu1 %v7031_v42  ;;  %v7174_v41 = vcombine.low %v1265_v27, %v1277_v28  ;;  %v7176_v42 = vcombine.low %v1266_v29, %v1278_v30  ;;  %v7201_v44 = vcombine.high %v1290_v13, %v1302_v39  ;;  %v1433_v28 = vld [vmem:[%s8372_s8 + $0x1390] sm:$0xff]  ;;  %v1434_v30 = vld [vmem:[%s8372_s8 + $0x1398] sm:$0xff] }
 0x312   : > { %5813 = vmatprep.subr.bf16.mxu0 %v7033_v43  ;;  %v7199_v43 = vcombine.high %v1289_v37, %v1301_v38  ;;  %v1445_v29 = vld [vmem:[%s8372_s8 + $0x13f0] sm:$0xff] }
 0x314   : > { %5732 = vmatpush1.bf16.msra.mxu1 %v7030_v19  ;;  %v1326_v19 = vld [vmem:[%s8372_s8 + $0x1038] sm:$0xff] }
 0x315   : > { %5814 = vmatpush1.bf16.msra.mxu0 %v7032_v48  ;;  %5733 = vmatprep.subr.bf16.mxu1 %v7055_v49  ;;  %v7198_v48 = vcombine.low %v1289_v37, %v1301_v38  ;;  %v7200_v49 = vcombine.low %v1290_v13, %v1302_v39  ;;  %v7225_v51 = vcombine.high %v1314_v47, %v1326_v19  ;;  %v1457_v38 = vld [vmem:[%s8372_s8 + $0x1450] sm:$0xff]  ;;  %v1458_v39 = vld [vmem:[%s8372_s8 + $0x1458] sm:$0xff] }
 0x316   : > { %5815 = vmatprep.subr.bf16.mxu0 %v7057_v50  ;;  %v7223_v50 = vcombine.high %v1313_v45, %v1325_v46  ;;  %v1469_v13 = vld [vmem:[%s8372_s8 + $0x14b0] sm:$0xff] }
 0x318   : > { %5734 = vmatpush1.bf16.msra.mxu1 %v7054_v56  ;;  %v1350_v56 = vld [vmem:[%s8372_s8 + $0x10f8] sm:$0xff] }
 0x319   : > { %5816 = vmatpush1.bf16.msra.mxu0 %v7056_v57  ;;  %5735 = vmatprep.subr.bf16.mxu1 %v7079_v58  ;;  %v7222_v57 = vcombine.low %v1313_v45, %v1325_v46  ;;  %v7224_v58 = vcombine.low %v1314_v47, %v1326_v19  ;;  %v7249_v63 = vcombine.high %v1338_v55, %v1350_v56  ;;  %v1481_v46 = vld [vmem:[%s8372_s8 + $0x1510] sm:$0xff]  ;;  %v1482_v19 = vld [vmem:[%s8372_s8 + $0x1518] sm:$0xff] }
 0x31a   : > { %5817 = vmatprep.subr.bf16.mxu0 %v7081_v61  ;;  %v7247_v61 = vcombine.high %v1337_v52, %v1349_v53  ;;  %v1493_v47 = vld [vmem:[%s8372_s8 + $0x1570] sm:$0xff] }
 0x31c   : > { %5736 = vmatpush1.bf16.msra.mxu1 %v7078_v3  ;;  %v1374_v3 = vld [vmem:[%s8372_s8 + $0x11b8] sm:$0xff] }
 0x31d   : > { %5818 = vmatpush1.bf16.msra.mxu0 %v7080_v4  ;;  %5746 = vmatprep.subr.bf16.mxu1 %v7103_v5  ;;  %v7246_v4 = vcombine.low %v1337_v52, %v1349_v53  ;;  %v7248_v5 = vcombine.low %v1338_v55, %v1350_v56  ;;  %v7273_v7 = vcombine.high %v1362_v2, %v1374_v3  ;;  %v1505_v53 = vld [vmem:[%s8372_s8 + $0x15d0] sm:$0xff]  ;;  %v1506_v56 = vld [vmem:[%s8372_s8 + $0x15d8] sm:$0xff] }
 0x31e   : > { %5828 = vmatprep.subr.bf16.mxu0 %v7105_v6  ;;  %v7271_v6 = vcombine.high %v1361_v0, %v1373_v1  ;;  %v1517_v55 = vld [vmem:[%s8372_s8 + $0x1630] sm:$0xff] }
 0x31f   : > { %5738 = vmatmul.mubr.bf16.vlgmr.msra.gmra.mrb[8].mxu1 %v8478_v33 }
 0x320   : > { %5820 = vmatmul.mubr.bf16.vlgmr.msra.gmra.mrb[8].mxu0 %v8478_v33  ;;  %5747 = vmatpush1.bf16.msra.mxu1 %v7102_v9  ;;  %v1397_v9 = vld [vmem:[%s8372_s8 + $0x1270] sm:$0xff] }
 0x321   : > { %5778 = vmatprep.mubr.bf16.mxu1 %v8486_v40  ;;  %5829 = vmatpush1.bf16.msra.mxu0 %v7104_v12  ;;  %v7270_v12 = vcombine.low %v1361_v0, %v1373_v1  ;;  %v7295_v16 = vcombine.high %v1385_v8, %v1397_v9  ;;  %v1529_v1 = vld [vmem:[%s8372_s8 + $0x1690] sm:$0xff] }
 0x322   : > { %5860 = vmatprep.mubr.bf16.mxu0 %v8486_v40  ;;  %5748 = vmatprep.subr.bf16.mxu1 %v7127_v15  ;;  %v7272_v15 = vcombine.low %v1362_v2, %v1374_v3  ;;  %v1541_v2 = vld [vmem:[%s8372_s8 + $0x16f0] sm:$0xff]  ;;  %v1530_v3 = vld [vmem:[%s8372_s8 + $0x1698] sm:$0xff] }
 0x323   : > { %5830 = vmatprep.subr.bf16.mxu0 %v7129_v20  ;;  %v1409_v20 = vld [vmem:[%s8372_s8 + $0x12d0] sm:$0xff] }
 0x324   : > { %5749 = vmatpush1.bf16.msra.mxu1 %v7126_v23  ;;  %v1422_v23 = vld [vmem:[%s8372_s8 + $0x1338] sm:$0xff] }
 0x325   : > { %5831 = vmatpush1.bf16.msra.mxu0 %v7128_v24  ;;  %5750 = vmatprep.subr.bf16.mxu1 %v7151_v25  ;;  %v7294_v24 = vcombine.low %v1385_v8, %v1397_v9  ;;  %v7296_v25 = vcombine.low %v1386_v10, %v1398_v11  ;;  %v7321_v27 = vcombine.high %v1410_v22, %v1422_v23  ;;  %v1553_v9 = vld [vmem:[%s8372_s8 + $0x1750] sm:$0xff]  ;;  %v1554_v11 = vld [vmem:[%s8372_s8 + $0x1758] sm:$0xff] }
 0x326   : > { %5832 = vmatprep.subr.bf16.mxu0 %v7153_v26  ;;  %v7319_v26 = vcombine.high %v1409_v20, %v1421_v21  ;;  %v1565_v10 = vld [vmem:[%s8372_s8 + $0x17b0] sm:$0xff] }
 0x328   : > { %5751 = vmatpush1.bf16.msra.mxu1 %v7150_v31  ;;  %v1446_v31 = vld [vmem:[%s8372_s8 + $0x13f8] sm:$0xff] }
 0x329   : > { %5833 = vmatpush1.bf16.msra.mxu0 %v7152_v34  ;;  %5752 = vmatprep.subr.bf16.mxu1 %v7175_v35  ;;  %v7318_v34 = vcombine.low %v1409_v20, %v1421_v21  ;;  %v7320_v35 = vcombine.low %v1410_v22, %v1422_v23  ;;  %v7345_v37 = vcombine.high %v1434_v30, %v1446_v31  ;;  %v811_v21 = vld [vmem:[%s8372_s8 + $0x20] sm:$0xff]  ;;  %v812_v23 = vld [vmem:[%s8372_s8 + $0x28] sm:$0xff] }
 0x32a   : > { %5834 = vmatprep.subr.bf16.mxu0 %v7177_v36  ;;  %v7343_v36 = vcombine.high %v1433_v28, %v1445_v29  ;;  %v823_v22 = vld [vmem:[%s8372_s8 + $0x80] sm:$0xff] }
 0x32c   : > { %5753 = vmatpush1.bf16.msra.mxu1 %v7174_v41  ;;  %v1470_v41 = vld [vmem:[%s8372_s8 + $0x14b8] sm:$0xff] }
 0x32d   : > { %5835 = vmatpush1.bf16.msra.mxu0 %v7176_v42  ;;  %5754 = vmatprep.subr.bf16.mxu1 %v7199_v43  ;;  %v7342_v42 = vcombine.low %v1433_v28, %v1445_v29  ;;  %v7344_v43 = vcombine.low %v1434_v30, %v1446_v31  ;;  %v7369_v45 = vcombine.high %v1458_v39, %v1470_v41  ;;  %v835_v29 = vld [vmem:[%s8372_s8 + $0xe0] sm:$0xff] }
 0x32e   : > { %5836 = vmatprep.subr.bf16.mxu0 %v7201_v44  ;;  %v7367_v44 = vcombine.high %v1457_v38, %v1469_v13  ;;  %v847_v30 = vld [vmem:[%s8372_s8 + $0x140] sm:$0xff]  ;;  %v6722_v31 = vcombine.low %v811_v21, %v823_v22 }
 0x330   : > { %5755 = vmatpush1.bf16.msra.mxu1 %v7198_v48  ;;  %v1494_v48 = vld [vmem:[%s8372_s8 + $0x1578] sm:$0xff] }
 0x331   : > { %5837 = vmatpush1.bf16.msra.mxu0 %v7200_v49  ;;  %5756 = vmatprep.subr.bf16.mxu1 %v7223_v50  ;;  %v7366_v49 = vcombine.low %v1457_v38, %v1469_v13  ;;  %v7368_v50 = vcombine.low %v1458_v39, %v1470_v41  ;;  %v7393_v52 = vcombine.high %v1482_v19, %v1494_v48  ;;  %v859_v38 = vld [vmem:[%s8372_s8 + $0x1a0] sm:$0xff]  ;;  %v860_v41 = vld [vmem:[%s8372_s8 + $0x1a8] sm:$0xff] }
 0x332   : > { %5838 = vmatprep.subr.bf16.mxu0 %v7225_v51  ;;  %v7391_v51 = vcombine.high %v1481_v46, %v1493_v47  ;;  %v871_v13 = vld [vmem:[%s8372_s8 + $0x200] sm:$0xff] }
 0x334   : > { %5757 = vmatpush1.bf16.msra.mxu1 %v7222_v57  ;;  %v1518_v57 = vld [vmem:[%s8372_s8 + $0x1638] sm:$0xff] }
 0x335   : > { %5839 = vmatpush1.bf16.msra.mxu0 %v7224_v58  ;;  %5758 = vmatprep.subr.bf16.mxu1 %v7247_v61  ;;  %v7390_v58 = vcombine.low %v1481_v46, %v1493_v47  ;;  %v7392_v61 = vcombine.low %v1482_v19, %v1494_v48  ;;  %v7417_v0 = vcombine.high %v1506_v56, %v1518_v57  ;;  %v883_v47 = vld [vmem:[%s8372_s8 + $0x260] sm:$0xff]  ;;  %v884_v48 = vld [vmem:[%s8372_s8 + $0x268] sm:$0xff] }
 0x336   : > { %5840 = vmatprep.subr.bf16.mxu0 %v7249_v63  ;;  %v7415_v63 = vcombine.high %v1505_v53, %v1517_v55  ;;  %v895_v19 = vld [vmem:[%s8372_s8 + $0x2c0] sm:$0xff] }
 0x338   : > { %5759 = vmatpush1.bf16.msra.mxu1 %v7246_v4  ;;  %v1542_v4 = vld [vmem:[%s8372_s8 + $0x16f8] sm:$0xff] }
 0x339   : > { %5841 = vmatpush1.bf16.msra.mxu0 %v7248_v5  ;;  %5760 = vmatprep.subr.bf16.mxu1 %v7271_v6  ;;  %v7414_v5 = vcombine.low %v1505_v53, %v1517_v55  ;;  %v7416_v6 = vcombine.low %v1506_v56, %v1518_v57  ;;  %v7441_v8 = vcombine.high %v1530_v3, %v1542_v4  ;;  %v907_v55 = vld [vmem:[%s8372_s8 + $0x320] sm:$0xff]  ;;  %v908_v57 = vld [vmem:[%s8372_s8 + $0x328] sm:$0xff] }
 0x33a   : > { %5842 = vmatprep.subr.bf16.mxu0 %v7273_v7  ;;  %v7439_v7 = vcombine.high %v1529_v1, %v1541_v2  ;;  %v919_v56 = vld [vmem:[%s8372_s8 + $0x380] sm:$0xff] }
 0x33c   : > { %5761 = vmatpush1.bf16.msra.mxu1 %v7270_v12  ;;  %v1566_v12 = vld [vmem:[%s8372_s8 + $0x17b8] sm:$0xff] }
 0x33d   : > { %5843 = vmatpush1.bf16.msra.mxu0 %v7272_v15  ;;  %5762 = vmatprep.subr.bf16.mxu1 %v7295_v16  ;;  %v7438_v15 = vcombine.low %v1529_v1, %v1541_v2  ;;  %v7440_v16 = vcombine.low %v1530_v3, %v1542_v4  ;;  %v7465_v20 = vcombine.high %v1554_v11, %v1566_v12  ;;  %v931_v2 = vld [vmem:[%s8372_s8 + $0x3e0] sm:$0xff]  ;;  %v932_v4 = vld [vmem:[%s8372_s8 + $0x3e8] sm:$0xff] }
 0x33e   : > { %5844 = vmatprep.subr.bf16.mxu0 %v7297_v18  ;;  %v7463_v18 = vcombine.high %v1553_v9, %v1565_v10  ;;  %v943_v3 = vld [vmem:[%s8372_s8 + $0x440] sm:$0xff] }
 0x340   : > { %5763 = vmatpush1.bf16.msra.mxu1 %v7294_v24  ;;  %v824_v24 = vld [vmem:[%s8372_s8 + $0x88] sm:$0xff] }
 0x341   : > { %5845 = vmatpush1.bf16.msra.mxu0 %v7296_v25  ;;  %5764 = vmatprep.subr.bf16.mxu1 %v7319_v26  ;;  %v7462_v25 = vcombine.low %v1553_v9, %v1565_v10  ;;  %v7464_v26 = vcombine.low %v1554_v11, %v1566_v12  ;;  %v6725_v28 = vcombine.high %v812_v23, %v824_v24  ;;  %v955_v10 = vld [vmem:[%s8372_s8 + $0x4a0] sm:$0xff]  ;;  %v956_v12 = vld [vmem:[%s8372_s8 + $0x4a8] sm:$0xff] }
 0x342   : > { %5846 = vmatprep.subr.bf16.mxu0 %v7321_v27  ;;  %v6723_v27 = vcombine.high %v811_v21, %v823_v22  ;;  %v967_v11 = vld [vmem:[%s8372_s8 + $0x500] sm:$0xff] }
 0x343   : > { %v979_v22 = vld [vmem:[%s8372_s8 + $0x560] sm:$0xff] }
 0x344   : > { %5765 = vmatpush1.bf16.msra.mxu1 %v7318_v34  ;;  %v836_v34 = vld [vmem:[%s8372_s8 + $0xe8] sm:$0xff] }
 0x345   : > { %5847 = vmatpush1.bf16.msra.mxu0 %v7320_v35  ;;  %5766 = vmatprep.subr.bf16.mxu1 %v7343_v36  ;;  %v848_v35 = vld [vmem:[%s8372_s8 + $0x148] sm:$0xff]  ;;  %v6724_v36 = vcombine.low %v812_v23, %v824_v24  ;;  %v991_v23 = vld [vmem:[%s8372_s8 + $0x5c0] sm:$0xff] }
 0x346   : > { %5848 = vmatprep.subr.bf16.mxu0 %v7345_v37  ;;  %v6747_v37 = vcombine.high %v835_v29, %v847_v30  ;;  %v6749_v39 = vcombine.high %v836_v34, %v848_v35  ;;  %v980_v24 = vld [vmem:[%s8372_s8 + $0x568] sm:$0xff] }
 0x348   : > { %5767 = vmatpush1.bf16.msra.mxu1 %v7342_v42  ;;  %v872_v42 = vld [vmem:[%s8372_s8 + $0x208] sm:$0xff] }
 0x349   : > { %5849 = vmatpush1.bf16.msra.mxu0 %v7344_v43  ;;  %5768 = vmatprep.subr.bf16.mxu1 %v7367_v44  ;;  %v6746_v43 = vcombine.low %v835_v29, %v847_v30  ;;  %v6748_v44 = vcombine.low %v836_v34, %v848_v35  ;;  %v6773_v46 = vcombine.high %v860_v41, %v872_v42  ;;  %v1003_v30 = vld [vmem:[%s8372_s8 + $0x620] sm:$0xff]  ;;  %v1004_v34 = vld [vmem:[%s8372_s8 + $0x628] sm:$0xff] }
 0x34a   : > { %5850 = vmatprep.subr.bf16.mxu0 %v7369_v45  ;;  %v6771_v45 = vcombine.high %v859_v38, %v871_v13  ;;  %v1016_v35 = vld [vmem:[%s8372_s8 + $0x688] sm:$0xff] }
 0x34c   : > { %5769 = vmatpush1.bf16.msra.mxu1 %v7366_v49  ;;  %v896_v49 = vld [vmem:[%s8372_s8 + $0x2c8] sm:$0xff] }
 0x34d   : > { %5851 = vmatpush1.bf16.msra.mxu0 %v7368_v50  ;;  %5770 = vmatprep.subr.bf16.mxu1 %v7391_v51  ;;  %v6770_v50 = vcombine.low %v859_v38, %v871_v13  ;;  %v6772_v51 = vcombine.low %v860_v41, %v872_v42  ;;  %v6797_v53 = vcombine.high %v884_v48, %v896_v49  ;;  %v1039_v41 = vld [vmem:[%s8372_s8 + $0x740] sm:$0xff]  ;;  %v1028_v42 = vld [vmem:[%s8372_s8 + $0x6e8] sm:$0xff] }
 0x34e   : > { %5852 = vmatprep.subr.bf16.mxu0 %v7393_v52  ;;  %v6795_v52 = vcombine.high %v883_v47, %v895_v19  ;;  %v6917_v13 = vcombine.high %v1004_v34, %v1016_v35 }
 0x350   : > { %5771 = vmatpush1.bf16.msra.mxu1 %v7390_v58  ;;  %v920_v58 = vld [vmem:[%s8372_s8 + $0x388] sm:$0xff] }
 0x351   : > { %5853 = vmatpush1.bf16.msra.mxu0 %v7392_v61  ;;  %5772 = vmatprep.subr.bf16.mxu1 %v7415_v63  ;;  %v6794_v61 = vcombine.low %v883_v47, %v895_v19  ;;  %v6796_v63 = vcombine.low %v884_v48, %v896_v49  ;;  %v6821_v1 = vcombine.high %v908_v57, %v920_v58  ;;  %v1051_v19 = vld [vmem:[%s8372_s8 + $0x7a0] sm:$0xff]  ;;  %v1052_v49 = vld [vmem:[%s8372_s8 + $0x7a8] sm:$0xff] }
 0x352   : > { %5854 = vmatprep.subr.bf16.mxu0 %v7417_v0  ;;  %v6819_v0 = vcombine.high %v907_v55, %v919_v56  ;;  %v1063_v48 = vld [vmem:[%s8372_s8 + $0x800] sm:$0xff] }
 0x354   : > { %5773 = vmatpush1.bf16.msra.mxu1 %v7414_v5  ;;  %v944_v5 = vld [vmem:[%s8372_s8 + $0x448] sm:$0xff] }
 0x355   : > { %5855 = vmatpush1.bf16.msra.mxu0 %v7416_v6  ;;  %5774 = vmatprep.subr.bf16.mxu1 %v7439_v7  ;;  %v6818_v6 = vcombine.low %v907_v55, %v919_v56  ;;  %v6820_v7 = vcombine.low %v908_v57, %v920_v58  ;;  %v6845_v9 = vcombine.high %v932_v4, %v944_v5  ;;  %v1075_v56 = vld [vmem:[%s8372_s8 + $0x860] sm:$0xff]  ;;  %v1076_v58 = vld [vmem:[%s8372_s8 + $0x868] sm:$0xff] }
 0x356   : > { %5856 = vmatprep.subr.bf16.mxu0 %v7441_v8  ;;  %v6843_v8 = vcombine.high %v931_v2, %v943_v3  ;;  %v1087_v57 = vld [vmem:[%s8372_s8 + $0x8c0] sm:$0xff] }
 0x358   : > { %5775 = vmatpush1.bf16.msra.mxu1 %v7438_v15  ;;  %v968_v15 = vld [vmem:[%s8372_s8 + $0x508] sm:$0xff] }
 0x359   : > { %5857 = vmatpush1.bf16.msra.mxu0 %v7440_v16  ;;  %5776 = vmatprep.subr.bf16.mxu1 %v7463_v18  ;;  %v6842_v16 = vcombine.low %v931_v2, %v943_v3  ;;  %v6844_v18 = vcombine.low %v932_v4, %v944_v5  ;;  %v6869_v21 = vcombine.high %v956_v12, %v968_v15  ;;  %v1099_v3 = vld [vmem:[%s8372_s8 + $0x920] sm:$0xff]  ;;  %v1100_v5 = vld [vmem:[%s8372_s8 + $0x928] sm:$0xff] }
 0x35a   : > { %5858 = vmatprep.subr.bf16.mxu0 %v7465_v20  ;;  %v6867_v20 = vcombine.high %v955_v10, %v967_v11  ;;  %v1111_v4 = vld [vmem:[%s8372_s8 + $0x980] sm:$0xff] }
 0x35c   : > { %5777 = vmatpush1.bf16.msra.mxu1 %v7462_v25  ;;  %v992_v25 = vld [vmem:[%s8372_s8 + $0x5c8] sm:$0xff] }
 0x35d   : > { %5859 = vmatpush1.bf16.msra.mxu0 %v7464_v26  ;;  %5869 = vmatprep.subr.bf16.mxu1 %v6723_v27  ;;  %v6866_v26 = vcombine.low %v955_v10, %v967_v11  ;;  %v6868_v27 = vcombine.low %v956_v12, %v968_v15  ;;  %v6893_v29 = vcombine.high %v980_v24, %v992_v25  ;;  %v1123_v11 = vld [vmem:[%s8372_s8 + $0x9e0] sm:$0xff]  ;;  %v1124_v15 = vld [vmem:[%s8372_s8 + $0x9e8] sm:$0xff] }
 0x35e   : > { %5951 = vmatprep.subr.bf16.mxu0 %v6725_v28  ;;  %v6891_v28 = vcombine.high %v979_v22, %v991_v23  ;;  %v1135_v12 = vld [vmem:[%s8372_s8 + $0xa40] sm:$0xff] }
 0x35f   : > { %5779 = vmatmul.mubr.bf16.vlgmr.msra.gmra.mrb[8].mxu1 %v8558_v54 }
 0x360   : > { %5861 = vmatmul.mubr.bf16.vlgmr.msra.gmra.mrb[8].mxu0 %v8558_v54  ;;  %5870 = vmatpush1.bf16.msra.mxu1 %v6722_v31  ;;  %v1015_v31 = vld [vmem:[%s8372_s8 + $0x680] sm:$0xff] }
 0x361   : > { %5901 = vmatprep.mubr.bf16.mxu1 %v8476_v32  ;;  %5952 = vmatpush1.bf16.msra.mxu0 %v6724_v36  ;;  %v6890_v36 = vcombine.low %v979_v22, %v991_v23  ;;  %v6915_v38 = vcombine.high %v1003_v30, %v1015_v31  ;;  %v1147_v23 = vld [vmem:[%s8372_s8 + $0xaa0] sm:$0xff] }
 0x362   : > { %5983 = vmatprep.mubr.bf16.mxu0 %v8476_v32  ;;  %5871 = vmatprep.subr.bf16.mxu1 %v6747_v37  ;;  %v6892_v37 = vcombine.low %v980_v24, %v992_v25  ;;  %v1159_v24 = vld [vmem:[%s8372_s8 + $0xb00] sm:$0xff]  ;;  %v1148_v25 = vld [vmem:[%s8372_s8 + $0xaa8] sm:$0xff] }
 0x363   : > { %5953 = vmatprep.subr.bf16.mxu0 %v6749_v39  ;;  %v1027_v39 = vld [vmem:[%s8372_s8 + $0x6e0] sm:$0xff] }
 0x364   : > { %5872 = vmatpush1.bf16.msra.mxu1 %v6746_v43  ;;  %v1040_v43 = vld [vmem:[%s8372_s8 + $0x748] sm:$0xff] }
 0x365   : > { %5954 = vmatpush1.bf16.msra.mxu0 %v6748_v44  ;;  %5873 = vmatprep.subr.bf16.mxu1 %v6771_v45  ;;  %v6914_v44 = vcombine.low %v1003_v30, %v1015_v31  ;;  %v6916_v45 = vcombine.low %v1004_v34, %v1016_v35  ;;  %v6941_v47 = vcombine.high %v1028_v42, %v1040_v43  ;;  %v1171_v31 = vld [vmem:[%s8372_s8 + $0xb60] sm:$0xff]  ;;  %v1172_v35 = vld [vmem:[%s8372_s8 + $0xb68] sm:$0xff] }
 0x366   : > { %5955 = vmatprep.subr.bf16.mxu0 %v6773_v46  ;;  %v6939_v46 = vcombine.high %v1027_v39, %v1039_v41  ;;  %v1183_v34 = vld [vmem:[%s8372_s8 + $0xbc0] sm:$0xff] }
 0x368   : > { %5874 = vmatpush1.bf16.msra.mxu1 %v6770_v50  ;;  %v1064_v50 = vld [vmem:[%s8372_s8 + $0x808] sm:$0xff] }
 0x369   : > { %5956 = vmatpush1.bf16.msra.mxu0 %v6772_v51  ;;  %5875 = vmatprep.subr.bf16.mxu1 %v6795_v52  ;;  %v6938_v51 = vcombine.low %v1027_v39, %v1039_v41  ;;  %v6940_v52 = vcombine.low %v1028_v42, %v1040_v43  ;;  %v6965_v55 = vcombine.high %v1052_v49, %v1064_v50  ;;  %v1195_v41 = vld [vmem:[%s8372_s8 + $0xc20] sm:$0xff]  ;;  %v1196_v43 = vld [vmem:[%s8372_s8 + $0xc28] sm:$0xff] }
 0x36a   : > { %5957 = vmatprep.subr.bf16.mxu0 %v6797_v53  ;;  %v6963_v53 = vcombine.high %v1051_v19, %v1063_v48  ;;  %v1207_v42 = vld [vmem:[%s8372_s8 + $0xc80] sm:$0xff] }
 0x36c   : > { %5876 = vmatpush1.bf16.msra.mxu1 %v6794_v61  ;;  %v1088_v61 = vld [vmem:[%s8372_s8 + $0x8c8] sm:$0xff] }
 0x36d   : > { %5958 = vmatpush1.bf16.msra.mxu0 %v6796_v63  ;;  %5877 = vmatprep.subr.bf16.mxu1 %v6819_v0  ;;  %v6962_v63 = vcombine.low %v1051_v19, %v1063_v48  ;;  %v6964_v0 = vcombine.low %v1052_v49, %v1064_v50  ;;  %v6989_v2 = vcombine.high %v1076_v58, %v1088_v61  ;;  %v1219_v48 = vld [vmem:[%s8372_s8 + $0xce0] sm:$0xff] }
 0x36e   : > { %5959 = vmatprep.subr.bf16.mxu0 %v6821_v1  ;;  %v6987_v1 = vcombine.high %v1075_v56, %v1087_v57  ;;  %v1231_v49 = vld [vmem:[%s8372_s8 + $0xd40] sm:$0xff]  ;;  %v7106_v50 = vcombine.low %v1195_v41, %v1207_v42 }
 0x370   : > { %5878 = vmatpush1.bf16.msra.mxu1 %v6818_v6  ;;  %v1112_v6 = vld [vmem:[%s8372_s8 + $0x988] sm:$0xff] }
 0x371   : > { %5960 = vmatpush1.bf16.msra.mxu0 %v6820_v7  ;;  %5879 = vmatprep.subr.bf16.mxu1 %v6843_v8  ;;  %v6986_v7 = vcombine.low %v1075_v56, %v1087_v57  ;;  %v6988_v8 = vcombine.low %v1076_v58, %v1088_v61  ;;  %v7013_v10 = vcombine.high %v1100_v5, %v1112_v6  ;;  %v1243_v56 = vld [vmem:[%s8372_s8 + $0xda0] sm:$0xff]  ;;  %v1244_v61 = vld [vmem:[%s8372_s8 + $0xda8] sm:$0xff] }
 0x372   : > { %5961 = vmatprep.subr.bf16.mxu0 %v6845_v9  ;;  %v7011_v9 = vcombine.high %v1099_v3, %v1111_v4  ;;  %v1255_v57 = vld [vmem:[%s8372_s8 + $0xe00] sm:$0xff] }
 0x374   : > { %5880 = vmatpush1.bf16.msra.mxu1 %v6842_v16  ;;  %v1136_v16 = vld [vmem:[%s8372_s8 + $0xa48] sm:$0xff] }
 0x375   : > { %5962 = vmatpush1.bf16.msra.mxu0 %v6844_v18  ;;  %5881 = vmatprep.subr.bf16.mxu1 %v6867_v20  ;;  %v7010_v18 = vcombine.low %v1099_v3, %v1111_v4  ;;  %v7012_v20 = vcombine.low %v1100_v5, %v1112_v6  ;;  %v7037_v22 = vcombine.high %v1124_v15, %v1136_v16  ;;  %v1267_v4 = vld [vmem:[%s8372_s8 + $0xe60] sm:$0xff]  ;;  %v1268_v6 = vld [vmem:[%s8372_s8 + $0xe68] sm:$0xff] }
 0x376   : > { %5963 = vmatprep.subr.bf16.mxu0 %v6869_v21  ;;  %v7035_v21 = vcombine.high %v1123_v11, %v1135_v12  ;;  %v1279_v5 = vld [vmem:[%s8372_s8 + $0xec0] sm:$0xff] }
 0x378   : > { %5882 = vmatpush1.bf16.msra.mxu1 %v6866_v26  ;;  %v1160_v26 = vld [vmem:[%s8372_s8 + $0xb08] sm:$0xff] }
 0x379   : > { %5964 = vmatpush1.bf16.msra.mxu0 %v6868_v27  ;;  %5883 = vmatprep.subr.bf16.mxu1 %v6891_v28  ;;  %v7034_v27 = vcombine.low %v1123_v11, %v1135_v12  ;;  %v7036_v28 = vcombine.low %v1124_v15, %v1136_v16  ;;  %v7061_v30 = vcombine.high %v1148_v25, %v1160_v26  ;;  %v1291_v12 = vld [vmem:[%s8372_s8 + $0xf20] sm:$0xff]  ;;  %v1292_v16 = vld [vmem:[%s8372_s8 + $0xf28] sm:$0xff] }
 0x37a   : > { %5965 = vmatprep.subr.bf16.mxu0 %v6893_v29  ;;  %v7059_v29 = vcombine.high %v1147_v23, %v1159_v24  ;;  %v1303_v15 = vld [vmem:[%s8372_s8 + $0xf80] sm:$0xff] }
 0x37c   : > { %5884 = vmatpush1.bf16.msra.mxu1 %v6890_v36  ;;  %v1184_v36 = vld [vmem:[%s8372_s8 + $0xbc8] sm:$0xff] }
 0x37d   : > { %5966 = vmatpush1.bf16.msra.mxu0 %v6892_v37  ;;  %5885 = vmatprep.subr.bf16.mxu1 %v6915_v38  ;;  %v7058_v37 = vcombine.low %v1147_v23, %v1159_v24  ;;  %v7060_v38 = vcombine.low %v1148_v25, %v1160_v26  ;;  %v7085_v39 = vcombine.high %v1172_v35, %v1184_v36  ;;  %v1315_v24 = vld [vmem:[%s8372_s8 + $0xfe0] sm:$0xff]  ;;  %v1316_v26 = vld [vmem:[%s8372_s8 + $0xfe8] sm:$0xff] }
 0x37e   : > { %5967 = vmatprep.subr.bf16.mxu0 %v6917_v13  ;;  %v7083_v13 = vcombine.high %v1171_v31, %v1183_v34  ;;  %v1327_v25 = vld [vmem:[%s8372_s8 + $0x1040] sm:$0xff] }
 0x380   : > { %5886 = vmatpush1.bf16.msra.mxu1 %v6914_v44  ;;  %v1208_v44 = vld [vmem:[%s8372_s8 + $0xc88] sm:$0xff] }
 0x381   : > { %5968 = vmatpush1.bf16.msra.mxu0 %v6916_v45  ;;  %5887 = vmatprep.subr.bf16.mxu1 %v6939_v46  ;;  %v7082_v45 = vcombine.low %v1171_v31, %v1183_v34  ;;  %v7084_v46 = vcombine.low %v1172_v35, %v1184_v36  ;;  %v7109_v19 = vcombine.high %v1196_v43, %v1208_v44  ;;  %v1339_v35 = vld [vmem:[%s8372_s8 + $0x10a0] sm:$0xff] }
 0x382   : > { %5969 = vmatprep.subr.bf16.mxu0 %v6941_v47  ;;  %v7107_v47 = vcombine.high %v1195_v41, %v1207_v42  ;;  %v7227_v31 = vcombine.high %v1315_v24, %v1327_v25  ;;  %v1351_v36 = vld [vmem:[%s8372_s8 + $0x1100] sm:$0xff] }
 0x384   : > { %5888 = vmatpush1.bf16.msra.mxu1 %v6938_v51  ;;  %v1220_v51 = vld [vmem:[%s8372_s8 + $0xce8] sm:$0xff] }
 0x385   : > { %5970 = vmatpush1.bf16.msra.mxu0 %v6940_v52  ;;  %5889 = vmatprep.subr.bf16.mxu1 %v6963_v53  ;;  %v1232_v52 = vld [vmem:[%s8372_s8 + $0xd48] sm:$0xff]  ;;  %v7108_v53 = vcombine.low %v1196_v43, %v1208_v44  ;;  %v7226_v43 = vcombine.low %v1315_v24, %v1327_v25 }
 0x386   : > { %5971 = vmatprep.subr.bf16.mxu0 %v6965_v55  ;;  %v7131_v55 = vcombine.high %v1219_v48, %v1231_v49  ;;  %v7133_v58 = vcombine.high %v1220_v51, %v1232_v52 }
 0x388   : > { %5890 = vmatpush1.bf16.msra.mxu1 %v6962_v63  ;;  %v1256_v63 = vld [vmem:[%s8372_s8 + $0xe08] sm:$0xff] }
 0x389   : > { %5972 = vmatpush1.bf16.msra.mxu0 %v6964_v0  ;;  %5891 = vmatprep.subr.bf16.mxu1 %v6987_v1  ;;  %v7130_v0 = vcombine.low %v1219_v48, %v1231_v49  ;;  %v7132_v1 = vcombine.low %v1220_v51, %v1232_v52  ;;  %v7157_v3 = vcombine.high %v1244_v61, %v1256_v63  ;;  %v1363_v48 = vld [vmem:[%s8372_s8 + $0x1160] sm:$0xff] }
 0x38a   : > { %5973 = vmatprep.subr.bf16.mxu0 %v6989_v2  ;;  %v7155_v2 = vcombine.high %v1243_v56, %v1255_v57  ;;  %v1375_v49 = vld [vmem:[%s8372_s8 + $0x11c0] sm:$0xff] }
 0x38c   : > { %5892 = vmatpush1.bf16.msra.mxu1 %v6986_v7  ;;  %v1280_v7 = vld [vmem:[%s8372_s8 + $0xec8] sm:$0xff] }
 0x38d   : > { %5974 = vmatpush1.bf16.msra.mxu0 %v6988_v8  ;;  %5893 = vmatprep.subr.bf16.mxu1 %v7011_v9  ;;  %v7154_v8 = vcombine.low %v1243_v56, %v1255_v57  ;;  %v7156_v9 = vcombine.low %v1244_v61, %v1256_v63  ;;  %v7181_v11 = vcombine.high %v1268_v6, %v1280_v7  ;;  %v1376_v56 = vld [vmem:[%s8372_s8 + $0x11c8] sm:$0xff] }
 0x38e   : > { %5975 = vmatprep.subr.bf16.mxu0 %v7013_v10  ;;  %v7179_v10 = vcombine.high %v1267_v4, %v1279_v5 }
 0x390   : > { %5894 = vmatpush1.bf16.msra.mxu1 %v7010_v18  ;;  %v1304_v18 = vld [vmem:[%s8372_s8 + $0xf88] sm:$0xff] }
 0x391   : > { %5976 = vmatpush1.bf16.msra.mxu0 %v7012_v20  ;;  %5895 = vmatprep.subr.bf16.mxu1 %v7035_v21  ;;  %v7178_v20 = vcombine.low %v1267_v4, %v1279_v5  ;;  %v7180_v21 = vcombine.low %v1268_v6, %v1280_v7  ;;  %v7205_v23 = vcombine.high %v1292_v16, %v1304_v18  ;;  %v1387_v6 = vld [vmem:[%s8372_s8 + $0x1220] sm:$0xff] }
 0x392   : > { %5977 = vmatprep.subr.bf16.mxu0 %v7037_v22  ;;  %v7203_v22 = vcombine.high %v1291_v12, %v1303_v15  ;;  %v7275_v4 = vcombine.high %v1363_v48, %v1375_v49  ;;  %v1399_v7 = vld [vmem:[%s8372_s8 + $0x1280] sm:$0xff] }
 0x394   : > { %5896 = vmatpush1.bf16.msra.mxu1 %v7034_v27  ;;  %v1328_v27 = vld [vmem:[%s8372_s8 + $0x1048] sm:$0xff] }
 0x395   : > { %5978 = vmatpush1.bf16.msra.mxu0 %v7036_v28  ;;  %5897 = vmatprep.subr.bf16.mxu1 %v7059_v29  ;;  %v7202_v28 = vcombine.low %v1291_v12, %v1303_v15  ;;  %v8789_v29 = vld [vmem:[%s8786_s5] sm:$0xff]  ;;  %v7229_v34 = vcombine.high %v1316_v26, %v1328_v27  ;;  %v7228_v44 = vcombine.low %v1316_v26, %v1328_v27 }
 0x396   : > { %5979 = vmatprep.subr.bf16.mxu0 %v7061_v30  ;;  %v7204_v30 = vcombine.low %v1292_v16, %v1304_v18  ;;  %v1588_v41 = vrot.slane %v8789_v29, %v8391_v62  ;;  %v1596_v42 = vrot.slane %v8789_v29, %v8462_v14  ;;  %v7299_v12 = vcombine.high %v1387_v6, %v1399_v7  ;;  %v1411_v16 = vld [vmem:[%s8372_s8 + $0x12e0] sm:$0xff] }
 0x397   : > { %v1423_v18 = vld [vmem:[%s8372_s8 + $0x1340] sm:$0xff] }
 0x398   : > { %5898 = vmatpush1.bf16.msra.mxu1 %v7058_v37  ;;  %v1584_v37 = vrot.slane %v8789_v29, %v8388_v60  ;;  %v7323_v24 = vcombine.high %v1411_v16, %v1423_v18  ;;  %v1435_v26 = vld [vmem:[%s8372_s8 + $0x13a0] sm:$0xff] }
 0x399   : > { %5980 = vmatpush1.bf16.msra.mxu0 %v7060_v38  ;;  %5899 = vmatprep.subr.bf16.mxu1 %v7083_v13  ;;  %v1592_v38 = vrot.slane %v8789_v29, %v8537_v17  ;;  %v1340_v13 = vld [vmem:[%s8372_s8 + $0x10a8] sm:$0xff]  ;;  %v1447_v27 = vld [vmem:[%s8372_s8 + $0x1400] sm:$0xff] }
 0x39a   : > { %5981 = vmatprep.subr.bf16.mxu0 %v7085_v39  ;;  %v1352_v39 = vld [vmem:[%s8372_s8 + $0x1108] sm:$0xff] }
 0x39c   : > { %5900 = vmatpush1.bf16.msra.mxu1 %v7082_v45  ;;  %v7251_v45 = vcombine.high %v1339_v35, %v1351_v36 }
 0x39d   : > { %5982 = vmatpush1.bf16.msra.mxu0 %v7084_v46  ;;  %5910 = vmatprep.subr.bf16.mxu1 %v7107_v47 }
 0x39e   : > { %5992 = vmatprep.subr.bf16.mxu0 %v7109_v19  ;;  %v7253_v19 = vcombine.high %v1340_v13, %v1352_v39 }
 0x39f   : > { %5902 = vmatmul.mubr.bf16.vlgmr.msra.gmra.mrb[12].mxu1 %v8478_v33 }
 0x3a0   : > { %5984 = vmatmul.mubr.bf16.vlgmr.msra.gmra.mrb[12].mxu0 %v8478_v33  ;;  %5911 = vmatpush1.bf16.msra.mxu1 %v7106_v50 }
 0x3a1   : > { %5942 = vmatprep.mubr.bf16.mxu1 %v8486_v40  ;;  %5993 = vmatpush1.bf16.msra.mxu0 %v7108_v53 }
 0x3a2   : > { %6024 = vmatprep.mubr.bf16.mxu0 %v8486_v40  ;;  %5912 = vmatprep.subr.bf16.mxu1 %v7131_v55  ;;  %v1364_v55 = vld [vmem:[%s8372_s8 + $0x1168] sm:$0xff] }
 0x3a3   : > { %5994 = vmatprep.subr.bf16.mxu0 %v7133_v58  ;;  %v7277_v5 = vcombine.high %v1364_v55, %v1376_v56 }
 0x3a4   : > { %5913 = vmatpush1.bf16.msra.mxu1 %v7130_v0  ;;  %v7250_v0 = vcombine.low %v1339_v35, %v1351_v36  ;;  %v7322_v35 = vcombine.low %v1411_v16, %v1423_v18  ;;  %v1556_v16 = vld [vmem:[%s8372_s8 + $0x1768] sm:$0xff] }
 0x3a5   : > { %5995 = vmatpush1.bf16.msra.mxu0 %v7132_v1  ;;  %5914 = vmatprep.subr.bf16.mxu1 %v7155_v2  ;;  %v1568_v18 = vld [vmem:[%s8372_s8 + $0x17c8] sm:$0xff] }
 0x3a6   : > { %5996 = vmatprep.subr.bf16.mxu0 %v7157_v3  ;;  %v7252_v3 = vcombine.low %v1340_v13, %v1352_v39 }
 0x3a8   : > { %5915 = vmatpush1.bf16.msra.mxu1 %v7154_v8  ;;  %v1388_v8 = vld [vmem:[%s8372_s8 + $0x1228] sm:$0xff] }
 0x3a9   : > { %5997 = vmatpush1.bf16.msra.mxu0 %v7156_v9  ;;  %5916 = vmatprep.subr.bf16.mxu1 %v7179_v10  ;;  %v1400_v9 = vld [vmem:[%s8372_s8 + $0x1288] sm:$0xff]  ;;  %v7274_v10 = vcombine.low %v1363_v48, %v1375_v49  ;;  %v1483_v48 = vld [vmem:[%s8372_s8 + $0x1520] sm:$0xff] }
 0x3aa   : > { %5998 = vmatprep.subr.bf16.mxu0 %v7181_v11  ;;  %v7276_v11 = vcombine.low %v1364_v55, %v1376_v56  ;;  %v7301_v15 = vcombine.high %v1388_v8, %v1400_v9  ;;  %v1495_v49 = vld [vmem:[%s8372_s8 + $0x1580] sm:$0xff] }
 0x3ab   : > { %v7395_v55 = vcombine.high %v1483_v48, %v1495_v49 }
 0x3ac   : > { %5917 = vmatpush1.bf16.msra.mxu1 %v7178_v20  ;;  %v1412_v20 = vld [vmem:[%s8372_s8 + $0x12e8] sm:$0xff] }
 0x3ad   : > { %5999 = vmatpush1.bf16.msra.mxu0 %v7180_v21  ;;  %5918 = vmatprep.subr.bf16.mxu1 %v7203_v22  ;;  %v1424_v21 = vld [vmem:[%s8372_s8 + $0x1348] sm:$0xff]  ;;  %v7298_v22 = vcombine.low %v1387_v6, %v1399_v7 }
 0x3ae   : > { %6000 = vmatprep.subr.bf16.mxu0 %v7205_v23  ;;  %v7300_v23 = vcombine.low %v1388_v8, %v1400_v9  ;;  %v7325_v25 = vcombine.high %v1412_v20, %v1424_v21  ;;  %v1532_v6 = vld [vmem:[%s8372_s8 + $0x16a8] sm:$0xff] }
 0x3af   : > { %v1544_v7 = vld [vmem:[%s8372_s8 + $0x1708] sm:$0xff] }
 0x3b0   : > { %5919 = vmatpush1.bf16.msra.mxu1 %v7202_v28 }
 0x3b1   : > { %6001 = vmatpush1.bf16.msra.mxu0 %v7204_v30  ;;  %5920 = vmatprep.subr.bf16.mxu1 %v7227_v31  ;;  %v1436_v30 = vld [vmem:[%s8372_s8 + $0x13a8] sm:$0xff] }
 0x3b2   : > { %v5616_v46 = vpop.f32.mrb[4].mxu1  ;;  %v5698_v47 = vpop.f32.mrb[4].mxu0  ;;  %6002 = vmatprep.subr.bf16.mxu0 %v7229_v34  ;;  %v1448_v31 = vld [vmem:[%s8372_s8 + $0x1408] sm:$0xff] }
 0x3b3   : > { %v7646_v50 = vadd.f32 %v5616_v46, %v1584_v37  ;;  %v7648_v51 = vadd.f32 %v5698_v47, %v1592_v38  ;;  %v5618_v52 = vpop.f32.mrb[5].mxu1  ;;  %v5700_v53 = vpop.f32.mrb[5].mxu0  ;;  %v7324_v37 = vcombine.low %v1412_v20, %v1424_v21  ;;  %v7347_v38 = vcombine.high %v1435_v26, %v1447_v27 }
 0x3b4   : > { %v7647_v57 = vadd.f32 %v5618_v52, %v1588_v41  ;;  %v7649_v58 = vadd.f32 %v5700_v53, %v1596_v42  ;;  %v5620_v61 = vpop.f32.mrb[6].mxu1  ;;  %v5702_v63 = vpop.f32.mrb[6].mxu0  ;;  %5921 = vmatpush1.bf16.msra.mxu1 %v7226_v43  ;;  %v7349_v39 = vcombine.high %v1436_v30, %v1448_v31  ;;  %v1459_v41 = vld [vmem:[%s8372_s8 + $0x1460] sm:$0xff]  ;;  %v1460_v43 = vld [vmem:[%s8372_s8 + $0x1468] sm:$0xff]  ;;  %v7348_v46 = vcombine.low %v1436_v30, %v1448_v31 }
 0x3b5   : > { %7815 = vtanh.f32 %v7646_v50  ;;  %6003 = vmatpush1.bf16.msra.mxu0 %v7228_v44  ;;  %v5621_v1 = vpop.f32.mrb[7].mxu1  ;;  %v5703_v2 = vpop.f32.mrb[7].mxu0  ;;  %5922 = vmatprep.subr.bf16.mxu1 %v7251_v45  ;;  %v1471_v42 = vld [vmem:[%s8372_s8 + $0x14c0] sm:$0xff]  ;;  %v1472_v44 = vld [vmem:[%s8372_s8 + $0x14c8] sm:$0xff]  ;;  %v7346_v45 = vcombine.low %v1435_v26, %v1447_v27  ;;  %v7444_v21 = vcombine.low %v1532_v6, %v1544_v7  ;;  %v814_v26 = vld [vmem:[%s8372_s8 + $0x38] sm:$0xff]  ;;  %v7468_v30 = vcombine.low %v1556_v16, %v1568_v18 }
 0x3b6   : > { %7817 = vtanh.f32 %v7648_v51  ;;  %6004 = vmatprep.subr.bf16.mxu0 %v7253_v19  ;;  %v7371_v47 = vcombine.high %v1459_v41, %v1471_v42  ;;  %v7373_v19 = vcombine.high %v1460_v43, %v1472_v44  ;;  %v1484_v50 = vld [vmem:[%s8372_s8 + $0x1528] sm:$0xff]  ;;  %v7370_v52 = vcombine.low %v1459_v41, %v1471_v42  ;;  %v826_v27 = vld [vmem:[%s8372_s8 + $0x98] sm:$0xff]  ;;  %v861_v42 = vld [vmem:[%s8372_s8 + $0x1b0] sm:$0xff] }
 0x3b7   : > { %7819 = vtanh.f32 %v7647_v57  ;;  %v1496_v51 = vld [vmem:[%s8372_s8 + $0x1588] sm:$0xff]  ;;  %v7372_v53 = vcombine.low %v1460_v43, %v1472_v44  ;;  %v1507_v57 = vld [vmem:[%s8372_s8 + $0x15e0] sm:$0xff]  ;;  %v873_v43 = vld [vmem:[%s8372_s8 + $0x210] sm:$0xff] }
 0x3b8   : > { %7821 = vtanh.f32 %v7649_v58  ;;  %5923 = vmatpush1.bf16.msra.mxu1 %v7250_v0  ;;  %v7397_v56 = vcombine.high %v1484_v50, %v1496_v51  ;;  %v1519_v58 = vld [vmem:[%s8372_s8 + $0x1640] sm:$0xff]  ;;  %v1508_v61 = vld [vmem:[%s8372_s8 + $0x15e8] sm:$0xff]  ;;  %v7394_v0 = vcombine.low %v1483_v48, %v1495_v49  ;;  %v7396_v1 = vcombine.low %v1484_v50, %v1496_v51  ;;  %v885_v50 = vld [vmem:[%s8372_s8 + $0x270] sm:$0xff] }
 0x3b9   : > { %6005 = vmatpush1.bf16.msra.mxu0 %v7252_v3  ;;  %5924 = vmatprep.subr.bf16.mxu1 %v7275_v4  ;;  %v1520_v63 = vld [vmem:[%s8372_s8 + $0x1648] sm:$0xff]  ;;  %v7419_v2 = vcombine.high %v1507_v57, %v1519_v58  ;;  %v1531_v4 = vld [vmem:[%s8372_s8 + $0x16a0] sm:$0xff]  ;;  %v7418_v8 = vcombine.low %v1507_v57, %v1519_v58  ;;  %v6775_v48 = vcombine.high %v861_v42, %v873_v43  ;;  %v897_v51 = vld [vmem:[%s8372_s8 + $0x2d0] sm:$0xff] }
 0x3ba   : > { %6006 = vmatprep.subr.bf16.mxu0 %v7277_v5  ;;  %v7421_v3 = vcombine.high %v1508_v61, %v1520_v63  ;;  %v1543_v5 = vld [vmem:[%s8372_s8 + $0x1700] sm:$0xff]  ;;  %v7420_v9 = vcombine.low %v1508_v61, %v1520_v63  ;;  %v6799_v57 = vcombine.high %v885_v50, %v897_v51  ;;  %v909_v61 = vld [vmem:[%s8372_s8 + $0x330] sm:$0xff] }
 0x3bb   : > { %v7442_v20 = vcombine.low %v1531_v4, %v1543_v5  ;;  %v921_v63 = vld [vmem:[%s8372_s8 + $0x390] sm:$0xff] }
 0x3bc   : > { %5925 = vmatpush1.bf16.msra.mxu1 %v7274_v10  ;;  %v7443_v10 = vcombine.high %v1531_v4, %v1543_v5  ;;  %v6823_v4 = vcombine.high %v909_v61, %v921_v63 }
 0x3bd   : > { %6007 = vmatpush1.bf16.msra.mxu0 %v7276_v11  ;;  %5926 = vmatprep.subr.bf16.mxu1 %v7299_v12  ;;  %v7445_v11 = vcombine.high %v1532_v6, %v1544_v7  ;;  %v1555_v12 = vld [vmem:[%s8372_s8 + $0x1760] sm:$0xff]  ;;  %v933_v6 = vld [vmem:[%s8372_s8 + $0x3f0] sm:$0xff] }
 0x3be   : > { %6008 = vmatprep.subr.bf16.mxu0 %v7301_v15  ;;  %v1567_v15 = vld [vmem:[%s8372_s8 + $0x17c0] sm:$0xff]  ;;  %v945_v7 = vld [vmem:[%s8372_s8 + $0x450] sm:$0xff] }
 0x3bf   : > { %v7816_v28 = vpop.eup %7815 }
 0x3c0   : > { %v7818_v34 = vpop.eup %7817  ;;  %6549 = vst [vmem:[%s8829_s9] sm:$0xff] %v7816_v28  ;;  %5927 = vmatpush1.bf16.msra.mxu1 %v7298_v22  ;;  %v7467_v22 = vcombine.high %v1555_v12, %v1567_v15  ;;  %v7466_v28 = vcombine.low %v1555_v12, %v1567_v15  ;;  %v6847_v12 = vcombine.high %v933_v6, %v945_v7 }
 0x3c1   : > { %v7820_v36 = vpop.eup %7819  ;;  %6551 = vst [vmem:[%s8829_s9 + $0x10] sm:$0xff] %v7818_v34  ;;  %6009 = vmatpush1.bf16.msra.mxu0 %v7300_v23  ;;  %5928 = vmatprep.subr.bf16.mxu1 %v7323_v24  ;;  %v7469_v23 = vcombine.high %v1556_v16, %v1568_v18  ;;  %v813_v24 = vld [vmem:[%s8372_s8 + $0x30] sm:$0xff]  ;;  %v6729_v34 = vcombine.high %v814_v26, %v826_v27 }
 0x3c2   : > { %v7822_v13 = vpop.eup %7821  ;;  %6550 = vst [vmem:[%s8829_s9 + $0x8] sm:$0xff] %v7820_v36  ;;  %6010 = vmatprep.subr.bf16.mxu0 %v7325_v25  ;;  %v825_v25 = vld [vmem:[%s8372_s8 + $0x90] sm:$0xff] }
 0x3c3   : > { %6552 = vst [vmem:[%s8829_s9 + $0x18] sm:$0xff] %v7822_v13  ;;  %v6727_v31 = vcombine.high %v813_v24, %v825_v25  ;;  %v849_v36 = vld [vmem:[%s8372_s8 + $0x150] sm:$0xff]  ;;  %v850_v13 = vld [vmem:[%s8372_s8 + $0x158] sm:$0xff] }
 0x3c4   : > { %5929 = vmatpush1.bf16.msra.mxu1 %v7322_v35  ;;  %v837_v35 = vld [vmem:[%s8372_s8 + $0xf0] sm:$0xff] }
 0x3c5   : > { %6011 = vmatpush1.bf16.msra.mxu0 %v7324_v37  ;;  %5930 = vmatprep.subr.bf16.mxu1 %v7347_v38  ;;  %v6726_v37 = vcombine.low %v813_v24, %v825_v25  ;;  %v838_v38 = vld [vmem:[%s8372_s8 + $0xf8] sm:$0xff]  ;;  %v6751_v41 = vcombine.high %v837_v35, %v849_v36  ;;  %v957_v16 = vld [vmem:[%s8372_s8 + $0x4b0] sm:$0xff] }
 0x3c6   : > { %6012 = vmatprep.subr.bf16.mxu0 %v7349_v39  ;;  %v6728_v39 = vcombine.low %v814_v26, %v826_v27  ;;  %v6753_v44 = vcombine.high %v838_v38, %v850_v13  ;;  %v969_v18 = vld [vmem:[%s8372_s8 + $0x510] sm:$0xff] }
 0x3c7   : > { %v6871_v24 = vcombine.high %v957_v16, %v969_v18  ;;  %v981_v26 = vld [vmem:[%s8372_s8 + $0x570] sm:$0xff] }
 0x3c8   : > { %5931 = vmatpush1.bf16.msra.mxu1 %v7346_v45  ;;  %v862_v45 = vld [vmem:[%s8372_s8 + $0x1b8] sm:$0xff]  ;;  %v993_v27 = vld [vmem:[%s8372_s8 + $0x5d0] sm:$0xff] }
 0x3c9   : > { %6013 = vmatpush1.bf16.msra.mxu0 %v7348_v46  ;;  %5932 = vmatprep.subr.bf16.mxu1 %v7371_v47  ;;  %v874_v46 = vld [vmem:[%s8372_s8 + $0x218] sm:$0xff]  ;;  %v6750_v47 = vcombine.low %v837_v35, %v849_v36  ;;  %v6895_v35 = vcombine.high %v981_v26, %v993_v27 }
 0x3ca   : > { %6014 = vmatprep.subr.bf16.mxu0 %v7373_v19  ;;  %v6752_v19 = vcombine.low %v838_v38, %v850_v13  ;;  %v6777_v49 = vcombine.high %v862_v45, %v874_v46  ;;  %v1017_v38 = vld [vmem:[%s8372_s8 + $0x690] sm:$0xff]  ;;  %v1006_v13 = vld [vmem:[%s8372_s8 + $0x638] sm:$0xff] }
 0x3cc   : > { %5933 = vmatpush1.bf16.msra.mxu1 %v7370_v52  ;;  %v886_v52 = vld [vmem:[%s8372_s8 + $0x278] sm:$0xff] }
 0x3cd   : > { %6015 = vmatpush1.bf16.msra.mxu0 %v7372_v53  ;;  %5934 = vmatprep.subr.bf16.mxu1 %v7395_v55  ;;  %v898_v53 = vld [vmem:[%s8372_s8 + $0x2d8] sm:$0xff]  ;;  %v6774_v55 = vcombine.low %v861_v42, %v873_v43 }
 0x3ce   : > { %6016 = vmatprep.subr.bf16.mxu0 %v7397_v56  ;;  %v6776_v56 = vcombine.low %v862_v45, %v874_v46  ;;  %v6801_v58 = vcombine.high %v886_v52, %v898_v53  ;;  %v1029_v45 = vld [vmem:[%s8372_s8 + $0x6f0] sm:$0xff] }
 0x3cf   : > { %v1041_v46 = vld [vmem:[%s8372_s8 + $0x750] sm:$0xff] }
 0x3d0   : > { %5935 = vmatpush1.bf16.msra.mxu1 %v7394_v0  ;;  %v910_v0 = vld [vmem:[%s8372_s8 + $0x338] sm:$0xff] }
 0x3d1   : > { %6017 = vmatpush1.bf16.msra.mxu0 %v7396_v1  ;;  %5936 = vmatprep.subr.bf16.mxu1 %v7419_v2  ;;  %v922_v1 = vld [vmem:[%s8372_s8 + $0x398] sm:$0xff]  ;;  %v6798_v2 = vcombine.low %v885_v50, %v897_v51  ;;  %v6943_v50 = vcombine.high %v1029_v45, %v1041_v46 }
 0x3d2   : > { %6018 = vmatprep.subr.bf16.mxu0 %v7421_v3  ;;  %v6800_v3 = vcombine.low %v886_v52, %v898_v53  ;;  %v6825_v5 = vcombine.high %v910_v0, %v922_v1  ;;  %v1053_v52 = vld [vmem:[%s8372_s8 + $0x7b0] sm:$0xff] }
 0x3d3   : > { %v1065_v53 = vld [vmem:[%s8372_s8 + $0x810] sm:$0xff] }
 0x3d4   : > { %5937 = vmatpush1.bf16.msra.mxu1 %v7418_v8  ;;  %v934_v8 = vld [vmem:[%s8372_s8 + $0x3f8] sm:$0xff] }
 0x3d5   : > { %6019 = vmatpush1.bf16.msra.mxu0 %v7420_v9  ;;  %5938 = vmatprep.subr.bf16.mxu1 %v7443_v10  ;;  %v946_v9 = vld [vmem:[%s8372_s8 + $0x458] sm:$0xff]  ;;  %v6822_v10 = vcombine.low %v909_v61, %v921_v63  ;;  %v6967_v61 = vcombine.high %v1053_v52, %v1065_v53 }
 0x3d6   : > { %6020 = vmatprep.subr.bf16.mxu0 %v7445_v11  ;;  %v6824_v11 = vcombine.low %v910_v0, %v922_v1  ;;  %v6849_v15 = vcombine.high %v934_v8, %v946_v9  ;;  %v1077_v0 = vld [vmem:[%s8372_s8 + $0x870] sm:$0xff] }
 0x3d7   : > { %v1089_v1 = vld [vmem:[%s8372_s8 + $0x8d0] sm:$0xff] }
 0x3d8   : > { %5939 = vmatpush1.bf16.msra.mxu1 %v7442_v20  ;;  %v958_v20 = vld [vmem:[%s8372_s8 + $0x4b8] sm:$0xff] }
 0x3d9   : > { %6021 = vmatpush1.bf16.msra.mxu0 %v7444_v21  ;;  %5940 = vmatprep.subr.bf16.mxu1 %v7467_v22  ;;  %v970_v21 = vld [vmem:[%s8372_s8 + $0x518] sm:$0xff]  ;;  %v6846_v22 = vcombine.low %v933_v6, %v945_v7  ;;  %v6991_v6 = vcombine.high %v1077_v0, %v1089_v1 }
 0x3da   : > { %6022 = vmatprep.subr.bf16.mxu0 %v7469_v23  ;;  %v6848_v23 = vcombine.low %v934_v8, %v946_v9  ;;  %v6873_v25 = vcombine.high %v958_v20, %v970_v21  ;;  %v1101_v8 = vld [vmem:[%s8372_s8 + $0x930] sm:$0xff] }
 0x3db   : > { %v1113_v9 = vld [vmem:[%s8372_s8 + $0x990] sm:$0xff] }
 0x3dc   : > { %5941 = vmatpush1.bf16.msra.mxu1 %v7466_v28  ;;  %v982_v28 = vld [vmem:[%s8372_s8 + $0x578] sm:$0xff] }
 0x3dd   : > { %6023 = vmatpush1.bf16.msra.mxu0 %v7468_v30  ;;  %6033 = vmatprep.subr.bf16.mxu1 %v6727_v31  ;;  %v994_v30 = vld [vmem:[%s8372_s8 + $0x5d8] sm:$0xff]  ;;  %v6870_v31 = vcombine.low %v957_v16, %v969_v18  ;;  %v7015_v16 = vcombine.high %v1101_v8, %v1113_v9 }
 0x3de   : > { %6115 = vmatprep.subr.bf16.mxu0 %v6729_v34  ;;  %v6872_v34 = vcombine.low %v958_v20, %v970_v21  ;;  %v6897_v36 = vcombine.high %v982_v28, %v994_v30  ;;  %v6896_v42 = vcombine.low %v982_v28, %v994_v30  ;;  %v1125_v20 = vld [vmem:[%s8372_s8 + $0x9f0] sm:$0xff] }
 0x3df   : > { %5943 = vmatmul.mubr.bf16.vlgmr.msra.gmra.mrb[12].mxu1 %v8558_v54  ;;  %v1137_v21 = vld [vmem:[%s8372_s8 + $0xa50] sm:$0xff] }
 0x3e0   : > { %6025 = vmatmul.mubr.bf16.vlgmr.msra.gmra.mrb[12].mxu0 %v8558_v54  ;;  %6034 = vmatpush1.bf16.msra.mxu1 %v6726_v37  ;;  %v1005_v37 = vld [vmem:[%s8372_s8 + $0x630] sm:$0xff] }
 0x3e1   : > { %6065 = vmatprep.mubr.bf16.mxu1 %v8476_v32  ;;  %6116 = vmatpush1.bf16.msra.mxu0 %v6728_v39  ;;  %v1018_v39 = vld [vmem:[%s8372_s8 + $0x698] sm:$0xff]  ;;  %v6919_v43 = vcombine.high %v1005_v37, %v1017_v38  ;;  %v1149_v28 = vld [vmem:[%s8372_s8 + $0xab0] sm:$0xff] }
 0x3e2   : > { %6147 = vmatprep.mubr.bf16.mxu0 %v8476_v32  ;;  %6035 = vmatprep.subr.bf16.mxu1 %v6751_v41  ;;  %v6894_v41 = vcombine.low %v981_v26, %v993_v27  ;;  %v7039_v26 = vcombine.high %v1125_v20, %v1137_v21  ;;  %v1161_v30 = vld [vmem:[%s8372_s8 + $0xb10] sm:$0xff] }
 0x3e3   : > { %6117 = vmatprep.subr.bf16.mxu0 %v6753_v44  ;;  %v6921_v44 = vcombine.high %v1006_v13, %v1018_v39 }
 0x3e4   : > { %6036 = vmatpush1.bf16.msra.mxu1 %v6750_v47  ;;  %v1030_v47 = vld [vmem:[%s8372_s8 + $0x6f8] sm:$0xff] }
 0x3e5   : > { %6118 = vmatpush1.bf16.msra.mxu0 %v6752_v19  ;;  %6037 = vmatprep.subr.bf16.mxu1 %v6775_v48  ;;  %v1042_v19 = vld [vmem:[%s8372_s8 + $0x758] sm:$0xff]  ;;  %v6918_v48 = vcombine.low %v1005_v37, %v1017_v38  ;;  %v7063_v37 = vcombine.high %v1149_v28, %v1161_v30 }
 0x3e6   : > { %6119 = vmatprep.subr.bf16.mxu0 %v6777_v49  ;;  %v6920_v49 = vcombine.low %v1006_v13, %v1018_v39  ;;  %v6945_v51 = vcombine.high %v1030_v47, %v1042_v19  ;;  %v1173_v13 = vld [vmem:[%s8372_s8 + $0xb70] sm:$0xff] }
 0x3e7   : > { %v1185_v39 = vld [vmem:[%s8372_s8 + $0xbd0] sm:$0xff] }
 0x3e8   : > { %6038 = vmatpush1.bf16.msra.mxu1 %v6774_v55  ;;  %v1054_v55 = vld [vmem:[%s8372_s8 + $0x7b8] sm:$0xff] }
 0x3e9   : > { %6120 = vmatpush1.bf16.msra.mxu0 %v6776_v56  ;;  %6039 = vmatprep.subr.bf16.mxu1 %v6799_v57  ;;  %v1066_v56 = vld [vmem:[%s8372_s8 + $0x818] sm:$0xff]  ;;  %v6942_v57 = vcombine.low %v1029_v45, %v1041_v46  ;;  %v7087_v45 = vcombine.high %v1173_v13, %v1185_v39 }
 0x3ea   : > { %6121 = vmatprep.subr.bf16.mxu0 %v6801_v58  ;;  %v6944_v58 = vcombine.low %v1030_v47, %v1042_v19  ;;  %v6969_v63 = vcombine.high %v1054_v55, %v1066_v56  ;;  %v1197_v47 = vld [vmem:[%s8372_s8 + $0xc30] sm:$0xff] }
 0x3eb   : > { %v1209_v19 = vld [vmem:[%s8372_s8 + $0xc90] sm:$0xff] }
 0x3ec   : > { %6040 = vmatpush1.bf16.msra.mxu1 %v6798_v2  ;;  %v1078_v2 = vld [vmem:[%s8372_s8 + $0x878] sm:$0xff] }
 0x3ed   : > { %6122 = vmatpush1.bf16.msra.mxu0 %v6800_v3  ;;  %6041 = vmatprep.subr.bf16.mxu1 %v6823_v4  ;;  %v1090_v3 = vld [vmem:[%s8372_s8 + $0x8d8] sm:$0xff]  ;;  %v6966_v4 = vcombine.low %v1053_v52, %v1065_v53  ;;  %v7111_v52 = vcombine.high %v1197_v47, %v1209_v19 }
 0x3ee   : > { %6123 = vmatprep.subr.bf16.mxu0 %v6825_v5  ;;  %v6968_v5 = vcombine.low %v1054_v55, %v1066_v56  ;;  %v6993_v7 = vcombine.high %v1078_v2, %v1090_v3  ;;  %v1221_v55 = vld [vmem:[%s8372_s8 + $0xcf0] sm:$0xff] }
 0x3ef   : > { %v1233_v56 = vld [vmem:[%s8372_s8 + $0xd50] sm:$0xff] }
 0x3f0   : > { %6042 = vmatpush1.bf16.msra.mxu1 %v6822_v10  ;;  %v1102_v10 = vld [vmem:[%s8372_s8 + $0x938] sm:$0xff] }
 0x3f1   : > { %6124 = vmatpush1.bf16.msra.mxu0 %v6824_v11  ;;  %6043 = vmatprep.subr.bf16.mxu1 %v6847_v12  ;;  %v1114_v11 = vld [vmem:[%s8372_s8 + $0x998] sm:$0xff]  ;;  %v6990_v12 = vcombine.low %v1077_v0, %v1089_v1  ;;  %v7135_v0 = vcombine.high %v1221_v55, %v1233_v56  ;;  %v1245_v1 = vld [vmem:[%s8372_s8 + $0xdb0] sm:$0xff] }
 0x3f2   : > { %6125 = vmatprep.subr.bf16.mxu0 %v6849_v15  ;;  %v6992_v15 = vcombine.low %v1078_v2, %v1090_v3  ;;  %v7017_v18 = vcombine.high %v1102_v10, %v1114_v11  ;;  %v1257_v2 = vld [vmem:[%s8372_s8 + $0xe10] sm:$0xff] }
 0x3f4   : > { %6044 = vmatpush1.bf16.msra.mxu1 %v6846_v22  ;;  %v1126_v22 = vld [vmem:[%s8372_s8 + $0x9f8] sm:$0xff] }
 0x3f5   : > { %6126 = vmatpush1.bf16.msra.mxu0 %v6848_v23  ;;  %6045 = vmatprep.subr.bf16.mxu1 %v6871_v24  ;;  %v1138_v23 = vld [vmem:[%s8372_s8 + $0xa58] sm:$0xff]  ;;  %v7014_v24 = vcombine.low %v1101_v8, %v1113_v9  ;;  %v7159_v8 = vcombine.high %v1245_v1, %v1257_v2 }
 0x3f6   : > { %6127 = vmatprep.subr.bf16.mxu0 %v6873_v25  ;;  %v7016_v25 = vcombine.low %v1102_v10, %v1114_v11  ;;  %v7041_v27 = vcombine.high %v1126_v22, %v1138_v23  ;;  %v1269_v10 = vld [vmem:[%s8372_s8 + $0xe70] sm:$0xff] }
 0x3f7   : > { %v1281_v11 = vld [vmem:[%s8372_s8 + $0xed0] sm:$0xff] }
 0x3f8   : > { %6046 = vmatpush1.bf16.msra.mxu1 %v6870_v31  ;;  %v1150_v31 = vld [vmem:[%s8372_s8 + $0xab8] sm:$0xff] }
 0x3f9   : > { %6128 = vmatpush1.bf16.msra.mxu0 %v6872_v34  ;;  %6047 = vmatprep.subr.bf16.mxu1 %v6895_v35  ;;  %v1162_v34 = vld [vmem:[%s8372_s8 + $0xb18] sm:$0xff]  ;;  %v7038_v35 = vcombine.low %v1125_v20, %v1137_v21  ;;  %v7183_v20 = vcombine.high %v1269_v10, %v1281_v11 }
 0x3fa   : > { %6129 = vmatprep.subr.bf16.mxu0 %v6897_v36  ;;  %v7040_v36 = vcombine.low %v1126_v22, %v1138_v23  ;;  %v7065_v38 = vcombine.high %v1150_v31, %v1162_v34  ;;  %v1293_v22 = vld [vmem:[%s8372_s8 + $0xf30] sm:$0xff] }
 0x3fb   : > { %v1305_v23 = vld [vmem:[%s8372_s8 + $0xf90] sm:$0xff] }
 0x3fc   : > { %6048 = vmatpush1.bf16.msra.mxu1 %v6894_v41  ;;  %v1174_v41 = vld [vmem:[%s8372_s8 + $0xb78] sm:$0xff] }
 0x3fd   : > { %6130 = vmatpush1.bf16.msra.mxu0 %v6896_v42  ;;  %6049 = vmatprep.subr.bf16.mxu1 %v6919_v43  ;;  %v1186_v42 = vld [vmem:[%s8372_s8 + $0xbd8] sm:$0xff]  ;;  %v7062_v43 = vcombine.low %v1149_v28, %v1161_v30  ;;  %v7207_v28 = vcombine.high %v1293_v22, %v1305_v23 }
 0x3fe   : > { %6131 = vmatprep.subr.bf16.mxu0 %v6921_v44  ;;  %v7064_v44 = vcombine.low %v1150_v31, %v1162_v34  ;;  %v7089_v46 = vcombine.high %v1174_v41, %v1186_v42  ;;  %v1317_v31 = vld [vmem:[%s8372_s8 + $0xff0] sm:$0xff] }
 0x3ff   : > { %v1329_v34 = vld [vmem:[%s8372_s8 + $0x1050] sm:$0xff] }
 0x400   : > { %6050 = vmatpush1.bf16.msra.mxu1 %v6918_v48  ;;  %v1198_v48 = vld [vmem:[%s8372_s8 + $0xc38] sm:$0xff] }
 0x401   : > { %6132 = vmatpush1.bf16.msra.mxu0 %v6920_v49  ;;  %6051 = vmatprep.subr.bf16.mxu1 %v6943_v50  ;;  %v1210_v49 = vld [vmem:[%s8372_s8 + $0xc98] sm:$0xff]  ;;  %v7086_v50 = vcombine.low %v1173_v13, %v1185_v39  ;;  %v8959_v13 = vsub.s32 6, %v8385_v59  ;;  %v8962_v39 = vsub.s32 5, %v8385_v59 }
 0x402   : > { %6133 = vmatprep.subr.bf16.mxu0 %v6945_v51  ;;  %v7088_v51 = vcombine.low %v1174_v41, %v1186_v42  ;;  %v7113_v53 = vcombine.high %v1198_v48, %v1210_v49  ;;  %v8965_v42 = vsub.s32 7, %v8385_v59 }
 0x404   : > { %6052 = vmatpush1.bf16.msra.mxu1 %v6942_v57  ;;  %v7110_v57 = vcombine.low %v1197_v47, %v1209_v19  ;;  %v1342_v19 = vld [vmem:[%s8372_s8 + $0x10b8] sm:$0xff] }
 0x405   : > { %6134 = vmatpush1.bf16.msra.mxu0 %v6944_v58  ;;  %6053 = vmatprep.subr.bf16.mxu1 %v6967_v61  ;;  %v1222_v58 = vld [vmem:[%s8372_s8 + $0xcf8] sm:$0xff] }
 0x406   : > { %6135 = vmatprep.subr.bf16.mxu0 %v6969_v63  ;;  %v1234_v61 = vld [vmem:[%s8372_s8 + $0xd58] sm:$0xff]  ;;  %v7112_v63 = vcombine.low %v1198_v48, %v1210_v49  ;;  %v1608_v49 = vrot.slane %v8789_v29, %v8959_v13 }
 0x407   : > { %v7137_v3 = vcombine.high %v1222_v58, %v1234_v61  ;;  %v1354_v48 = vld [vmem:[%s8372_s8 + $0x1118] sm:$0xff] }
 0x408   : > { %6054 = vmatpush1.bf16.msra.mxu1 %v6966_v4  ;;  %v1246_v4 = vld [vmem:[%s8372_s8 + $0xdb8] sm:$0xff] }
 0x409   : > { %6136 = vmatpush1.bf16.msra.mxu0 %v6968_v5  ;;  %6055 = vmatprep.subr.bf16.mxu1 %v6991_v6  ;;  %v1258_v5 = vld [vmem:[%s8372_s8 + $0xe18] sm:$0xff]  ;;  %v7134_v6 = vcombine.low %v1221_v55, %v1233_v56  ;;  %v7257_v56 = vcombine.high %v1342_v19, %v1354_v48 }
 0x40a   : > { %6137 = vmatprep.subr.bf16.mxu0 %v6993_v7  ;;  %v7136_v7 = vcombine.low %v1222_v58, %v1234_v61  ;;  %v7161_v9 = vcombine.high %v1246_v4, %v1258_v5  ;;  %v1377_v58 = vld [vmem:[%s8372_s8 + $0x11d0] sm:$0xff] }
 0x40c   : > { %6056 = vmatpush1.bf16.msra.mxu1 %v6990_v12  ;;  %v1270_v12 = vld [vmem:[%s8372_s8 + $0xe78] sm:$0xff] }
 0x40d   : > { %6138 = vmatpush1.bf16.msra.mxu0 %v6992_v15  ;;  %6057 = vmatprep.subr.bf16.mxu1 %v7015_v16  ;;  %v1282_v15 = vld [vmem:[%s8372_s8 + $0xed8] sm:$0xff]  ;;  %v7158_v16 = vcombine.low %v1245_v1, %v1257_v2 }
 0x40e   : > { %6139 = vmatprep.subr.bf16.mxu0 %v7017_v18  ;;  %v7160_v18 = vcombine.low %v1246_v4, %v1258_v5  ;;  %v7185_v21 = vcombine.high %v1270_v12, %v1282_v15  ;;  %v1366_v1 = vld [vmem:[%s8372_s8 + $0x1178] sm:$0xff] }
 0x40f   : > { %v1378_v2 = vld [vmem:[%s8372_s8 + $0x11d8] sm:$0xff] }
 0x410   : > { %6058 = vmatpush1.bf16.msra.mxu1 %v7014_v24  ;;  %v1294_v24 = vld [vmem:[%s8372_s8 + $0xf38] sm:$0xff] }
 0x411   : > { %6140 = vmatpush1.bf16.msra.mxu0 %v7016_v25  ;;  %6059 = vmatprep.subr.bf16.mxu1 %v7039_v26  ;;  %v1306_v25 = vld [vmem:[%s8372_s8 + $0xf98] sm:$0xff]  ;;  %v7182_v26 = vcombine.low %v1269_v10, %v1281_v11  ;;  %v7256_v10 = vcombine.low %v1342_v19, %v1354_v48 }
 0x412   : > { %6141 = vmatprep.subr.bf16.mxu0 %v7041_v27  ;;  %v7184_v27 = vcombine.low %v1270_v12, %v1282_v15  ;;  %v7209_v30 = vcombine.high %v1294_v24, %v1306_v25  ;;  %v7208_v41 = vcombine.low %v1294_v24, %v1306_v25  ;;  %v7281_v15 = vcombine.high %v1366_v1, %v1378_v2 }
 0x414   : > { %6060 = vmatpush1.bf16.msra.mxu1 %v7038_v35  ;;  %v8954_v35 = vsub.s32 4, %v8385_v59  ;;  %v1604_v59 = vrot.slane %v8789_v29, %v8962_v39 }
 0x415   : > { %6142 = vmatpush1.bf16.msra.mxu0 %v7040_v36  ;;  %6061 = vmatprep.subr.bf16.mxu1 %v7063_v37  ;;  %v1318_v36 = vld [vmem:[%s8372_s8 + $0xff8] sm:$0xff] }
 0x416   : > { %6143 = vmatprep.subr.bf16.mxu0 %v7065_v38  ;;  %v1330_v37 = vld [vmem:[%s8372_s8 + $0x1058] sm:$0xff]  ;;  %v7206_v38 = vcombine.low %v1293_v22, %v1305_v23  ;;  %v1600_v47 = vrot.slane %v8789_v29, %v8954_v35  ;;  %v7280_v23 = vcombine.low %v1366_v1, %v1378_v2 }
 0x417   : > { %v1486_v1 = vld [vmem:[%s8372_s8 + $0x1538] sm:$0xff] }
 0x418   : > { %6062 = vmatpush1.bf16.msra.mxu1 %v7062_v43  ;;  %v7231_v43 = vcombine.high %v1317_v31, %v1329_v34  ;;  %v1498_v2 = vld [vmem:[%s8372_s8 + $0x1598] sm:$0xff] }
 0x419   : > { %6144 = vmatpush1.bf16.msra.mxu0 %v7064_v44  ;;  %6063 = vmatprep.subr.bf16.mxu1 %v7087_v45  ;;  %v7233_v44 = vcombine.high %v1318_v36, %v1330_v37  ;;  %v1341_v45 = vld [vmem:[%s8372_s8 + $0x10b0] sm:$0xff] }
 0x41a   : > { %6145 = vmatprep.subr.bf16.mxu0 %v7089_v46  ;;  %v1353_v46 = vld [vmem:[%s8372_s8 + $0x1110] sm:$0xff] }
 0x41c   : > { %6064 = vmatpush1.bf16.msra.mxu1 %v7086_v50  ;;  %v7230_v50 = vcombine.low %v1317_v31, %v1329_v34 }
 0x41d   : > { %6146 = vmatpush1.bf16.msra.mxu0 %v7088_v51  ;;  %6074 = vmatprep.subr.bf16.mxu1 %v7111_v52  ;;  %v1612_v51 = vrot.slane %v8789_v29, %v8965_v42  ;;  %v7232_v52 = vcombine.low %v1318_v36, %v1330_v37  ;;  %v7254_v29 = vcombine.low %v1341_v45, %v1353_v46 }
 0x41e   : > { %6156 = vmatprep.subr.bf16.mxu0 %v7113_v53  ;;  %v7255_v53 = vcombine.high %v1341_v45, %v1353_v46  ;;  %v1450_v45 = vld [vmem:[%s8372_s8 + $0x1418] sm:$0xff] }
 0x41f   : > { %6066 = vmatmul.mubr.bf16.vlgmr.msra.gmra.mrb[16].mxu1 %v8478_v33 }
 0x420   : > { %6148 = vmatmul.mubr.bf16.vlgmr.msra.gmra.mrb[16].mxu0 %v8478_v33  ;;  %6075 = vmatpush1.bf16.msra.mxu1 %v7110_v57  ;;  %v1365_v57 = vld [vmem:[%s8372_s8 + $0x1170] sm:$0xff] }
 0x421   : > { %6106 = vmatprep.mubr.bf16.mxu1 %v8486_v40  ;;  %6157 = vmatpush1.bf16.msra.mxu0 %v7112_v63  ;;  %v7279_v11 = vcombine.high %v1365_v57, %v1377_v58  ;;  %v7278_v22 = vcombine.low %v1365_v57, %v1377_v58 }
 0x422   : > { %6188 = vmatprep.mubr.bf16.mxu0 %v8486_v40  ;;  %6076 = vmatprep.subr.bf16.mxu1 %v7135_v0 }
 0x423   : > { %6158 = vmatprep.subr.bf16.mxu0 %v7137_v3 }
 0x424   : > { %6077 = vmatpush1.bf16.msra.mxu1 %v7134_v6 }
 0x425   : > { %6159 = vmatpush1.bf16.msra.mxu0 %v7136_v7  ;;  %6078 = vmatprep.subr.bf16.mxu1 %v7159_v8 }
 0x426   : > { %6160 = vmatprep.subr.bf16.mxu0 %v7161_v9 }
 0x428   : > { %6079 = vmatpush1.bf16.msra.mxu1 %v7158_v16  ;;  %v1389_v16 = vld [vmem:[%s8372_s8 + $0x1230] sm:$0xff] }
 0x429   : > { %6161 = vmatpush1.bf16.msra.mxu0 %v7160_v18  ;;  %6080 = vmatprep.subr.bf16.mxu1 %v7183_v20  ;;  %v1401_v18 = vld [vmem:[%s8372_s8 + $0x1290] sm:$0xff]  ;;  %v1390_v20 = vld [vmem:[%s8372_s8 + $0x1238] sm:$0xff] }
 0x42a   : > { %6162 = vmatprep.subr.bf16.mxu0 %v7185_v21  ;;  %v1402_v21 = vld [vmem:[%s8372_s8 + $0x1298] sm:$0xff]  ;;  %v7303_v24 = vcombine.high %v1389_v16, %v1401_v18  ;;  %v7302_v31 = vcombine.low %v1389_v16, %v1401_v18  ;;  %v1533_v16 = vld [vmem:[%s8372_s8 + $0x16b0] sm:$0xff] }
 0x42b   : > { %v7305_v25 = vcombine.high %v1390_v20, %v1402_v21  ;;  %v7304_v34 = vcombine.low %v1390_v20, %v1402_v21  ;;  %v1545_v18 = vld [vmem:[%s8372_s8 + $0x1710] sm:$0xff]  ;;  %v1534_v20 = vld [vmem:[%s8372_s8 + $0x16b8] sm:$0xff] }
 0x42c   : > { %6081 = vmatpush1.bf16.msra.mxu1 %v7182_v26  ;;  %v1413_v26 = vld [vmem:[%s8372_s8 + $0x12f0] sm:$0xff]  ;;  %v1546_v21 = vld [vmem:[%s8372_s8 + $0x1718] sm:$0xff] }
 0x42d   : > { %6163 = vmatpush1.bf16.msra.mxu0 %v7184_v27  ;;  %6082 = vmatprep.subr.bf16.mxu1 %v7207_v28  ;;  %v1425_v27 = vld [vmem:[%s8372_s8 + $0x1350] sm:$0xff]  ;;  %v1414_v28 = vld [vmem:[%s8372_s8 + $0x12f8] sm:$0xff] }
 0x42e   : > { %6164 = vmatprep.subr.bf16.mxu0 %v7209_v30  ;;  %v1426_v30 = vld [vmem:[%s8372_s8 + $0x1358] sm:$0xff]  ;;  %v7327_v36 = vcombine.high %v1413_v26, %v1425_v27 }
 0x42f   : > { %v7329_v37 = vcombine.high %v1414_v28, %v1426_v30  ;;  %v7328_v48 = vcombine.low %v1414_v28, %v1426_v30  ;;  %v1558_v28 = vld [vmem:[%s8372_s8 + $0x1778] sm:$0xff] }
 0x430   : > { %6083 = vmatpush1.bf16.msra.mxu1 %v7206_v38  ;;  %v1437_v38 = vld [vmem:[%s8372_s8 + $0x13b0] sm:$0xff]  ;;  %v1570_v30 = vld [vmem:[%s8372_s8 + $0x17d8] sm:$0xff] }
 0x431   : > { %6165 = vmatpush1.bf16.msra.mxu0 %v7208_v41  ;;  %6084 = vmatprep.subr.bf16.mxu1 %v7231_v43  ;;  %v1449_v41 = vld [vmem:[%s8372_s8 + $0x1410] sm:$0xff] }
 0x432   : > { %v5780_v55 = vpop.f32.mrb[8].mxu1  ;;  %6166 = vmatprep.subr.bf16.mxu0 %v7233_v44  ;;  %v1438_v44 = vld [vmem:[%s8372_s8 + $0x13b8] sm:$0xff] }
 0x433   : > { %v7650_v61 = vadd.f32 %v5780_v55, %v1600_v47  ;;  %v5862_v63 = vpop.f32.mrb[8].mxu0  ;;  %v5782_v0 = vpop.f32.mrb[9].mxu1  ;;  %v7326_v47 = vcombine.low %v1413_v26, %v1425_v27  ;;  %v1474_v55 = vld [vmem:[%s8372_s8 + $0x14d8] sm:$0xff]  ;;  %v7352_v57 = vcombine.low %v1438_v44, %v1450_v45  ;;  %v1557_v26 = vld [vmem:[%s8372_s8 + $0x1770] sm:$0xff] }
 0x434   : > { %v7652_v3 = vadd.f32 %v5862_v63, %v1608_v49  ;;  %v7651_v4 = vadd.f32 %v5782_v0, %v1604_v59  ;;  %v5864_v5 = vpop.f32.mrb[9].mxu0  ;;  %v5784_v6 = vpop.f32.mrb[10].mxu1  ;;  %6085 = vmatpush1.bf16.msra.mxu1 %v7230_v50  ;;  %v7351_v49 = vcombine.high %v1437_v38, %v1449_v41  ;;  %v7353_v50 = vcombine.high %v1438_v44, %v1450_v45  ;;  %v1485_v63 = vld [vmem:[%s8372_s8 + $0x1530] sm:$0xff]  ;;  %v828_v44 = vld [vmem:[%s8372_s8 + $0xa8] sm:$0xff] }
 0x435   : > { %7823 = vtanh.f32 %v7650_v61  ;;  %v7653_v7 = vadd.f32 %v5864_v5, %v1612_v51  ;;  %v5866_v8 = vpop.f32.mrb[10].mxu0  ;;  %6167 = vmatpush1.bf16.msra.mxu0 %v7232_v52  ;;  %v5785_v9 = vpop.f32.mrb[11].mxu1  ;;  %6086 = vmatprep.subr.bf16.mxu1 %v7255_v53  ;;  %v1461_v51 = vld [vmem:[%s8372_s8 + $0x1470] sm:$0xff]  ;;  %v1462_v53 = vld [vmem:[%s8372_s8 + $0x1478] sm:$0xff]  ;;  %v7401_v6 = vcombine.high %v1486_v1, %v1498_v2 }
 0x436   : > { %7825 = vtanh.f32 %v7652_v3  ;;  %v5867_v12 = vpop.f32.mrb[11].mxu0  ;;  %6168 = vmatprep.subr.bf16.mxu0 %v7257_v56  ;;  %v1473_v52 = vld [vmem:[%s8372_s8 + $0x14d0] sm:$0xff]  ;;  %v7350_v56 = vcombine.low %v1437_v38, %v1449_v41  ;;  %v7377_v61 = vcombine.high %v1462_v53, %v1474_v55  ;;  %v1510_v8 = vld [vmem:[%s8372_s8 + $0x15f8] sm:$0xff]  ;;  %v815_v38 = vld [vmem:[%s8372_s8 + $0x40] sm:$0xff] }
 0x437   : > { %7827 = vtanh.f32 %v7651_v4  ;;  %v7375_v58 = vcombine.high %v1461_v51, %v1473_v52  ;;  %v1497_v0 = vld [vmem:[%s8372_s8 + $0x1590] sm:$0xff]  ;;  %v7374_v3 = vcombine.low %v1461_v51, %v1473_v52  ;;  %v7376_v4 = vcombine.low %v1462_v53, %v1474_v55  ;;  %v1522_v9 = vld [vmem:[%s8372_s8 + $0x1658] sm:$0xff]  ;;  %v827_v41 = vld [vmem:[%s8372_s8 + $0xa0] sm:$0xff] }
 0x438   : > { %7829 = vtanh.f32 %v7653_v7  ;;  %6087 = vmatpush1.bf16.msra.mxu1 %v7254_v29  ;;  %v7399_v5 = vcombine.high %v1485_v63, %v1497_v0  ;;  %v1509_v29 = vld [vmem:[%s8372_s8 + $0x15f0] sm:$0xff]  ;;  %v852_v51 = vld [vmem:[%s8372_s8 + $0x168] sm:$0xff]  ;;  %v863_v55 = vld [vmem:[%s8372_s8 + $0x1c0] sm:$0xff] }
 0x439   : > { %6169 = vmatpush1.bf16.msra.mxu0 %v7256_v10  ;;  %6088 = vmatprep.subr.bf16.mxu1 %v7279_v11  ;;  %v1521_v7 = vld [vmem:[%s8372_s8 + $0x1650] sm:$0xff]  ;;  %v7398_v10 = vcombine.low %v1485_v63, %v1497_v0  ;;  %v7400_v11 = vcombine.low %v1486_v1, %v1498_v2 }
 0x43a   : > { %6170 = vmatprep.subr.bf16.mxu0 %v7281_v15  ;;  %v7423_v12 = vcombine.high %v1509_v29, %v1521_v7  ;;  %v7425_v15 = vcombine.high %v1510_v8, %v1522_v9  ;;  %v1569_v27 = vld [vmem:[%s8372_s8 + $0x17d0] sm:$0xff] }
 0x43b   : > { %v7470_v45 = vcombine.low %v1557_v26, %v1569_v27 }
 0x43c   : > { %6089 = vmatpush1.bf16.msra.mxu1 %v7278_v22  ;;  %v7422_v22 = vcombine.low %v1509_v29, %v1521_v7 }
 0x43d   : > { %6171 = vmatpush1.bf16.msra.mxu0 %v7280_v23  ;;  %6090 = vmatprep.subr.bf16.mxu1 %v7303_v24  ;;  %v7424_v23 = vcombine.low %v1510_v8, %v1522_v9  ;;  %v7447_v24 = vcombine.high %v1533_v16, %v1545_v18 }
 0x43e   : > { %6172 = vmatprep.subr.bf16.mxu0 %v7305_v25  ;;  %v7449_v25 = vcombine.high %v1534_v20, %v1546_v21 }
 0x43f   : > { %v7824_v43 = vpop.eup %7823 }
 0x440   : > { %v7826_v46 = vpop.eup %7825  ;;  %6553 = vst [vmem:[%s8829_s9 + $0x20] sm:$0xff] %v7824_v43  ;;  %6091 = vmatpush1.bf16.msra.mxu1 %v7302_v31  ;;  %v7446_v31 = vcombine.low %v1533_v16, %v1545_v18  ;;  %v816_v43 = vld [vmem:[%s8372_s8 + $0x48] sm:$0xff] }
 0x441   : > { %v7828_v19 = vpop.eup %7827  ;;  %6555 = vst [vmem:[%s8829_s9 + $0x30] sm:$0xff] %v7826_v46  ;;  %6173 = vmatpush1.bf16.msra.mxu0 %v7304_v34  ;;  %6092 = vmatprep.subr.bf16.mxu1 %v7327_v36  ;;  %v7448_v34 = vcombine.low %v1534_v20, %v1546_v21  ;;  %v7471_v36 = vcombine.high %v1557_v26, %v1569_v27 }
 0x442   : > { %v7830_v59 = vpop.eup %7829  ;;  %6554 = vst [vmem:[%s8829_s9 + $0x28] sm:$0xff] %v7828_v19  ;;  %6174 = vmatprep.subr.bf16.mxu0 %v7329_v37  ;;  %v7473_v37 = vcombine.high %v1558_v28, %v1570_v30  ;;  %v7472_v46 = vcombine.low %v1558_v28, %v1570_v30  ;;  %v6733_v19 = vcombine.high %v816_v43, %v828_v44 }
 0x443   : > { %6556 = vst [vmem:[%s8829_s9 + $0x38] sm:$0xff] %v7830_v59  ;;  %v6730_v59 = vcombine.low %v815_v38, %v827_v41  ;;  %v6732_v52 = vcombine.low %v816_v43, %v828_v44 }
 0x444   : > { %6093 = vmatpush1.bf16.msra.mxu1 %v7326_v47  ;;  %v6731_v47 = vcombine.high %v815_v38, %v827_v41 }
 0x445   : > { %6175 = vmatpush1.bf16.msra.mxu0 %v7328_v48  ;;  %6094 = vmatprep.subr.bf16.mxu1 %v7351_v49  ;;  %v839_v48 = vld [vmem:[%s8372_s8 + $0x100] sm:$0xff] }
 0x446   : > { %6176 = vmatprep.subr.bf16.mxu0 %v7353_v50  ;;  %v851_v49 = vld [vmem:[%s8372_s8 + $0x160] sm:$0xff]  ;;  %v840_v50 = vld [vmem:[%s8372_s8 + $0x108] sm:$0xff] }
 0x447   : > { %v6755_v53 = vcombine.high %v839_v48, %v851_v49  ;;  %v6754_v63 = vcombine.low %v839_v48, %v851_v49  ;;  %v6756_v0 = vcombine.low %v840_v50, %v852_v51 }
 0x448   : > { %6095 = vmatpush1.bf16.msra.mxu1 %v7350_v56  ;;  %v875_v56 = vld [vmem:[%s8372_s8 + $0x220] sm:$0xff] }
 0x449   : > { %6177 = vmatpush1.bf16.msra.mxu0 %v7352_v57  ;;  %6096 = vmatprep.subr.bf16.mxu1 %v7375_v58  ;;  %v6757_v57 = vcombine.high %v840_v50, %v852_v51  ;;  %v864_v58 = vld [vmem:[%s8372_s8 + $0x1c8] sm:$0xff]  ;;  %v6779_v1 = vcombine.high %v863_v55, %v875_v56  ;;  %v6778_v29 = vcombine.low %v863_v55, %v875_v56  ;;  %v1007_v51 = vld [vmem:[%s8372_s8 + $0x640] sm:$0xff] }
 0x44a   : > { %6178 = vmatprep.subr.bf16.mxu0 %v7377_v61  ;;  %v876_v61 = vld [vmem:[%s8372_s8 + $0x228] sm:$0xff] }
 0x44b   : > { %v6781_v2 = vcombine.high %v864_v58, %v876_v61  ;;  %v6780_v7 = vcombine.low %v864_v58, %v876_v61  ;;  %v1020_v55 = vld [vmem:[%s8372_s8 + $0x6a8] sm:$0xff] }
 0x44c   : > { %6097 = vmatpush1.bf16.msra.mxu1 %v7374_v3  ;;  %v887_v3 = vld [vmem:[%s8372_s8 + $0x280] sm:$0xff] }
 0x44d   : > { %6179 = vmatpush1.bf16.msra.mxu0 %v7376_v4  ;;  %6098 = vmatprep.subr.bf16.mxu1 %v7399_v5  ;;  %v899_v4 = vld [vmem:[%s8372_s8 + $0x2e0] sm:$0xff]  ;;  %v888_v5 = vld [vmem:[%s8372_s8 + $0x288] sm:$0xff] }
 0x44e   : > { %6180 = vmatprep.subr.bf16.mxu0 %v7401_v6  ;;  %v900_v6 = vld [vmem:[%s8372_s8 + $0x2e8] sm:$0xff]  ;;  %v6803_v8 = vcombine.high %v887_v3, %v899_v4  ;;  %v6802_v16 = vcombine.low %v887_v3, %v899_v4 }
 0x44f   : > { %v6805_v9 = vcombine.high %v888_v5, %v900_v6  ;;  %v6804_v18 = vcombine.low %v888_v5, %v900_v6 }
 0x450   : > { %6099 = vmatpush1.bf16.msra.mxu1 %v7398_v10  ;;  %v911_v10 = vld [vmem:[%s8372_s8 + $0x340] sm:$0xff] }
 0x451   : > { %6181 = vmatpush1.bf16.msra.mxu0 %v7400_v11  ;;  %6100 = vmatprep.subr.bf16.mxu1 %v7423_v12  ;;  %v923_v11 = vld [vmem:[%s8372_s8 + $0x3a0] sm:$0xff]  ;;  %v912_v12 = vld [vmem:[%s8372_s8 + $0x348] sm:$0xff] }
 0x452   : > { %6182 = vmatprep.subr.bf16.mxu0 %v7425_v15  ;;  %v924_v15 = vld [vmem:[%s8372_s8 + $0x3a8] sm:$0xff]  ;;  %v6827_v20 = vcombine.high %v911_v10, %v923_v11  ;;  %v6826_v26 = vcombine.low %v911_v10, %v923_v11 }
 0x453   : > { %v6829_v21 = vcombine.high %v912_v12, %v924_v15  ;;  %v6828_v27 = vcombine.low %v912_v12, %v924_v15 }
 0x454   : > { %6101 = vmatpush1.bf16.msra.mxu1 %v7422_v22  ;;  %v935_v22 = vld [vmem:[%s8372_s8 + $0x400] sm:$0xff] }
 0x455   : > { %6183 = vmatpush1.bf16.msra.mxu0 %v7424_v23  ;;  %6102 = vmatprep.subr.bf16.mxu1 %v7447_v24  ;;  %v947_v23 = vld [vmem:[%s8372_s8 + $0x460] sm:$0xff]  ;;  %v936_v24 = vld [vmem:[%s8372_s8 + $0x408] sm:$0xff] }
 0x456   : > { %6184 = vmatprep.subr.bf16.mxu0 %v7449_v25  ;;  %v948_v25 = vld [vmem:[%s8372_s8 + $0x468] sm:$0xff]  ;;  %v6851_v28 = vcombine.high %v935_v22, %v947_v23  ;;  %v6850_v38 = vcombine.low %v935_v22, %v947_v23 }
 0x457   : > { %v6853_v30 = vcombine.high %v936_v24, %v948_v25  ;;  %v6852_v41 = vcombine.low %v936_v24, %v948_v25 }
 0x458   : > { %6103 = vmatpush1.bf16.msra.mxu1 %v7446_v31  ;;  %v959_v31 = vld [vmem:[%s8372_s8 + $0x4c0] sm:$0xff] }
 0x459   : > { %6185 = vmatpush1.bf16.msra.mxu0 %v7448_v34  ;;  %6104 = vmatprep.subr.bf16.mxu1 %v7471_v36  ;;  %v971_v34 = vld [vmem:[%s8372_s8 + $0x520] sm:$0xff]  ;;  %v960_v36 = vld [vmem:[%s8372_s8 + $0x4c8] sm:$0xff] }
 0x45a   : > { %6186 = vmatprep.subr.bf16.mxu0 %v7473_v37  ;;  %v972_v37 = vld [vmem:[%s8372_s8 + $0x528] sm:$0xff]  ;;  %v6875_v43 = vcombine.high %v959_v31, %v971_v34  ;;  %v6874_v48 = vcombine.low %v959_v31, %v971_v34 }
 0x45b   : > { %v6877_v44 = vcombine.high %v960_v36, %v972_v37  ;;  %v6876_v49 = vcombine.low %v960_v36, %v972_v37 }
 0x45c   : > { %6105 = vmatpush1.bf16.msra.mxu1 %v7470_v45  ;;  %v983_v45 = vld [vmem:[%s8372_s8 + $0x580] sm:$0xff] }
 0x45d   : > { %6187 = vmatpush1.bf16.msra.mxu0 %v7472_v46  ;;  %6197 = vmatprep.subr.bf16.mxu1 %v6731_v47  ;;  %v995_v46 = vld [vmem:[%s8372_s8 + $0x5e0] sm:$0xff]  ;;  %v984_v47 = vld [vmem:[%s8372_s8 + $0x588] sm:$0xff] }
 0x45e   : > { %6279 = vmatprep.subr.bf16.mxu0 %v6733_v19  ;;  %v996_v19 = vld [vmem:[%s8372_s8 + $0x5e8] sm:$0xff]  ;;  %v6898_v56 = vcombine.low %v983_v45, %v995_v46 }
 0x45f   : > { %6107 = vmatmul.mubr.bf16.vlgmr.msra.gmra.mrb[16].mxu1 %v8558_v54  ;;  %v6901_v50 = vcombine.high %v984_v47, %v996_v19 }
 0x460   : > { %6189 = vmatmul.mubr.bf16.vlgmr.msra.gmra.mrb[16].mxu0 %v8558_v54  ;;  %6198 = vmatpush1.bf16.msra.mxu1 %v6730_v59  ;;  %v6899_v59 = vcombine.high %v983_v45, %v995_v46 }
 0x461   : > { %6229 = vmatprep.mubr.bf16.mxu1 %v8476_v32  ;;  %6280 = vmatpush1.bf16.msra.mxu0 %v6732_v52  ;;  %v1019_v52 = vld [vmem:[%s8372_s8 + $0x6a0] sm:$0xff] }
 0x462   : > { %6311 = vmatprep.mubr.bf16.mxu0 %v8476_v32  ;;  %6199 = vmatprep.subr.bf16.mxu1 %v6755_v53  ;;  %v1008_v53 = vld [vmem:[%s8372_s8 + $0x648] sm:$0xff]  ;;  %v6923_v58 = vcombine.high %v1007_v51, %v1019_v52  ;;  %v6922_v3 = vcombine.low %v1007_v51, %v1019_v52 }
 0x463   : > { %6281 = vmatprep.subr.bf16.mxu0 %v6757_v57  ;;  %v6900_v57 = vcombine.low %v984_v47, %v996_v19  ;;  %v6925_v61 = vcombine.high %v1008_v53, %v1020_v55  ;;  %v6924_v4 = vcombine.low %v1008_v53, %v1020_v55 }
 0x464   : > { %6200 = vmatpush1.bf16.msra.mxu1 %v6754_v63  ;;  %v1031_v63 = vld [vmem:[%s8372_s8 + $0x700] sm:$0xff] }
 0x465   : > { %6282 = vmatpush1.bf16.msra.mxu0 %v6756_v0  ;;  %6201 = vmatprep.subr.bf16.mxu1 %v6779_v1  ;;  %v1043_v0 = vld [vmem:[%s8372_s8 + $0x760] sm:$0xff]  ;;  %v1032_v1 = vld [vmem:[%s8372_s8 + $0x708] sm:$0xff] }
 0x466   : > { %6283 = vmatprep.subr.bf16.mxu0 %v6781_v2  ;;  %v1044_v2 = vld [vmem:[%s8372_s8 + $0x768] sm:$0xff]  ;;  %v6947_v5 = vcombine.high %v1031_v63, %v1043_v0  ;;  %v6946_v10 = vcombine.low %v1031_v63, %v1043_v0 }
 0x467   : > { %v6949_v6 = vcombine.high %v1032_v1, %v1044_v2  ;;  %v6948_v11 = vcombine.low %v1032_v1, %v1044_v2 }
 0x468   : > { %6202 = vmatpush1.bf16.msra.mxu1 %v6778_v29  ;;  %v1055_v29 = vld [vmem:[%s8372_s8 + $0x7c0] sm:$0xff] }
 0x469   : > { %6284 = vmatpush1.bf16.msra.mxu0 %v6780_v7  ;;  %6203 = vmatprep.subr.bf16.mxu1 %v6803_v8  ;;  %v1067_v7 = vld [vmem:[%s8372_s8 + $0x820] sm:$0xff]  ;;  %v1056_v8 = vld [vmem:[%s8372_s8 + $0x7c8] sm:$0xff] }
 0x46a   : > { %6285 = vmatprep.subr.bf16.mxu0 %v6805_v9  ;;  %v1068_v9 = vld [vmem:[%s8372_s8 + $0x828] sm:$0xff]  ;;  %v6971_v12 = vcombine.high %v1055_v29, %v1067_v7  ;;  %v6970_v22 = vcombine.low %v1055_v29, %v1067_v7 }
 0x46b   : > { %v6973_v15 = vcombine.high %v1056_v8, %v1068_v9  ;;  %v6972_v23 = vcombine.low %v1056_v8, %v1068_v9 }
 0x46c   : > { %6204 = vmatpush1.bf16.msra.mxu1 %v6802_v16  ;;  %v1079_v16 = vld [vmem:[%s8372_s8 + $0x880] sm:$0xff] }
 0x46d   : > { %6286 = vmatpush1.bf16.msra.mxu0 %v6804_v18  ;;  %6205 = vmatprep.subr.bf16.mxu1 %v6827_v20  ;;  %v1091_v18 = vld [vmem:[%s8372_s8 + $0x8e0] sm:$0xff]  ;;  %v1080_v20 = vld [vmem:[%s8372_s8 + $0x888] sm:$0xff] }
 0x46e   : > { %6287 = vmatprep.subr.bf16.mxu0 %v6829_v21  ;;  %v1092_v21 = vld [vmem:[%s8372_s8 + $0x8e8] sm:$0xff]  ;;  %v6995_v24 = vcombine.high %v1079_v16, %v1091_v18  ;;  %v6994_v31 = vcombine.low %v1079_v16, %v1091_v18 }
 0x46f   : > { %v6997_v25 = vcombine.high %v1080_v20, %v1092_v21  ;;  %v6996_v34 = vcombine.low %v1080_v20, %v1092_v21  ;;  %v1236_v16 = vld [vmem:[%s8372_s8 + $0xd68] sm:$0xff]  ;;  %v1247_v21 = vld [vmem:[%s8372_s8 + $0xdc0] sm:$0xff] }
 0x470   : > { %6206 = vmatpush1.bf16.msra.mxu1 %v6826_v26  ;;  %v1103_v26 = vld [vmem:[%s8372_s8 + $0x940] sm:$0xff] }
 0x471   : > { %6288 = vmatpush1.bf16.msra.mxu0 %v6828_v27  ;;  %6207 = vmatprep.subr.bf16.mxu1 %v6851_v28  ;;  %v1115_v27 = vld [vmem:[%s8372_s8 + $0x9a0] sm:$0xff]  ;;  %v1104_v28 = vld [vmem:[%s8372_s8 + $0x948] sm:$0xff] }
 0x472   : > { %6289 = vmatprep.subr.bf16.mxu0 %v6853_v30  ;;  %v1116_v30 = vld [vmem:[%s8372_s8 + $0x9a8] sm:$0xff]  ;;  %v7019_v36 = vcombine.high %v1103_v26, %v1115_v27  ;;  %v7018_v45 = vcombine.low %v1103_v26, %v1115_v27 }
 0x473   : > { %v7021_v37 = vcombine.high %v1104_v28, %v1116_v30  ;;  %v7020_v46 = vcombine.low %v1104_v28, %v1116_v30 }
 0x474   : > { %6208 = vmatpush1.bf16.msra.mxu1 %v6850_v38  ;;  %v1127_v38 = vld [vmem:[%s8372_s8 + $0xa00] sm:$0xff] }
 0x475   : > { %6290 = vmatpush1.bf16.msra.mxu0 %v6852_v41  ;;  %6209 = vmatprep.subr.bf16.mxu1 %v6875_v43  ;;  %v1139_v41 = vld [vmem:[%s8372_s8 + $0xa60] sm:$0xff]  ;;  %v1128_v43 = vld [vmem:[%s8372_s8 + $0xa08] sm:$0xff] }
 0x476   : > { %6291 = vmatprep.subr.bf16.mxu0 %v6877_v44  ;;  %v1140_v44 = vld [vmem:[%s8372_s8 + $0xa68] sm:$0xff]  ;;  %v7043_v47 = vcombine.high %v1127_v38, %v1139_v41  ;;  %v7042_v51 = vcombine.low %v1127_v38, %v1139_v41 }
 0x477   : > { %v7045_v19 = vcombine.high %v1128_v43, %v1140_v44  ;;  %v7044_v52 = vcombine.low %v1128_v43, %v1140_v44 }
 0x478   : > { %6210 = vmatpush1.bf16.msra.mxu1 %v6874_v48  ;;  %v1151_v48 = vld [vmem:[%s8372_s8 + $0xac0] sm:$0xff] }
 0x479   : > { %6292 = vmatpush1.bf16.msra.mxu0 %v6876_v49  ;;  %6211 = vmatprep.subr.bf16.mxu1 %v6899_v59  ;;  %v1163_v49 = vld [vmem:[%s8372_s8 + $0xb20] sm:$0xff]  ;;  %v1152_v59 = vld [vmem:[%s8372_s8 + $0xac8] sm:$0xff] }
 0x47a   : > { %6293 = vmatprep.subr.bf16.mxu0 %v6901_v50  ;;  %v1164_v50 = vld [vmem:[%s8372_s8 + $0xb28] sm:$0xff]  ;;  %v7067_v53 = vcombine.high %v1151_v48, %v1163_v49  ;;  %v7066_v63 = vcombine.low %v1151_v48, %v1163_v49 }
 0x47b   : > { %v7069_v55 = vcombine.high %v1152_v59, %v1164_v50  ;;  %v7068_v0 = vcombine.low %v1152_v59, %v1164_v50 }
 0x47c   : > { %6212 = vmatpush1.bf16.msra.mxu1 %v6898_v56  ;;  %v1175_v56 = vld [vmem:[%s8372_s8 + $0xb80] sm:$0xff] }
 0x47d   : > { %6294 = vmatpush1.bf16.msra.mxu0 %v6900_v57  ;;  %6213 = vmatprep.subr.bf16.mxu1 %v6923_v58  ;;  %v1187_v57 = vld [vmem:[%s8372_s8 + $0xbe0] sm:$0xff]  ;;  %v1176_v58 = vld [vmem:[%s8372_s8 + $0xb88] sm:$0xff] }
 0x47e   : > { %6295 = vmatprep.subr.bf16.mxu0 %v6925_v61  ;;  %v1188_v61 = vld [vmem:[%s8372_s8 + $0xbe8] sm:$0xff]  ;;  %v7091_v1 = vcombine.high %v1175_v56, %v1187_v57  ;;  %v7090_v29 = vcombine.low %v1175_v56, %v1187_v57 }
 0x47f   : > { %v7093_v2 = vcombine.high %v1176_v58, %v1188_v61  ;;  %v7092_v7 = vcombine.low %v1176_v58, %v1188_v61  ;;  %v9116_v57 = vld [vmem:[%s8786_s5 + $0x8] sm:$0xff] }
 0x480   : > { %6214 = vmatpush1.bf16.msra.mxu1 %v6922_v3  ;;  %v1199_v3 = vld [vmem:[%s8372_s8 + $0xc40] sm:$0xff] }
 0x481   : > { %6296 = vmatpush1.bf16.msra.mxu0 %v6924_v4  ;;  %6215 = vmatprep.subr.bf16.mxu1 %v6947_v5  ;;  %v1211_v4 = vld [vmem:[%s8372_s8 + $0xca0] sm:$0xff]  ;;  %v1200_v5 = vld [vmem:[%s8372_s8 + $0xc48] sm:$0xff] }
 0x482   : > { %6297 = vmatprep.subr.bf16.mxu0 %v6949_v6  ;;  %v1212_v6 = vld [vmem:[%s8372_s8 + $0xca8] sm:$0xff]  ;;  %v7115_v8 = vcombine.high %v1199_v3, %v1211_v4 }
 0x483   : > { %v7117_v9 = vcombine.high %v1200_v5, %v1212_v6  ;;  %v7116_v18 = vcombine.low %v1200_v5, %v1212_v6  ;;  %v1624_v5 = vrot.slane %v9116_v57, %v8537_v17  ;;  %v1620_v6 = vrot.slane %v9116_v57, %v8391_v62 }
 0x484   : > { %6216 = vmatpush1.bf16.msra.mxu1 %v6946_v10  ;;  %v1223_v10 = vld [vmem:[%s8372_s8 + $0xd00] sm:$0xff] }
 0x485   : > { %6298 = vmatpush1.bf16.msra.mxu0 %v6948_v11  ;;  %6217 = vmatprep.subr.bf16.mxu1 %v6971_v12  ;;  %v1235_v11 = vld [vmem:[%s8372_s8 + $0xd60] sm:$0xff]  ;;  %v7114_v12 = vcombine.low %v1199_v3, %v1211_v4  ;;  %v1344_v3 = vld [vmem:[%s8372_s8 + $0x10c8] sm:$0xff] }
 0x486   : > { %6299 = vmatprep.subr.bf16.mxu0 %v6973_v15  ;;  %v1224_v15 = vld [vmem:[%s8372_s8 + $0xd08] sm:$0xff]  ;;  %v7139_v20 = vcombine.high %v1223_v10, %v1235_v11  ;;  %v7138_v26 = vcombine.low %v1223_v10, %v1235_v11 }
 0x487   : > { %v7140_v27 = vcombine.low %v1224_v15, %v1236_v16  ;;  %v1356_v4 = vld [vmem:[%s8372_s8 + $0x1128] sm:$0xff] }
 0x488   : > { %6218 = vmatpush1.bf16.msra.mxu1 %v6970_v22  ;;  %v1259_v22 = vld [vmem:[%s8372_s8 + $0xe20] sm:$0xff]  ;;  %v7261_v11 = vcombine.high %v1344_v3, %v1356_v4 }
 0x489   : > { %6300 = vmatpush1.bf16.msra.mxu0 %v6972_v23  ;;  %6219 = vmatprep.subr.bf16.mxu1 %v6995_v24  ;;  %v7141_v23 = vcombine.high %v1224_v15, %v1236_v16  ;;  %v1248_v24 = vld [vmem:[%s8372_s8 + $0xdc8] sm:$0xff]  ;;  %v7163_v28 = vcombine.high %v1247_v21, %v1259_v22  ;;  %v7162_v38 = vcombine.low %v1247_v21, %v1259_v22  ;;  %v1379_v15 = vld [vmem:[%s8372_s8 + $0x11e0] sm:$0xff] }
 0x48a   : > { %6301 = vmatprep.subr.bf16.mxu0 %v6997_v25  ;;  %v1260_v25 = vld [vmem:[%s8372_s8 + $0xe28] sm:$0xff] }
 0x48b   : > { %v7165_v30 = vcombine.high %v1248_v24, %v1260_v25  ;;  %v7164_v41 = vcombine.low %v1248_v24, %v1260_v25  ;;  %v1368_v21 = vld [vmem:[%s8372_s8 + $0x1188] sm:$0xff] }
 0x48c   : > { %6220 = vmatpush1.bf16.msra.mxu1 %v6994_v31  ;;  %v1271_v31 = vld [vmem:[%s8372_s8 + $0xe80] sm:$0xff]  ;;  %v1380_v22 = vld [vmem:[%s8372_s8 + $0x11e8] sm:$0xff] }
 0x48d   : > { %6302 = vmatpush1.bf16.msra.mxu0 %v6996_v34  ;;  %6221 = vmatprep.subr.bf16.mxu1 %v7019_v36  ;;  %v1283_v34 = vld [vmem:[%s8372_s8 + $0xee0] sm:$0xff]  ;;  %v1272_v36 = vld [vmem:[%s8372_s8 + $0xe88] sm:$0xff] }
 0x48e   : > { %6303 = vmatprep.subr.bf16.mxu0 %v7021_v37  ;;  %v1284_v37 = vld [vmem:[%s8372_s8 + $0xee8] sm:$0xff]  ;;  %v7187_v43 = vcombine.high %v1271_v31, %v1283_v34  ;;  %v7186_v48 = vcombine.low %v1271_v31, %v1283_v34  ;;  %v7260_v34 = vcombine.low %v1344_v3, %v1356_v4 }
 0x48f   : > { %v7189_v44 = vcombine.high %v1272_v36, %v1284_v37  ;;  %v7188_v49 = vcombine.low %v1272_v36, %v1284_v37 }
 0x490   : > { %6222 = vmatpush1.bf16.msra.mxu1 %v7018_v45  ;;  %v1295_v45 = vld [vmem:[%s8372_s8 + $0xf40] sm:$0xff] }
 0x491   : > { %6304 = vmatpush1.bf16.msra.mxu0 %v7020_v46  ;;  %6223 = vmatprep.subr.bf16.mxu1 %v7043_v47  ;;  %v1307_v46 = vld [vmem:[%s8372_s8 + $0xfa0] sm:$0xff]  ;;  %v1296_v47 = vld [vmem:[%s8372_s8 + $0xf48] sm:$0xff] }
 0x492   : > { %6305 = vmatprep.subr.bf16.mxu0 %v7045_v19  ;;  %v1308_v19 = vld [vmem:[%s8372_s8 + $0xfa8] sm:$0xff]  ;;  %v7211_v59 = vcombine.high %v1295_v45, %v1307_v46  ;;  %v7210_v56 = vcombine.low %v1295_v45, %v1307_v46 }
 0x493   : > { %v7213_v50 = vcombine.high %v1296_v47, %v1308_v19  ;;  %v7212_v58 = vcombine.low %v1296_v47, %v1308_v19  ;;  %v1404_v45 = vld [vmem:[%s8372_s8 + $0x12a8] sm:$0xff]  ;;  %v7284_v47 = vcombine.low %v1368_v21, %v1380_v22 }
 0x494   : > { %6224 = vmatpush1.bf16.msra.mxu1 %v7042_v51  ;;  %v1319_v51 = vld [vmem:[%s8372_s8 + $0x1000] sm:$0xff] }
 0x495   : > { %6306 = vmatpush1.bf16.msra.mxu0 %v7044_v52  ;;  %6225 = vmatprep.subr.bf16.mxu1 %v7067_v53  ;;  %v1331_v52 = vld [vmem:[%s8372_s8 + $0x1060] sm:$0xff]  ;;  %v1320_v53 = vld [vmem:[%s8372_s8 + $0x1008] sm:$0xff] }
 0x496   : > { %6307 = vmatprep.subr.bf16.mxu0 %v7069_v55  ;;  %v1332_v55 = vld [vmem:[%s8372_s8 + $0x1068] sm:$0xff]  ;;  %v7235_v61 = vcombine.high %v1319_v51, %v1331_v52 }
 0x498   : > { %6226 = vmatpush1.bf16.msra.mxu1 %v7066_v63  ;;  %v7237_v63 = vcombine.high %v1320_v53, %v1332_v55 }
 0x499   : > { %6308 = vmatpush1.bf16.msra.mxu0 %v7068_v0  ;;  %6227 = vmatprep.subr.bf16.mxu1 %v7091_v1  ;;  %v1343_v0 = vld [vmem:[%s8372_s8 + $0x10c0] sm:$0xff] }
 0x49a   : > { %6309 = vmatprep.subr.bf16.mxu0 %v7093_v2  ;;  %v1355_v1 = vld [vmem:[%s8372_s8 + $0x1120] sm:$0xff]  ;;  %v1616_v2 = vrot.slane %v9116_v57, %v8388_v60 }
 0x49c   : > { %6228 = vmatpush1.bf16.msra.mxu1 %v7090_v29  ;;  %v7234_v29 = vcombine.low %v1319_v51, %v1331_v52  ;;  %v1428_v51 = vld [vmem:[%s8372_s8 + $0x1368] sm:$0xff] }
 0x49d   : > { %6310 = vmatpush1.bf16.msra.mxu0 %v7092_v7  ;;  %6238 = vmatprep.subr.bf16.mxu1 %v7115_v8  ;;  %v1628_v7 = vrot.slane %v9116_v57, %v8462_v14  ;;  %v7236_v8 = vcombine.low %v1320_v53, %v1332_v55 }
 0x49e   : > { %6320 = vmatprep.subr.bf16.mxu0 %v7117_v9  ;;  %v7259_v9 = vcombine.high %v1343_v0, %v1355_v1 }
 0x49f   : > { %6230 = vmatmul.mubr.bf16.vlgmr.msra.gmra.mrb[20].mxu1 %v8478_v33 }
 0x4a0   : > { %6312 = vmatmul.mubr.bf16.vlgmr.msra.gmra.mrb[20].mxu0 %v8478_v33  ;;  %6239 = vmatpush1.bf16.msra.mxu1 %v7114_v12  ;;  %v1367_v12 = vld [vmem:[%s8372_s8 + $0x1180] sm:$0xff] }
 0x4a1   : > { %6270 = vmatprep.mubr.bf16.mxu1 %v8486_v40  ;;  %6321 = vmatpush1.bf16.msra.mxu0 %v7116_v18  ;;  %v7283_v36 = vcombine.high %v1367_v12, %v1379_v15  ;;  %v7282_v46 = vcombine.low %v1367_v12, %v1379_v15 }
 0x4a2   : > { %6352 = vmatprep.mubr.bf16.mxu0 %v8486_v40  ;;  %6240 = vmatprep.subr.bf16.mxu1 %v7139_v20 }
 0x4a3   : > { %6322 = vmatprep.subr.bf16.mxu0 %v7141_v23 }
 0x4a4   : > { %6241 = vmatpush1.bf16.msra.mxu1 %v7138_v26 }
 0x4a5   : > { %6323 = vmatpush1.bf16.msra.mxu0 %v7140_v27  ;;  %6242 = vmatprep.subr.bf16.mxu1 %v7163_v28  ;;  %v7258_v27 = vcombine.low %v1343_v0, %v1355_v1  ;;  %v1440_v0 = vld [vmem:[%s8372_s8 + $0x13c8] sm:$0xff] }
 0x4a6   : > { %6324 = vmatprep.subr.bf16.mxu0 %v7165_v30  ;;  %v1452_v1 = vld [vmem:[%s8372_s8 + $0x1428] sm:$0xff] }
 0x4a7   : > { %v7356_v15 = vcombine.low %v1440_v0, %v1452_v1 }
 0x4a8   : > { %6243 = vmatpush1.bf16.msra.mxu1 %v7162_v38  ;;  %v7285_v38 = vcombine.high %v1368_v21, %v1380_v22  ;;  %v1499_v21 = vld [vmem:[%s8372_s8 + $0x15a0] sm:$0xff]  ;;  %v1488_v22 = vld [vmem:[%s8372_s8 + $0x1548] sm:$0xff] }
 0x4a9   : > { %6325 = vmatpush1.bf16.msra.mxu0 %v7164_v41  ;;  %6244 = vmatprep.subr.bf16.mxu1 %v7187_v43  ;;  %v1391_v41 = vld [vmem:[%s8372_s8 + $0x1240] sm:$0xff] }
 0x4aa   : > { %6326 = vmatprep.subr.bf16.mxu0 %v7189_v44  ;;  %v1403_v43 = vld [vmem:[%s8372_s8 + $0x12a0] sm:$0xff]  ;;  %v1392_v44 = vld [vmem:[%s8372_s8 + $0x1248] sm:$0xff] }
 0x4ab   : > { %v7307_v19 = vcombine.high %v1391_v41, %v1403_v43  ;;  %v7306_v52 = vcombine.low %v1391_v41, %v1403_v43  ;;  %v7308_v53 = vcombine.low %v1392_v44, %v1404_v45  ;;  %v1535_v43 = vld [vmem:[%s8372_s8 + $0x16c0] sm:$0xff] }
 0x4ac   : > { %6245 = vmatpush1.bf16.msra.mxu1 %v7186_v48  ;;  %v7309_v48 = vcombine.high %v1392_v44, %v1404_v45  ;;  %v1547_v44 = vld [vmem:[%s8372_s8 + $0x1720] sm:$0xff]  ;;  %v1536_v45 = vld [vmem:[%s8372_s8 + $0x16c8] sm:$0xff] }
 0x4ad   : > { %6327 = vmatpush1.bf16.msra.mxu0 %v7188_v49  ;;  %6246 = vmatprep.subr.bf16.mxu1 %v7211_v59  ;;  %v1415_v49 = vld [vmem:[%s8372_s8 + $0x1300] sm:$0xff] }
 0x4ae   : > { %6328 = vmatprep.subr.bf16.mxu0 %v7213_v50  ;;  %v1427_v59 = vld [vmem:[%s8372_s8 + $0x1360] sm:$0xff]  ;;  %v1416_v50 = vld [vmem:[%s8372_s8 + $0x1308] sm:$0xff] }
 0x4af   : > { %v7331_v55 = vcombine.high %v1415_v49, %v1427_v59  ;;  %v7330_v3 = vcombine.low %v1415_v49, %v1427_v59  ;;  %v1559_v59 = vld [vmem:[%s8372_s8 + $0x1780] sm:$0xff] }
 0x4b0   : > { %6247 = vmatpush1.bf16.msra.mxu1 %v7210_v56  ;;  %v7333_v56 = vcombine.high %v1416_v50, %v1428_v51 }
 0x4b1   : > { %6329 = vmatpush1.bf16.msra.mxu0 %v7212_v58  ;;  %6248 = vmatprep.subr.bf16.mxu1 %v7235_v61  ;;  %v1439_v58 = vld [vmem:[%s8372_s8 + $0x13c0] sm:$0xff] }
 0x4b2   : > { %v5944_v10 = vpop.f32.mrb[12].mxu1  ;;  %6330 = vmatprep.subr.bf16.mxu0 %v7237_v63  ;;  %v1451_v61 = vld [vmem:[%s8372_s8 + $0x1420] sm:$0xff] }
 0x4b3   : > { %v7654_v16 = vadd.f32 %v5944_v10, %v1616_v2  ;;  %v6026_v18 = vpop.f32.mrb[12].mxu0  ;;  %v5946_v20 = vpop.f32.mrb[13].mxu1  ;;  %v1464_v10 = vld [vmem:[%s8372_s8 + $0x1488] sm:$0xff]  ;;  %v7354_v12 = vcombine.low %v1439_v58, %v1451_v61 }
 0x4b4   : > { %v7656_v23 = vadd.f32 %v6026_v18, %v1624_v5  ;;  %v7655_v24 = vadd.f32 %v5946_v20, %v1620_v6  ;;  %v6028_v25 = vpop.f32.mrb[13].mxu0  ;;  %v5948_v26 = vpop.f32.mrb[14].mxu1  ;;  %6249 = vmatpush1.bf16.msra.mxu1 %v7234_v29  ;;  %v7332_v5 = vcombine.low %v1416_v50, %v1428_v51  ;;  %v7355_v6 = vcombine.high %v1439_v58, %v1451_v61  ;;  %v1487_v20 = vld [vmem:[%s8372_s8 + $0x1540] sm:$0xff]  ;;  %v1560_v51 = vld [vmem:[%s8372_s8 + $0x1788] sm:$0xff]  ;;  %v817_v61 = vld [vmem:[%s8372_s8 + $0x50] sm:$0xff] }
 0x4b5   : > { %7831 = vtanh.f32 %v7654_v16  ;;  %v7657_v28 = vadd.f32 %v6028_v25, %v1628_v7  ;;  %v6030_v30 = vpop.f32.mrb[14].mxu0  ;;  %6331 = vmatpush1.bf16.msra.mxu0 %v7236_v8  ;;  %v5949_v31 = vpop.f32.mrb[15].mxu1  ;;  %6250 = vmatprep.subr.bf16.mxu1 %v7259_v9  ;;  %v7357_v7 = vcombine.high %v1440_v0, %v1452_v1  ;;  %v1463_v8 = vld [vmem:[%s8372_s8 + $0x1480] sm:$0xff]  ;;  %v7403_v26 = vcombine.high %v1487_v20, %v1499_v21  ;;  %v818_v0 = vld [vmem:[%s8372_s8 + $0x58] sm:$0xff] }
 0x4b6   : > { %7833 = vtanh.f32 %v7656_v23  ;;  %v6031_v37 = vpop.f32.mrb[15].mxu0  ;;  %6332 = vmatprep.subr.bf16.mxu0 %v7261_v11  ;;  %v1475_v9 = vld [vmem:[%s8372_s8 + $0x14e0] sm:$0xff]  ;;  %v1476_v11 = vld [vmem:[%s8372_s8 + $0x14e8] sm:$0xff]  ;;  %v830_v1 = vld [vmem:[%s8372_s8 + $0xb8] sm:$0xff] }
 0x4b7   : > { %7835 = vtanh.f32 %v7655_v24  ;;  %v7379_v16 = vcombine.high %v1463_v8, %v1475_v9  ;;  %v7381_v18 = vcombine.high %v1464_v10, %v1476_v11  ;;  %v1500_v23 = vld [vmem:[%s8372_s8 + $0x15a8] sm:$0xff]  ;;  %v7378_v24 = vcombine.low %v1463_v8, %v1475_v9  ;;  %v1523_v30 = vld [vmem:[%s8372_s8 + $0x1660] sm:$0xff]  ;;  %v842_v8 = vld [vmem:[%s8372_s8 + $0x118] sm:$0xff] }
 0x4b8   : > { %7837 = vtanh.f32 %v7657_v28  ;;  %6251 = vmatpush1.bf16.msra.mxu1 %v7258_v27  ;;  %v7380_v25 = vcombine.low %v1464_v10, %v1476_v11  ;;  %v7405_v27 = vcombine.high %v1488_v22, %v1500_v23  ;;  %v1511_v28 = vld [vmem:[%s8372_s8 + $0x1600] sm:$0xff]  ;;  %v1512_v31 = vld [vmem:[%s8372_s8 + $0x1608] sm:$0xff]  ;;  %v7404_v37 = vcombine.low %v1488_v22, %v1500_v23  ;;  %v854_v9 = vld [vmem:[%s8372_s8 + $0x178] sm:$0xff] }
 0x4b9   : > { %6333 = vmatpush1.bf16.msra.mxu0 %v7260_v34  ;;  %6252 = vmatprep.subr.bf16.mxu1 %v7283_v36  ;;  %v1524_v34 = vld [vmem:[%s8372_s8 + $0x1668] sm:$0xff]  ;;  %v7402_v36 = vcombine.low %v1487_v20, %v1499_v21  ;;  %v1571_v50 = vld [vmem:[%s8372_s8 + $0x17e0] sm:$0xff]  ;;  %v6736_v10 = vcombine.low %v818_v0, %v830_v1  ;;  %v878_v20 = vld [vmem:[%s8372_s8 + $0x238] sm:$0xff]  ;;  %v6760_v22 = vcombine.low %v842_v8, %v854_v9 }
 0x4ba   : > { %6334 = vmatprep.subr.bf16.mxu0 %v7285_v38  ;;  %v7427_v38 = vcombine.high %v1511_v28, %v1523_v30  ;;  %v7429_v41 = vcombine.high %v1512_v31, %v1524_v34 }
 0x4bc   : > { %6253 = vmatpush1.bf16.msra.mxu1 %v7282_v46  ;;  %v1548_v46 = vld [vmem:[%s8372_s8 + $0x1728] sm:$0xff] }
 0x4bd   : > { %6335 = vmatpush1.bf16.msra.mxu0 %v7284_v47  ;;  %6254 = vmatprep.subr.bf16.mxu1 %v7307_v19  ;;  %v7426_v47 = vcombine.low %v1511_v28, %v1523_v30  ;;  %v7428_v19 = vcombine.low %v1512_v31, %v1524_v34  ;;  %v7453_v49 = vcombine.high %v1536_v45, %v1548_v46  ;;  %v902_v28 = vld [vmem:[%s8372_s8 + $0x2f8] sm:$0xff] }
 0x4be   : > { %6336 = vmatprep.subr.bf16.mxu0 %v7309_v48  ;;  %v7451_v48 = vcombine.high %v1535_v43, %v1547_v44 }
 0x4bf   : > { %v7832_v63 = vpop.eup %7831 }
 0x4c0   : > { %v7834_v2 = vpop.eup %7833  ;;  %6557 = vst [vmem:[%s8829_s9 + $0x40] sm:$0xff] %v7832_v63  ;;  %6255 = vmatpush1.bf16.msra.mxu1 %v7306_v52  ;;  %v1572_v52 = vld [vmem:[%s8372_s8 + $0x17e8] sm:$0xff]  ;;  %v829_v63 = vld [vmem:[%s8372_s8 + $0xb0] sm:$0xff] }
 0x4c1   : > { %v7836_v4 = vpop.eup %7835  ;;  %6559 = vst [vmem:[%s8829_s9 + $0x50] sm:$0xff] %v7834_v2  ;;  %6337 = vmatpush1.bf16.msra.mxu0 %v7308_v53  ;;  %6256 = vmatprep.subr.bf16.mxu1 %v7331_v55  ;;  %v7450_v53 = vcombine.low %v1535_v43, %v1547_v44  ;;  %v7452_v55 = vcombine.low %v1536_v45, %v1548_v46 }
 0x4c2   : > { %v7838_v29 = vpop.eup %7837  ;;  %6558 = vst [vmem:[%s8829_s9 + $0x48] sm:$0xff] %v7836_v4  ;;  %6338 = vmatprep.subr.bf16.mxu0 %v7333_v56  ;;  %v7475_v56 = vcombine.high %v1559_v59, %v1571_v50  ;;  %v7477_v58 = vcombine.high %v1560_v51, %v1572_v52  ;;  %v7474_v2 = vcombine.low %v1559_v59, %v1571_v50 }
 0x4c3   : > { %6560 = vst [vmem:[%s8829_s9 + $0x58] sm:$0xff] %v7838_v29  ;;  %v6735_v4 = vcombine.high %v817_v61, %v829_v63  ;;  %v853_v29 = vld [vmem:[%s8372_s8 + $0x170] sm:$0xff] }
 0x4c4   : > { %6257 = vmatpush1.bf16.msra.mxu1 %v7330_v3  ;;  %v7476_v3 = vcombine.low %v1560_v51, %v1572_v52 }
 0x4c5   : > { %6339 = vmatpush1.bf16.msra.mxu0 %v7332_v5  ;;  %6258 = vmatprep.subr.bf16.mxu1 %v7355_v6  ;;  %v6737_v5 = vcombine.high %v818_v0, %v830_v1  ;;  %v841_v6 = vld [vmem:[%s8372_s8 + $0x110] sm:$0xff] }
 0x4c6   : > { %6340 = vmatprep.subr.bf16.mxu0 %v7357_v7  ;;  %v6734_v7 = vcombine.low %v817_v61, %v829_v63  ;;  %v6759_v11 = vcombine.high %v841_v6, %v853_v29  ;;  %v6758_v21 = vcombine.low %v841_v6, %v853_v29 }
 0x4c8   : > { %6259 = vmatpush1.bf16.msra.mxu1 %v7354_v12  ;;  %v865_v12 = vld [vmem:[%s8372_s8 + $0x1d0] sm:$0xff] }
 0x4c9   : > { %6341 = vmatpush1.bf16.msra.mxu0 %v7356_v15  ;;  %6260 = vmatprep.subr.bf16.mxu1 %v7379_v16  ;;  %v877_v15 = vld [vmem:[%s8372_s8 + $0x230] sm:$0xff]  ;;  %v6761_v16 = vcombine.high %v842_v8, %v854_v9 }
 0x4ca   : > { %6342 = vmatprep.subr.bf16.mxu0 %v7381_v18  ;;  %v866_v18 = vld [vmem:[%s8372_s8 + $0x1d8] sm:$0xff]  ;;  %v6783_v23 = vcombine.high %v865_v12, %v877_v15  ;;  %v6782_v30 = vcombine.low %v865_v12, %v877_v15  ;;  %v1009_v9 = vld [vmem:[%s8372_s8 + $0x650] sm:$0xff] }
 0x4cb   : > { %v6784_v31 = vcombine.low %v866_v18, %v878_v20  ;;  %v1022_v12 = vld [vmem:[%s8372_s8 + $0x6b8] sm:$0xff] }
 0x4cc   : > { %6261 = vmatpush1.bf16.msra.mxu1 %v7378_v24  ;;  %v6785_v24 = vcombine.high %v866_v18, %v878_v20 }
 0x4cd   : > { %6343 = vmatpush1.bf16.msra.mxu0 %v7380_v25  ;;  %6262 = vmatprep.subr.bf16.mxu1 %v7403_v26  ;;  %v889_v25 = vld [vmem:[%s8372_s8 + $0x290] sm:$0xff] }
 0x4ce   : > { %6344 = vmatprep.subr.bf16.mxu0 %v7405_v27  ;;  %v901_v26 = vld [vmem:[%s8372_s8 + $0x2f0] sm:$0xff]  ;;  %v890_v27 = vld [vmem:[%s8372_s8 + $0x298] sm:$0xff] }
 0x4cf   : > { %v6807_v34 = vcombine.high %v889_v25, %v901_v26  ;;  %v6806_v43 = vcombine.low %v889_v25, %v901_v26  ;;  %v6808_v44 = vcombine.low %v890_v27, %v902_v28 }
 0x4d0   : > { %6263 = vmatpush1.bf16.msra.mxu1 %v7402_v36  ;;  %v913_v36 = vld [vmem:[%s8372_s8 + $0x350] sm:$0xff] }
 0x4d1   : > { %6345 = vmatpush1.bf16.msra.mxu0 %v7404_v37  ;;  %6264 = vmatprep.subr.bf16.mxu1 %v7427_v38  ;;  %v925_v37 = vld [vmem:[%s8372_s8 + $0x3b0] sm:$0xff]  ;;  %v914_v38 = vld [vmem:[%s8372_s8 + $0x358] sm:$0xff] }
 0x4d2   : > { %6346 = vmatprep.subr.bf16.mxu0 %v7429_v41  ;;  %v926_v41 = vld [vmem:[%s8372_s8 + $0x3b8] sm:$0xff]  ;;  %v6831_v45 = vcombine.high %v913_v36, %v925_v37  ;;  %v6830_v59 = vcombine.low %v913_v36, %v925_v37 }
 0x4d3   : > { %v6833_v46 = vcombine.high %v914_v38, %v926_v41  ;;  %v6832_v50 = vcombine.low %v914_v38, %v926_v41 }
 0x4d4   : > { %6265 = vmatpush1.bf16.msra.mxu1 %v7426_v47  ;;  %v937_v47 = vld [vmem:[%s8372_s8 + $0x410] sm:$0xff] }
 0x4d5   : > { %6347 = vmatpush1.bf16.msra.mxu0 %v7428_v19  ;;  %6266 = vmatprep.subr.bf16.mxu1 %v7451_v48  ;;  %v949_v19 = vld [vmem:[%s8372_s8 + $0x470] sm:$0xff]  ;;  %v938_v48 = vld [vmem:[%s8372_s8 + $0x418] sm:$0xff] }
 0x4d6   : > { %6348 = vmatprep.subr.bf16.mxu0 %v7453_v49  ;;  %v950_v49 = vld [vmem:[%s8372_s8 + $0x478] sm:$0xff]  ;;  %v6855_v51 = vcombine.high %v937_v47, %v949_v19  ;;  %v6854_v61 = vcombine.low %v937_v47, %v949_v19 }
 0x4d7   : > { %v6857_v52 = vcombine.high %v938_v48, %v950_v49  ;;  %v6856_v63 = vcombine.low %v938_v48, %v950_v49 }
 0x4d8   : > { %6267 = vmatpush1.bf16.msra.mxu1 %v7450_v53  ;;  %v961_v53 = vld [vmem:[%s8372_s8 + $0x4d0] sm:$0xff] }
 0x4d9   : > { %6349 = vmatpush1.bf16.msra.mxu0 %v7452_v55  ;;  %6268 = vmatprep.subr.bf16.mxu1 %v7475_v56  ;;  %v973_v55 = vld [vmem:[%s8372_s8 + $0x530] sm:$0xff]  ;;  %v962_v56 = vld [vmem:[%s8372_s8 + $0x4d8] sm:$0xff] }
 0x4da   : > { %6350 = vmatprep.subr.bf16.mxu0 %v7477_v58  ;;  %v974_v58 = vld [vmem:[%s8372_s8 + $0x538] sm:$0xff]  ;;  %v6879_v0 = vcombine.high %v961_v53, %v973_v55  ;;  %v6878_v6 = vcombine.low %v961_v53, %v973_v55 }
 0x4db   : > { %v6881_v1 = vcombine.high %v962_v56, %v974_v58  ;;  %v6880_v29 = vcombine.low %v962_v56, %v974_v58 }
 0x4dc   : > { %6269 = vmatpush1.bf16.msra.mxu1 %v7474_v2  ;;  %v985_v2 = vld [vmem:[%s8372_s8 + $0x590] sm:$0xff] }
 0x4dd   : > { %6351 = vmatpush1.bf16.msra.mxu0 %v7476_v3  ;;  %6361 = vmatprep.subr.bf16.mxu1 %v6735_v4  ;;  %v997_v3 = vld [vmem:[%s8372_s8 + $0x5f0] sm:$0xff]  ;;  %v986_v4 = vld [vmem:[%s8372_s8 + $0x598] sm:$0xff] }
 0x4de   : > { %6443 = vmatprep.subr.bf16.mxu0 %v6737_v5  ;;  %v998_v5 = vld [vmem:[%s8372_s8 + $0x5f8] sm:$0xff]  ;;  %v6902_v15 = vcombine.low %v985_v2, %v997_v3 }
 0x4df   : > { %6271 = vmatmul.mubr.bf16.vlgmr.msra.gmra.mrb[20].mxu1 %v8558_v54  ;;  %v6905_v8 = vcombine.high %v986_v4, %v998_v5 }
 0x4e0   : > { %6353 = vmatmul.mubr.bf16.vlgmr.msra.gmra.mrb[20].mxu0 %v8558_v54  ;;  %6362 = vmatpush1.bf16.msra.mxu1 %v6734_v7  ;;  %v6903_v7 = vcombine.high %v985_v2, %v997_v3 }
 0x4e1   : > { %6393 = vmatprep.mubr.bf16.mxu1 %v8476_v32  ;;  %6444 = vmatpush1.bf16.msra.mxu0 %v6736_v10  ;;  %v1021_v10 = vld [vmem:[%s8372_s8 + $0x6b0] sm:$0xff] }
 0x4e2   : > { %6475 = vmatprep.mubr.bf16.mxu0 %v8476_v32  ;;  %6363 = vmatprep.subr.bf16.mxu1 %v6759_v11  ;;  %v6809_v32 = vcombine.high %v890_v27, %v902_v28  ;;  %v1010_v11 = vld [vmem:[%s8372_s8 + $0x658] sm:$0xff]  ;;  %v6927_v18 = vcombine.high %v1009_v9, %v1021_v10  ;;  %v6926_v25 = vcombine.low %v1009_v9, %v1021_v10 }
 0x4e3   : > { %6445 = vmatprep.subr.bf16.mxu0 %v6761_v16  ;;  %v6904_v16 = vcombine.low %v986_v4, %v998_v5  ;;  %v6929_v20 = vcombine.high %v1010_v11, %v1022_v12  ;;  %v6928_v26 = vcombine.low %v1010_v11, %v1022_v12 }
 0x4e4   : > { %6364 = vmatpush1.bf16.msra.mxu1 %v6758_v21  ;;  %v1033_v21 = vld [vmem:[%s8372_s8 + $0x710] sm:$0xff] }
 0x4e5   : > { %6446 = vmatpush1.bf16.msra.mxu0 %v6760_v22  ;;  %6365 = vmatprep.subr.bf16.mxu1 %v6783_v23  ;;  %v1045_v22 = vld [vmem:[%s8372_s8 + $0x770] sm:$0xff]  ;;  %v1034_v23 = vld [vmem:[%s8372_s8 + $0x718] sm:$0xff] }
 0x4e6   : > { %6447 = vmatprep.subr.bf16.mxu0 %v6785_v24  ;;  %v1046_v24 = vld [vmem:[%s8372_s8 + $0x778] sm:$0xff]  ;;  %v6951_v27 = vcombine.high %v1033_v21, %v1045_v22  ;;  %v6950_v36 = vcombine.low %v1033_v21, %v1045_v22 }
 0x4e7   : > { %v6953_v28 = vcombine.high %v1034_v23, %v1046_v24  ;;  %v6952_v37 = vcombine.low %v1034_v23, %v1046_v24 }
 0x4e8   : > { %6366 = vmatpush1.bf16.msra.mxu1 %v6782_v30  ;;  %v1057_v30 = vld [vmem:[%s8372_s8 + $0x7d0] sm:$0xff] }
 0x4e9   : > { %6448 = vmatpush1.bf16.msra.mxu0 %v6784_v31  ;;  %6367 = vmatprep.subr.bf16.mxu1 %v6807_v34  ;;  %v1069_v31 = vld [vmem:[%s8372_s8 + $0x830] sm:$0xff]  ;;  %v1058_v34 = vld [vmem:[%s8372_s8 + $0x7d8] sm:$0xff] }
 0x4ea   : > { %6449 = vmatprep.subr.bf16.mxu0 %v6809_v32  ;;  %v1070_v32 = vld [vmem:[%s8372_s8 + $0x838] sm:$0xff]  ;;  %v6975_v38 = vcombine.high %v1057_v30, %v1069_v31  ;;  %v6974_v47 = vcombine.low %v1057_v30, %v1069_v31 }
 0x4eb   : > { %v6977_v41 = vcombine.high %v1058_v34, %v1070_v32  ;;  %v6976_v19 = vcombine.low %v1058_v34, %v1070_v32 }
 0x4ec   : > { %6368 = vmatpush1.bf16.msra.mxu1 %v6806_v43  ;;  %v1081_v43 = vld [vmem:[%s8372_s8 + $0x890] sm:$0xff] }
 0x4ed   : > { %6450 = vmatpush1.bf16.msra.mxu0 %v6808_v44  ;;  %6369 = vmatprep.subr.bf16.mxu1 %v6831_v45  ;;  %v1093_v44 = vld [vmem:[%s8372_s8 + $0x8f0] sm:$0xff]  ;;  %v1082_v45 = vld [vmem:[%s8372_s8 + $0x898] sm:$0xff] }
 0x4ee   : > { %6451 = vmatprep.subr.bf16.mxu0 %v6833_v46  ;;  %v1094_v46 = vld [vmem:[%s8372_s8 + $0x8f8] sm:$0xff]  ;;  %v6999_v48 = vcombine.high %v1081_v43, %v1093_v44  ;;  %v6998_v53 = vcombine.low %v1081_v43, %v1093_v44 }
 0x4ef   : > { %v7001_v49 = vcombine.high %v1082_v45, %v1094_v46  ;;  %v7000_v55 = vcombine.low %v1082_v45, %v1094_v46  ;;  %v1238_v43 = vld [vmem:[%s8372_s8 + $0xd78] sm:$0xff]  ;;  %v1249_v46 = vld [vmem:[%s8372_s8 + $0xdd0] sm:$0xff] }
 0x4f0   : > { %6370 = vmatpush1.bf16.msra.mxu1 %v6830_v59  ;;  %v1105_v59 = vld [vmem:[%s8372_s8 + $0x950] sm:$0xff] }
 0x4f1   : > { %6452 = vmatpush1.bf16.msra.mxu0 %v6832_v50  ;;  %6371 = vmatprep.subr.bf16.mxu1 %v6855_v51  ;;  %v1117_v50 = vld [vmem:[%s8372_s8 + $0x9b0] sm:$0xff]  ;;  %v1106_v51 = vld [vmem:[%s8372_s8 + $0x958] sm:$0xff] }
 0x4f2   : > { %6453 = vmatprep.subr.bf16.mxu0 %v6857_v52  ;;  %v1118_v52 = vld [vmem:[%s8372_s8 + $0x9b8] sm:$0xff]  ;;  %v7023_v56 = vcombine.high %v1105_v59, %v1117_v50  ;;  %v7022_v2 = vcombine.low %v1105_v59, %v1117_v50 }
 0x4f3   : > { %v7025_v58 = vcombine.high %v1106_v51, %v1118_v52  ;;  %v7024_v3 = vcombine.low %v1106_v51, %v1118_v52 }
 0x4f4   : > { %6372 = vmatpush1.bf16.msra.mxu1 %v6854_v61  ;;  %v1129_v61 = vld [vmem:[%s8372_s8 + $0xa10] sm:$0xff] }
 0x4f5   : > { %6454 = vmatpush1.bf16.msra.mxu0 %v6856_v63  ;;  %6373 = vmatprep.subr.bf16.mxu1 %v6879_v0  ;;  %v1141_v63 = vld [vmem:[%s8372_s8 + $0xa70] sm:$0xff]  ;;  %v1130_v0 = vld [vmem:[%s8372_s8 + $0xa18] sm:$0xff] }
 0x4f6   : > { %6455 = vmatprep.subr.bf16.mxu0 %v6881_v1  ;;  %v1142_v1 = vld [vmem:[%s8372_s8 + $0xa78] sm:$0xff]  ;;  %v7047_v4 = vcombine.high %v1129_v61, %v1141_v63  ;;  %v7046_v9 = vcombine.low %v1129_v61, %v1141_v63 }
 0x4f7   : > { %v7049_v5 = vcombine.high %v1130_v0, %v1142_v1  ;;  %v7048_v10 = vcombine.low %v1130_v0, %v1142_v1  ;;  %v1297_v0 = vld [vmem:[%s8372_s8 + $0xf50] sm:$0xff] }
 0x4f8   : > { %6374 = vmatpush1.bf16.msra.mxu1 %v6878_v6  ;;  %v1153_v6 = vld [vmem:[%s8372_s8 + $0xad0] sm:$0xff] }
 0x4f9   : > { %6456 = vmatpush1.bf16.msra.mxu0 %v6880_v29  ;;  %6375 = vmatprep.subr.bf16.mxu1 %v6903_v7  ;;  %v1165_v29 = vld [vmem:[%s8372_s8 + $0xb30] sm:$0xff]  ;;  %v1154_v7 = vld [vmem:[%s8372_s8 + $0xad8] sm:$0xff] }
 0x4fa   : > { %6457 = vmatprep.subr.bf16.mxu0 %v6905_v8  ;;  %v1166_v8 = vld [vmem:[%s8372_s8 + $0xb38] sm:$0xff]  ;;  %v7071_v11 = vcombine.high %v1153_v6, %v1165_v29  ;;  %v7070_v21 = vcombine.low %v1153_v6, %v1165_v29  ;;  %v1309_v1 = vld [vmem:[%s8372_s8 + $0xfb0] sm:$0xff] }
 0x4fb   : > { %v7073_v12 = vcombine.high %v1154_v7, %v1166_v8  ;;  %v7072_v22 = vcombine.low %v1154_v7, %v1166_v8  ;;  %v7215_v6 = vcombine.high %v1297_v0, %v1309_v1  ;;  %v1321_v7 = vld [vmem:[%s8372_s8 + $0x1010] sm:$0xff] }
 0x4fc   : > { %6376 = vmatpush1.bf16.msra.mxu1 %v6902_v15  ;;  %v1177_v15 = vld [vmem:[%s8372_s8 + $0xb90] sm:$0xff] }
 0x4fd   : > { %6458 = vmatpush1.bf16.msra.mxu0 %v6904_v16  ;;  %6377 = vmatprep.subr.bf16.mxu1 %v6927_v18  ;;  %v1189_v16 = vld [vmem:[%s8372_s8 + $0xbf0] sm:$0xff]  ;;  %v1178_v18 = vld [vmem:[%s8372_s8 + $0xb98] sm:$0xff] }
 0x4fe   : > { %6459 = vmatprep.subr.bf16.mxu0 %v6929_v20  ;;  %v1190_v20 = vld [vmem:[%s8372_s8 + $0xbf8] sm:$0xff]  ;;  %v7095_v23 = vcombine.high %v1177_v15, %v1189_v16  ;;  %v7094_v30 = vcombine.low %v1177_v15, %v1189_v16  ;;  %v1333_v8 = vld [vmem:[%s8372_s8 + $0x1070] sm:$0xff] }
 0x4ff   : > { %v7097_v24 = vcombine.high %v1178_v18, %v1190_v20  ;;  %v7096_v31 = vcombine.low %v1178_v18, %v1190_v20  ;;  %v7239_v15 = vcombine.high %v1321_v7, %v1333_v8  ;;  %v1345_v18 = vld [vmem:[%s8372_s8 + $0x10d0] sm:$0xff] }
 0x500   : > { %6378 = vmatpush1.bf16.msra.mxu1 %v6926_v25  ;;  %v1201_v25 = vld [vmem:[%s8372_s8 + $0xc50] sm:$0xff] }
 0x501   : > { %6460 = vmatpush1.bf16.msra.mxu0 %v6928_v26  ;;  %6379 = vmatprep.subr.bf16.mxu1 %v6951_v27  ;;  %v1213_v26 = vld [vmem:[%s8372_s8 + $0xcb0] sm:$0xff]  ;;  %v1202_v27 = vld [vmem:[%s8372_s8 + $0xc58] sm:$0xff] }
 0x502   : > { %6461 = vmatprep.subr.bf16.mxu0 %v6953_v28  ;;  %v1214_v28 = vld [vmem:[%s8372_s8 + $0xcb8] sm:$0xff]  ;;  %v7119_v34 = vcombine.high %v1201_v25, %v1213_v26  ;;  %v1357_v20 = vld [vmem:[%s8372_s8 + $0x1130] sm:$0xff] }
 0x503   : > { %v7121_v32 = vcombine.high %v1202_v27, %v1214_v28  ;;  %v7120_v44 = vcombine.low %v1202_v27, %v1214_v28  ;;  %v1644_v27 = vrot.slane %v9116_v57, %v8965_v42 }
 0x504   : > { %6380 = vmatpush1.bf16.msra.mxu1 %v6950_v36  ;;  %v1225_v36 = vld [vmem:[%s8372_s8 + $0xd10] sm:$0xff] }
 0x505   : > { %6462 = vmatpush1.bf16.msra.mxu0 %v6952_v37  ;;  %6381 = vmatprep.subr.bf16.mxu1 %v6975_v38  ;;  %v1237_v37 = vld [vmem:[%s8372_s8 + $0xd70] sm:$0xff]  ;;  %v7118_v38 = vcombine.low %v1201_v25, %v1213_v26  ;;  %v1636_v25 = vrot.slane %v9116_v57, %v8962_v39  ;;  %v7238_v26 = vcombine.low %v1321_v7, %v1333_v8 }
 0x506   : > { %6463 = vmatprep.subr.bf16.mxu0 %v6977_v41  ;;  %v1226_v41 = vld [vmem:[%s8372_s8 + $0xd18] sm:$0xff]  ;;  %v7143_v45 = vcombine.high %v1225_v36, %v1237_v37  ;;  %v7142_v59 = vcombine.low %v1225_v36, %v1237_v37  ;;  %v1381_v36 = vld [vmem:[%s8372_s8 + $0x11f0] sm:$0xff] }
 0x507   : > { %v7144_v50 = vcombine.low %v1226_v41, %v1238_v43  ;;  %v1441_v8 = vld [vmem:[%s8372_s8 + $0x13d0] sm:$0xff] }
 0x508   : > { %6382 = vmatpush1.bf16.msra.mxu1 %v6974_v47  ;;  %v1261_v47 = vld [vmem:[%s8372_s8 + $0xe30] sm:$0xff] }
 0x509   : > { %6464 = vmatpush1.bf16.msra.mxu0 %v6976_v19  ;;  %6383 = vmatprep.subr.bf16.mxu1 %v6999_v48  ;;  %v7145_v19 = vcombine.high %v1226_v41, %v1238_v43  ;;  %v1250_v48 = vld [vmem:[%s8372_s8 + $0xdd8] sm:$0xff]  ;;  %v7167_v51 = vcombine.high %v1249_v46, %v1261_v47 }
 0x50a   : > { %6465 = vmatprep.subr.bf16.mxu0 %v7001_v49  ;;  %v1262_v49 = vld [vmem:[%s8372_s8 + $0xe38] sm:$0xff] }
 0x50b   : > { %v7169_v52 = vcombine.high %v1250_v48, %v1262_v49  ;;  %v7168_v61 = vcombine.low %v1250_v48, %v1262_v49  ;;  %v1370_v43 = vld [vmem:[%s8372_s8 + $0x1198] sm:$0xff] }
 0x50c   : > { %6384 = vmatpush1.bf16.msra.mxu1 %v6998_v53  ;;  %v1273_v53 = vld [vmem:[%s8372_s8 + $0xe90] sm:$0xff] }
 0x50d   : > { %6466 = vmatpush1.bf16.msra.mxu0 %v7000_v55  ;;  %6385 = vmatprep.subr.bf16.mxu1 %v7023_v56  ;;  %v1285_v55 = vld [vmem:[%s8372_s8 + $0xef0] sm:$0xff]  ;;  %v1274_v56 = vld [vmem:[%s8372_s8 + $0xe98] sm:$0xff] }
 0x50e   : > { %6467 = vmatprep.subr.bf16.mxu0 %v7025_v58  ;;  %v7166_v58 = vcombine.low %v1249_v46, %v1261_v47  ;;  %v7191_v63 = vcombine.high %v1273_v53, %v1285_v55 }
 0x510   : > { %6386 = vmatpush1.bf16.msra.mxu1 %v7022_v2  ;;  %v1298_v2 = vld [vmem:[%s8372_s8 + $0xf58] sm:$0xff] }
 0x511   : > { %6468 = vmatpush1.bf16.msra.mxu0 %v7024_v3  ;;  %6387 = vmatprep.subr.bf16.mxu1 %v7047_v4  ;;  %v1310_v3 = vld [vmem:[%s8372_s8 + $0xfb8] sm:$0xff]  ;;  %v7190_v4 = vcombine.low %v1273_v53, %v1285_v55  ;;  %v1393_v55 = vld [vmem:[%s8372_s8 + $0x1250] sm:$0xff] }
 0x512   : > { %6469 = vmatprep.subr.bf16.mxu0 %v7049_v5  ;;  %v7217_v29 = vcombine.high %v1298_v2, %v1310_v3 }
 0x514   : > { %6388 = vmatpush1.bf16.msra.mxu1 %v7046_v9  ;;  %v1322_v9 = vld [vmem:[%s8372_s8 + $0x1018] sm:$0xff] }
 0x515   : > { %6470 = vmatpush1.bf16.msra.mxu0 %v7048_v10  ;;  %6389 = vmatprep.subr.bf16.mxu1 %v7071_v11  ;;  %v1334_v10 = vld [vmem:[%s8372_s8 + $0x1078] sm:$0xff]  ;;  %v7214_v11 = vcombine.low %v1297_v0, %v1309_v1  ;;  %v1417_v1 = vld [vmem:[%s8372_s8 + $0x1310] sm:$0xff] }
 0x516   : > { %6471 = vmatprep.subr.bf16.mxu0 %v7073_v12  ;;  %v7216_v12 = vcombine.low %v1298_v2, %v1310_v3  ;;  %v7241_v16 = vcombine.high %v1322_v9, %v1334_v10  ;;  %v7240_v28 = vcombine.low %v1322_v9, %v1334_v10  ;;  %v1429_v2 = vld [vmem:[%s8372_s8 + $0x1370] sm:$0xff]  ;;  %v1418_v3 = vld [vmem:[%s8372_s8 + $0x1318] sm:$0xff] }
 0x517   : > { %v1453_v9 = vld [vmem:[%s8372_s8 + $0x1430] sm:$0xff] }
 0x518   : > { %6390 = vmatpush1.bf16.msra.mxu1 %v7070_v21  ;;  %v1632_v21 = vrot.slane %v9116_v57, %v8954_v35 }
 0x519   : > { %6472 = vmatpush1.bf16.msra.mxu0 %v7072_v22  ;;  %6391 = vmatprep.subr.bf16.mxu1 %v7095_v23  ;;  %v1346_v22 = vld [vmem:[%s8372_s8 + $0x10d8] sm:$0xff] }
 0x51a   : > { %6473 = vmatprep.subr.bf16.mxu0 %v7097_v24  ;;  %v1358_v23 = vld [vmem:[%s8372_s8 + $0x1138] sm:$0xff]  ;;  %v1640_v24 = vrot.slane %v9116_v57, %v8959_v13  ;;  %v7262_v57 = vcombine.low %v1345_v18, %v1357_v20 }
 0x51c   : > { %6392 = vmatpush1.bf16.msra.mxu1 %v7094_v30  ;;  %v7263_v30 = vcombine.high %v1345_v18, %v1357_v20 }
 0x51d   : > { %6474 = vmatpush1.bf16.msra.mxu0 %v7096_v31  ;;  %6402 = vmatprep.subr.bf16.mxu1 %v7119_v34  ;;  %v7265_v34 = vcombine.high %v1346_v22, %v1358_v23 }
 0x51e   : > { %6484 = vmatprep.subr.bf16.mxu0 %v7121_v32  ;;  %v1369_v32 = vld [vmem:[%s8372_s8 + $0x1190] sm:$0xff] }
 0x51f   : > { %6394 = vmatmul.mubr.bf16.vlgmr.msra.gmra.mrb[24].mxu1 %v8478_v33 }
 0x520   : > { %6476 = vmatmul.mubr.bf16.vlgmr.msra.gmra.mrb[24].mxu0 %v8478_v33  ;;  %6403 = vmatpush1.bf16.msra.mxu1 %v7118_v38  ;;  %v1286_v33 = vld [vmem:[%s8372_s8 + $0xef8] sm:$0xff] }
 0x521   : > { %6434 = vmatprep.mubr.bf16.mxu1 %v8486_v40  ;;  %6485 = vmatpush1.bf16.msra.mxu0 %v7120_v44  ;;  %v7192_v5 = vcombine.low %v1274_v56, %v1286_v33  ;;  %v1382_v44 = vld [vmem:[%s8372_s8 + $0x11f8] sm:$0xff] }
 0x522   : > { %6516 = vmatprep.mubr.bf16.mxu0 %v8486_v40  ;;  %6404 = vmatprep.subr.bf16.mxu1 %v7143_v45  ;;  %v7193_v40 = vcombine.high %v1274_v56, %v1286_v33  ;;  %v7289_v53 = vcombine.high %v1370_v43, %v1382_v44  ;;  %v1405_v56 = vld [vmem:[%s8372_s8 + $0x12b0] sm:$0xff]  ;;  %v1394_v33 = vld [vmem:[%s8372_s8 + $0x1258] sm:$0xff] }
 0x523   : > { %6486 = vmatprep.subr.bf16.mxu0 %v7145_v19 }
 0x524   : > { %6405 = vmatpush1.bf16.msra.mxu1 %v7142_v59 }
 0x525   : > { %6487 = vmatpush1.bf16.msra.mxu0 %v7144_v50  ;;  %6406 = vmatprep.subr.bf16.mxu1 %v7167_v51  ;;  %v7264_v50 = vcombine.low %v1346_v22, %v1358_v23  ;;  %v7287_v51 = vcombine.high %v1369_v32, %v1381_v36 }
 0x526   : > { %6488 = vmatprep.subr.bf16.mxu0 %v7169_v52 }
 0x528   : > { %6407 = vmatpush1.bf16.msra.mxu1 %v7166_v58  ;;  %v1406_v58 = vld [vmem:[%s8372_s8 + $0x12b8] sm:$0xff] }
 0x529   : > { %6489 = vmatpush1.bf16.msra.mxu0 %v7168_v61  ;;  %6408 = vmatprep.subr.bf16.mxu1 %v7191_v63  ;;  %v7286_v61 = vcombine.low %v1369_v32, %v1381_v36  ;;  %v7288_v63 = vcombine.low %v1370_v43, %v1382_v44  ;;  %v7313_v0 = vcombine.high %v1394_v33, %v1406_v58  ;;  %v1489_v32 = vld [vmem:[%s8372_s8 + $0x1550] sm:$0xff] }
 0x52a   : > { %6490 = vmatprep.subr.bf16.mxu0 %v7193_v40  ;;  %v7311_v40 = vcombine.high %v1393_v55, %v1405_v56  ;;  %v1501_v36 = vld [vmem:[%s8372_s8 + $0x15b0] sm:$0xff] }
 0x52b   : > { %v7407_v44 = vcombine.high %v1489_v32, %v1501_v36 }
 0x52c   : > { %6409 = vmatpush1.bf16.msra.mxu1 %v7190_v4  ;;  %v1430_v4 = vld [vmem:[%s8372_s8 + $0x1378] sm:$0xff] }
 0x52d   : > { %6491 = vmatpush1.bf16.msra.mxu0 %v7192_v5  ;;  %6410 = vmatprep.subr.bf16.mxu1 %v7215_v6  ;;  %v7310_v5 = vcombine.low %v1393_v55, %v1405_v56  ;;  %v7312_v6 = vcombine.low %v1394_v33, %v1406_v58  ;;  %v7337_v7 = vcombine.high %v1418_v3, %v1430_v4  ;;  %v1550_v55 = vld [vmem:[%s8372_s8 + $0x1738] sm:$0xff] }
 0x52e   : > { %6492 = vmatprep.subr.bf16.mxu0 %v7217_v29  ;;  %v7335_v29 = vcombine.high %v1417_v1, %v1429_v2  ;;  %v7336_v20 = vcombine.low %v1418_v3, %v1430_v4 }
 0x530   : > { %6411 = vmatpush1.bf16.msra.mxu1 %v7214_v11  ;;  %v1442_v11 = vld [vmem:[%s8372_s8 + $0x13d8] sm:$0xff] }
 0x531   : > { %6493 = vmatpush1.bf16.msra.mxu0 %v7216_v12  ;;  %6412 = vmatprep.subr.bf16.mxu1 %v7239_v15  ;;  %v1454_v12 = vld [vmem:[%s8372_s8 + $0x1438] sm:$0xff] }
 0x532   : > { %v6108_v31 = vpop.f32.mrb[16].mxu1  ;;  %6494 = vmatprep.subr.bf16.mxu0 %v7241_v16  ;;  %v7334_v16 = vcombine.low %v1417_v1, %v1429_v2  ;;  %v7361_v23 = vcombine.high %v1442_v11, %v1454_v12  ;;  %v1574_v1 = vld [vmem:[%s8372_s8 + $0x17f8] sm:$0xff] }
 0x533   : > { %v7658_v37 = vadd.f32 %v6108_v31, %v1632_v21  ;;  %v6190_v38 = vpop.f32.mrb[16].mxu0  ;;  %v6110_v41 = vpop.f32.mrb[17].mxu1  ;;  %v7359_v21 = vcombine.high %v1441_v8, %v1453_v9 }
 0x534   : > { %v7660_v45 = vadd.f32 %v6190_v38, %v1640_v24  ;;  %v7659_v46 = vadd.f32 %v6110_v41, %v1636_v25  ;;  %v6192_v47 = vpop.f32.mrb[17].mxu0  ;;  %v6112_v19 = vpop.f32.mrb[18].mxu1  ;;  %6413 = vmatpush1.bf16.msra.mxu1 %v7238_v26  ;;  %v1465_v24 = vld [vmem:[%s8372_s8 + $0x1490] sm:$0xff]  ;;  %v1466_v26 = vld [vmem:[%s8372_s8 + $0x1498] sm:$0xff] }
 0x535   : > { %7839 = vtanh.f32 %v7658_v37  ;;  %v7661_v48 = vadd.f32 %v6192_v47, %v1644_v27  ;;  %v6194_v49 = vpop.f32.mrb[18].mxu0  ;;  %6495 = vmatpush1.bf16.msra.mxu0 %v7240_v28  ;;  %v6113_v59 = vpop.f32.mrb[19].mxu1  ;;  %6414 = vmatprep.subr.bf16.mxu1 %v7263_v30  ;;  %v1477_v25 = vld [vmem:[%s8372_s8 + $0x14f0] sm:$0xff]  ;;  %v1478_v27 = vld [vmem:[%s8372_s8 + $0x14f8] sm:$0xff]  ;;  %v7358_v28 = vcombine.low %v1441_v8, %v1453_v9  ;;  %v7360_v30 = vcombine.low %v1442_v11, %v1454_v12 }
 0x536   : > { %7841 = vtanh.f32 %v7660_v45  ;;  %v6195_v52 = vpop.f32.mrb[19].mxu0  ;;  %6496 = vmatprep.subr.bf16.mxu0 %v7265_v34  ;;  %v7383_v31 = vcombine.high %v1465_v24, %v1477_v25  ;;  %v7385_v34 = vcombine.high %v1466_v26, %v1478_v27  ;;  %v1490_v37 = vld [vmem:[%s8372_s8 + $0x1558] sm:$0xff]  ;;  %v7382_v41 = vcombine.low %v1465_v24, %v1477_v25  ;;  %v1525_v47 = vld [vmem:[%s8372_s8 + $0x1670] sm:$0xff] }
 0x537   : > { %7843 = vtanh.f32 %v7659_v46  ;;  %v1502_v38 = vld [vmem:[%s8372_s8 + $0x15b8] sm:$0xff]  ;;  %v7384_v43 = vcombine.low %v1466_v26, %v1478_v27  ;;  %v1513_v46 = vld [vmem:[%s8372_s8 + $0x1610] sm:$0xff] }
 0x538   : > { %7845 = vtanh.f32 %v7661_v48  ;;  %6415 = vmatpush1.bf16.msra.mxu1 %v7262_v57  ;;  %v7409_v45 = vcombine.high %v1490_v37, %v1502_v38  ;;  %v1514_v19 = vld [vmem:[%s8372_s8 + $0x1618] sm:$0xff]  ;;  %v7406_v48 = vcombine.low %v1489_v32, %v1501_v36  ;;  %v7408_v49 = vcombine.low %v1490_v37, %v1502_v38  ;;  %v1549_v52 = vld [vmem:[%s8372_s8 + $0x1730] sm:$0xff] }
 0x539   : > { %6497 = vmatpush1.bf16.msra.mxu0 %v7264_v50  ;;  %6416 = vmatprep.subr.bf16.mxu1 %v7287_v51  ;;  %v1526_v57 = vld [vmem:[%s8372_s8 + $0x1678] sm:$0xff]  ;;  %v7431_v59 = vcombine.high %v1513_v46, %v1525_v47  ;;  %v1537_v51 = vld [vmem:[%s8372_s8 + $0x16d0] sm:$0xff]  ;;  %v7430_v56 = vcombine.low %v1513_v46, %v1525_v47 }
 0x53a   : > { %6498 = vmatprep.subr.bf16.mxu0 %v7289_v53  ;;  %v7433_v50 = vcombine.high %v1514_v19, %v1526_v57  ;;  %v1538_v53 = vld [vmem:[%s8372_s8 + $0x16d8] sm:$0xff]  ;;  %v7432_v33 = vcombine.low %v1514_v19, %v1526_v57  ;;  %v7455_v58 = vcombine.high %v1537_v51, %v1549_v52  ;;  %v7454_v2 = vcombine.low %v1537_v51, %v1549_v52 }
 0x53b   : > { %v7456_v3 = vcombine.low %v1538_v53, %v1550_v55 }
 0x53c   : > { %6417 = vmatpush1.bf16.msra.mxu1 %v7286_v61  ;;  %v7457_v61 = vcombine.high %v1538_v53, %v1550_v55 }
 0x53d   : > { %6499 = vmatpush1.bf16.msra.mxu0 %v7288_v63  ;;  %6418 = vmatprep.subr.bf16.mxu1 %v7311_v40  ;;  %v1561_v63 = vld [vmem:[%s8372_s8 + $0x1790] sm:$0xff] }
 0x53e   : > { %6500 = vmatprep.subr.bf16.mxu0 %v7313_v0  ;;  %v1573_v40 = vld [vmem:[%s8372_s8 + $0x17f0] sm:$0xff]  ;;  %v1562_v0 = vld [vmem:[%s8372_s8 + $0x1798] sm:$0xff] }
 0x53f   : > { %v7840_v10 = vpop.eup %7839  ;;  %v7479_v4 = vcombine.high %v1561_v63, %v1573_v40 }
 0x540   : > { %v7842_v15 = vpop.eup %7841  ;;  %6561 = vst [vmem:[%s8829_s9 + $0x60] sm:$0xff] %v7840_v10  ;;  %6419 = vmatpush1.bf16.msra.mxu1 %v7310_v5  ;;  %v7481_v5 = vcombine.high %v1562_v0, %v1574_v1 }
 0x541   : > { %v7844_v18 = vpop.eup %7843  ;;  %6563 = vst [vmem:[%s8829_s9 + $0x70] sm:$0xff] %v7842_v15  ;;  %6501 = vmatpush1.bf16.msra.mxu0 %v7312_v6  ;;  %6420 = vmatprep.subr.bf16.mxu1 %v7335_v29  ;;  %v7478_v6 = vcombine.low %v1561_v63, %v1573_v40  ;;  %v7480_v29 = vcombine.low %v1562_v0, %v1574_v1 }
 0x542   : > { %v7846_v22 = vpop.eup %7845  ;;  %6562 = vst [vmem:[%s8829_s9 + $0x68] sm:$0xff] %v7844_v18  ;;  %6502 = vmatprep.subr.bf16.mxu0 %v7337_v7  ;;  %v1577_v7 = vld [vmem:[%s8786_s5 + $0x10] sm:$0xff] }
 0x543   : > { %6564 = vst [vmem:[%s8829_s9 + $0x78] sm:$0xff] %v7846_v22  ;;  %v1648_v8 = vrot.slane %v1577_v7, %v8388_v60  ;;  %v1656_v9 = vrot.slane %v1577_v7, %v8537_v17  ;;  %v1652_v10 = vrot.slane %v1577_v7, %v8391_v62  ;;  %v1660_v11 = vrot.slane %v1577_v7, %v8462_v14 }
 0x544   : > { %6421 = vmatpush1.bf16.msra.mxu1 %v7334_v16  ;;  %v1664_v27 = vrot.slane %v1577_v7, %v8954_v35 }
 0x545   : > { %6503 = vmatpush1.bf16.msra.mxu0 %v7336_v20  ;;  %6422 = vmatprep.subr.bf16.mxu1 %v7359_v21 }
 0x546   : > { %6504 = vmatprep.subr.bf16.mxu0 %v7361_v23 }
 0x548   : > { %6423 = vmatpush1.bf16.msra.mxu1 %v7358_v28  ;;  %v1672_v28 = vrot.slane %v1577_v7, %v8959_v13 }
 0x549   : > { %6505 = vmatpush1.bf16.msra.mxu0 %v7360_v30  ;;  %6424 = vmatprep.subr.bf16.mxu1 %v7383_v31  ;;  %v1668_v30 = vrot.slane %v1577_v7, %v8962_v39  ;;  %v1676_v31 = vrot.slane %v1577_v7, %v8965_v42 }
 0x54a   : > { %6506 = vmatprep.subr.bf16.mxu0 %v7385_v34 }
 0x54c   : > { %6425 = vmatpush1.bf16.msra.mxu1 %v7382_v41 }
 0x54d   : > { %6507 = vmatpush1.bf16.msra.mxu0 %v7384_v43  ;;  %6426 = vmatprep.subr.bf16.mxu1 %v7407_v44 }
 0x54e   : > { %6508 = vmatprep.subr.bf16.mxu0 %v7409_v45 }
 0x550   : > { %6427 = vmatpush1.bf16.msra.mxu1 %v7406_v48 }
 0x551   : > { %6509 = vmatpush1.bf16.msra.mxu0 %v7408_v49  ;;  %6428 = vmatprep.subr.bf16.mxu1 %v7431_v59 }
 0x552   : > { %6510 = vmatprep.subr.bf16.mxu0 %v7433_v50 }
 0x554   : > { %6429 = vmatpush1.bf16.msra.mxu1 %v7430_v56 }
 0x555   : > { %6511 = vmatpush1.bf16.msra.mxu0 %v7432_v33  ;;  %6430 = vmatprep.subr.bf16.mxu1 %v7455_v58 }
 0x556   : > { %6512 = vmatprep.subr.bf16.mxu0 %v7457_v61 }
 0x558   : > { %6431 = vmatpush1.bf16.msra.mxu1 %v7454_v2 }
 0x559   : > { %6513 = vmatpush1.bf16.msra.mxu0 %v7456_v3  ;;  %6432 = vmatprep.subr.bf16.mxu1 %v7479_v4 }
 0x55a   : > { %6514 = vmatprep.subr.bf16.mxu0 %v7481_v5 }
 0x55c   : > { %6433 = vmatpush1.bf16.msra.mxu1 %v7478_v6 }
 0x55d   : > { %6515 = vmatpush1.bf16.msra.mxu0 %v7480_v29 }
 0x55f   : > { %6435 = vmatmul.mubr.bf16.vlgmr.msra.gmra.mrb[24].mxu1 %v8558_v54 }
 0x560   : > { %6517 = vmatmul.mubr.bf16.vlgmr.msra.gmra.mrb[24].mxu0 %v8558_v54 }
 0x5b2   : > { %v6272_v12 = vpop.f32.mrb[20].mxu1 }
 0x5b3   : > { %v7662_v15 = vadd.f32 %v6272_v12, %v1648_v8  ;;  %v6354_v16 = vpop.f32.mrb[20].mxu0  ;;  %v6274_v18 = vpop.f32.mrb[21].mxu1 }
 0x5b4   : > { %v7664_v20 = vadd.f32 %v6354_v16, %v1656_v9  ;;  %v7663_v21 = vadd.f32 %v6274_v18, %v1652_v10  ;;  %v6356_v22 = vpop.f32.mrb[21].mxu0  ;;  %v6276_v54 = vpop.f32.mrb[22].mxu1 }
 0x5b5   : > { %7847 = vtanh.f32 %v7662_v15  ;;  %v7665_v60 = vadd.f32 %v6356_v22, %v1660_v11  ;;  %v6358_v23 = vpop.f32.mrb[22].mxu0  ;;  %v6277_v17 = vpop.f32.mrb[23].mxu1 }
 0x5b6   : > { %7849 = vtanh.f32 %v7664_v20  ;;  %v6359_v62 = vpop.f32.mrb[23].mxu0 }
 0x5b7   : > { %7851 = vtanh.f32 %v7663_v21 }
 0x5b8   : > { %7853 = vtanh.f32 %v7665_v60 }
 0x5bf   : > { %v7848_v14 = vpop.eup %7847 }
 0x5c0   : > { %v7850_v24 = vpop.eup %7849  ;;  %6565 = vst [vmem:[%s8829_s9 + $0x80] sm:$0xff] %v7848_v14 }
 0x5c1   : > { %v7852_v25 = vpop.eup %7851  ;;  %6567 = vst [vmem:[%s8829_s9 + $0x90] sm:$0xff] %v7850_v24 }
 0x5c2   : > { %v7854_v26 = vpop.eup %7853  ;;  %6566 = vst [vmem:[%s8829_s9 + $0x88] sm:$0xff] %v7852_v25 }
 0x5c3   : > { %6568 = vst [vmem:[%s8829_s9 + $0x98] sm:$0xff] %v7854_v26 }
 0x632   : > { %v6436_v34 = vpop.f32.mrb[24].mxu1 }
 0x633   : > { %v7666_v32 = vadd.f32 %v6436_v34, %v1664_v27  ;;  %v6518_v36 = vpop.f32.mrb[24].mxu0  ;;  %v6438_v37 = vpop.f32.mrb[25].mxu1 }
 0x634   : > { %v7668_v38 = vadd.f32 %v6518_v36, %v1672_v28  ;;  %v7667_v41 = vadd.f32 %v6438_v37, %v1668_v30  ;;  %v6520_v43 = vpop.f32.mrb[25].mxu0  ;;  %v6440_v44 = vpop.f32.mrb[26].mxu1 }
 0x635   : > { %7855 = vtanh.f32 %v7666_v32  ;;  %v7669_v35 = vadd.f32 %v6520_v43, %v1676_v31  ;;  %v6522_v45 = vpop.f32.mrb[26].mxu0  ;;  %v6441_v13 = vpop.f32.mrb[27].mxu1 }
 0x636   : > { %7857 = vtanh.f32 %v7668_v38  ;;  %v6523_v39 = vpop.f32.mrb[27].mxu0 }
 0x637   : > { %7859 = vtanh.f32 %v7667_v41 }
 0x638   : > { %7861 = vtanh.f32 %v7669_v35 }
 0x63f   : > { %v7856_v42 = vpop.eup %7855 }
 0x640   : > { %v7858_v46 = vpop.eup %7857  ;;  %6569 = vst [vmem:[%s8829_s9 + $0xa0] sm:$0xff] %v7856_v42 }
 0x641   : > { %v7860_v47 = vpop.eup %7859  ;;  %6571 = vst [vmem:[%s8829_s9 + $0xb0] sm:$0xff] %v7858_v46 }
 0x642   : > { %v7862_v19 = vpop.eup %7861  ;;  %6570 = vst [vmem:[%s8829_s9 + $0xa8] sm:$0xff] %v7860_v47 }
 0x643   : > { %6572 = vst [vmem:[%s8829_s9 + $0xb8] sm:$0xff] %v7862_v19 }
 0x644 PF: > { %s9399_s27 = sld [smem:[#allocation15_spill]]  ;;  %s9400_s15 = sld [smem:[#allocation16_spill]] }
 0x645   : > { %s9401_s24 = smov %s8073_s25  ;;  %s9402_s25 = smov %s8077_s26 }
 0x64a   : > { %p17_p1 = scmp.ge.s32.totalorder %s9399_s27, 6   ;;  %s9403_s26 = smov %s9400_s15 }
 0x64c   :  { %19 = sbr.rel (!%p17_p1) target bundleno = 8 (0x8), region = 114 }
 0x653   :  { %6595 = vsyncpa [#allocation3], 1 }
 0x654   :  { %6597 = vsyncpa [#allocation3 + $0x1], 1 }
 0x655   :  { %6598 = vsyncpa [#allocation5], 1 }
 0x656   :  { %6599 = vsyncpa [#allocation8], 1 }

</bundles_post_ra>
